<compile_context>
chip_gen: v7x
topology: tpu7x:2x2x1
jax: 0.10.0
libtpu: 0.0.40
codegen_flags: <defaults>
</compile_context>

<pallas_src>
import jax
import jax.numpy as jnp
from jax.experimental import pallas as pl
from jax.experimental.pallas import tpu as pltpu


# -----------------------------------------------------------------------------
# Pallas kernels
# -----------------------------------------------------------------------------
def _patch_embed_kernel(p_ref, w_ref, b_ref, o_ref):
    # p_ref: (tm, K) bf16 already-binarized patch pixels.  The 1/255 scale is
    # folded into w_ref, so this is a single bf16 MXU matmul + bias.
    o_ref[...] = (jnp.dot(p_ref[...], w_ref[...],
                          preferred_element_type=jnp.float32)
                  + b_ref[0, :]).astype(o_ref.dtype)


def _convt_parity_kernel(x_ref, w_ref, shift_ref, o_ref):
    # Fused ConvTranspose2d(k=3, s=2, p=1, output_padding=1) + BN(eval) + ReLU,
    # decomposed into the 4 output-parity sub-convolutions so only real input
    # pixels (never inserted zeros) reach the MXU.
    #   x_ref    : (1, Hi+1, Wi+1, Cin)  bf16, bottom/right zero-padded input
    #   w_ref    : (3, 3, Cin, Cout)     bf16 flipped ConvT weights, BN scale
    #                                    pre-folded per output channel
    #   shift_ref: (1, Cout)             f32  folded conv-bias + BN shift
    #   o_ref    : (1, 4, Hi*Wi, Cout)   bf16 parity planes [ee, eo, oe, oo]
    #              plane p covers output pixels (2a + p//2, 2b + p%2)
    _, _, HW, _ = o_ref.shape
    Hp, Wp, Cin = x_ref.shape[1], x_ref.shape[2], x_ref.shape[3]
    Hi, Wi = Hp - 1, Wp - 1

    x00 = x_ref[0, 0:Hi, 0:Wi, :].reshape(HW, Cin)          # x[a,   b  ]
    x01 = x_ref[0, 0:Hi, 1:Wi + 1, :].reshape(HW, Cin)      # x[a,   b+1]
    x10 = x_ref[0, 1:Hi + 1, 0:Wi, :].reshape(HW, Cin)      # x[a+1, b  ]
    x11 = x_ref[0, 1:Hi + 1, 1:Wi + 1, :].reshape(HW, Cin)  # x[a+1, b+1]

    def mm(a, dy, dx):
        return jnp.dot(a, w_ref[dy, dx], preferred_element_type=jnp.float32)

    shift = shift_ref[0, :]

    def finish(acc):
        return jnp.maximum(acc + shift, 0.0).astype(o_ref.dtype)

    # out[2a  , 2b  ] : 1 tap
    o_ref[0, 0] = finish(mm(x00, 1, 1))
    # out[2a  , 2b+1] : 2 taps
    o_ref[0, 1] = finish(mm(x00, 1, 0) + mm(x01, 1, 2))
    # out[2a+1, 2b  ] : 2 taps
    o_ref[0, 2] = finish(mm(x00, 0, 1) + mm(x10, 2, 1))
    # out[2a+1, 2b+1] : 4 taps
    o_ref[0, 3] = finish(mm(x00, 0, 0) + mm(x01, 0, 2)
                         + mm(x10, 2, 0) + mm(x11, 2, 2))


def _head_kernel(x_ref, w_ref, b_ref, pos_ref, o_ref):
    # 1x1 Conv2d(64, Cout) + SpatialSoftmax (soft-argmax), lane-dense layout:
    # logits are (Cout, H*W) so exp (EUP) and the reductions use full vregs.
    #   x_ref  : (1, H, W, 64) bf16     w_ref: (Cout, 64) bf16
    #   b_ref  : (Cout, 1) f32          pos_ref: (2, H*W) f32 (row0=x, row1=y)
    #   o_ref  : (1, Cout, 2) f32       col0 = E[x], col1 = E[y]
    _, H, W, Cin = x_ref.shape
    x = x_ref[0].reshape(H * W, Cin)
    logits = jax.lax.dot_general(
        w_ref[...], x, (((1,), (1,)), ((), ())),
        preferred_element_type=jnp.float32) + b_ref[...]        # (Cout, HW)
    m = jnp.max(logits, axis=1, keepdims=True)
    e = jnp.exp(logits - m)                                     # (Cout, HW)
    s = jnp.sum(e, axis=1, keepdims=True)                       # (Cout, 1)
    # Unnormalized expectations via one small matmul, then one reciprocal.
    num = jax.lax.dot_general(
        e, pos_ref[...], (((1,), (1,)), ((), ())),
        preferred_element_type=jnp.float32)                     # (Cout, 2)
    o_ref[0] = num * pl.reciprocal(s, approx=True)


# -----------------------------------------------------------------------------
# pallas_call wrappers
# -----------------------------------------------------------------------------
def patch_embed(patches, w, bias):
    # patches: (M, K) bf16 binarized pixels; tiled over rows, parallel grid.
    M, K = patches.shape
    C = w.shape[1]
    tm = M if M <= 128 else 128
    return pl.pallas_call(
        _patch_embed_kernel,
        out_shape=jax.ShapeDtypeStruct((M, C), jnp.bfloat16),
        grid=(pl.cdiv(M, tm),),
        in_specs=[
            pl.BlockSpec((tm, K), lambda i: (i, 0)),
            pl.BlockSpec((K, C), lambda i: (0, 0)),
            pl.BlockSpec((1, C), lambda i: (0, 0)),
        ],
        out_specs=pl.BlockSpec((tm, C), lambda i: (i, 0)),
        compiler_params=pltpu.CompilerParams(
            dimension_semantics=("parallel",)),
    )(patches, w, bias)


def convt_bn_relu(x, w, shift):
    # x: (B, Hi, Wi, Cin) bf16 -> (B, 2Hi, 2Wi, Cout) bf16
    B, Hi, Wi, Cin = x.shape
    Cout = w.shape[-1]
    Ho, Wo = 2 * Hi, 2 * Wi
    # One-pixel bottom/right zero pad so the kernel can read the x[a+1,b+1]
    # neighbor taps (cheap; no 4x zero-upsampled tensor is ever materialized).
    xp = jnp.pad(x, ((0, 0), (0, 1), (0, 1), (0, 0)))
    planes = pl.pallas_call(
        _convt_parity_kernel,
        out_shape=jax.ShapeDtypeStruct((B, 4, Hi * Wi, Cout), jnp.bfloat16),
        grid=(B,),
        in_specs=[
            pl.BlockSpec((1, Hi + 1, Wi + 1, Cin), lambda b: (b, 0, 0, 0)),
            pl.BlockSpec((3, 3, Cin, Cout), lambda b: (0, 0, 0, 0)),
            pl.BlockSpec((1, Cout), lambda b: (0, 0)),
        ],
        out_specs=pl.BlockSpec((1, 4, Hi * Wi, Cout), lambda b: (b, 0, 0, 0)),
        compiler_params=pltpu.CompilerParams(
            dimension_semantics=("parallel",),
            vmem_limit_bytes=48 * 1024 * 1024),
    )(xp, w, shift)
    # Interleave the 4 parity planes back into NHWC (single bf16 XLA transpose).
    out = planes.reshape(B, 2, 2, Hi, Wi, Cout)
    out = jnp.transpose(out, (0, 3, 1, 4, 2, 5)).reshape(B, Ho, Wo, Cout)
    return out


def head(x, w, bias, pos):
    B, H, W, Cin = x.shape
    Cout = w.shape[0]
    return pl.pallas_call(
        _head_kernel,
        out_shape=jax.ShapeDtypeStruct((B, Cout, 2), jnp.float32),
        grid=(B,),
        in_specs=[
            pl.BlockSpec((1, H, W, Cin), lambda b: (b, 0, 0, 0)),
            pl.BlockSpec((Cout, Cin), lambda b: (0, 0)),
            pl.BlockSpec((Cout, 1), lambda b: (0, 0)),
            pl.BlockSpec((2, H * W), lambda b: (0, 0)),
        ],
        out_specs=pl.BlockSpec((1, Cout, 2), lambda b: (b, 0, 0)),
        compiler_params=pltpu.CompilerParams(
            dimension_semantics=("parallel",),
            vmem_limit_bytes=48 * 1024 * 1024),
    )(x, w, bias, pos)


# -----------------------------------------------------------------------------
# Parameter init (deterministic, mirrors the torch module's layer shapes)
# -----------------------------------------------------------------------------
def _make_upconv_stage(key, cin, cout):
    k1, k2, k3, k4, k5, k6 = jax.random.split(key, 6)
    # PyTorch ConvTranspose2d weight layout: (Cin, Cout, kh, kw)
    w_pt = 0.05 * jax.random.normal(k1, (cin, cout, 3, 3), jnp.float32)
    b_conv = 0.05 * jax.random.normal(k2, (cout,), jnp.float32)
    gamma = 1.0 + 0.1 * jax.random.normal(k3, (cout,), jnp.float32)
    beta = 0.1 * jax.random.normal(k4, (cout,), jnp.float32)
    run_mean = 0.1 * jax.random.normal(k5, (cout,), jnp.float32)
    run_var = 1.0 + 0.1 * jax.random.uniform(k6, (cout,), jnp.float32)
    eps = 1e-5
    # Transposed conv == zero-upsample + regular conv with flipped kernel:
    #   w_flip[dy, dx, ci, co] = w_pt[ci, co, 2-dy, 2-dx]
    w_flip = jnp.transpose(w_pt, (2, 3, 0, 1))[::-1, ::-1, :, :]
    scale = gamma / jnp.sqrt(run_var + eps)
    shift = beta + (b_conv - run_mean) * scale
    # Fold BN scale into the (bf16) weights; kernel epilogue is +shift, ReLU.
    w_folded = (w_flip * scale[None, None, None, :]).astype(jnp.bfloat16)
    return dict(w=w_folded, shift=shift.reshape(1, cout).astype(jnp.float32))


def init_params(key, height, width, input_channel, output_channel):
    ks = jax.random.split(key, 10)
    patch_dim = 32 * 32 * input_channel
    params = {}
    # backbone stand-in: 1/255 folded into the weight, stored bf16.
    w_bb = 0.02 * jax.random.normal(ks[0], (patch_dim, 512), jnp.float32)
    params["backbone"] = dict(
        w=(w_bb * (1.0 / 255.0)).astype(jnp.bfloat16),
        b=0.02 * jax.random.normal(ks[1], (1, 512), jnp.float32),
    )
    params["spd"] = dict(
        w1=0.1 * jax.random.normal(ks[2], (1, 128), jnp.float32),    # Linear(1,128).weight.T
        b1=0.1 * jax.random.normal(ks[3], (128,), jnp.float32),
        w2=0.1 * jax.random.normal(ks[4], (128, 128), jnp.float32),  # Linear(128,128).weight.T
        b2=0.1 * jax.random.normal(ks[5], (128,), jnp.float32),
    )
    params["upconv"] = [
        _make_upconv_stage(ks[6], 640, 256),
        _make_upconv_stage(ks[7], 256, 128),
        _make_upconv_stage(ks[8], 128, 64),
    ]
    kh1, kh2 = jax.random.split(ks[9], 2)
    w_head_pt = 0.1 * jax.random.normal(kh1, (output_channel, 64, 1, 1), jnp.float32)
    b_head = 0.1 * jax.random.normal(kh2, (output_channel,), jnp.float32)
    H4, W4 = height // 4, width // 4
    ys = jnp.linspace(-1.0, 1.0, H4)
    xs = jnp.linspace(-1.0, 1.0, W4)
    pos = jnp.stack([jnp.tile(xs, H4), jnp.repeat(ys, W4)], axis=0)  # (2, HW)
    params["head"] = dict(
        w=w_head_pt[:, :, 0, 0].astype(jnp.bfloat16),                # (Cout, 64)
        b=b_head.reshape(output_channel, 1).astype(jnp.float32),
        pos=pos.astype(jnp.float32),
    )
    return params


# -----------------------------------------------------------------------------
# Forward pass (PointModel.forward)
# -----------------------------------------------------------------------------
def point_model_forward(params, bev, spd, *, height, width, input_channel):
    kh, kw = height // 32, width // 32
    B = bev.shape[0]

    # backbone: binarize (>0) once in the wrapper (exact in bf16; /255 folded
    # into the weights), 32x32 patch-embed to 512 channels (stand-in).
    bev_bin = (bev > 0).astype(jnp.bfloat16)
    bev_nhwc = jnp.transpose(bev_bin, (0, 2, 3, 1))                  # NCHW -> NHWC
    patches = bev_nhwc.reshape(B, kh, 32, kw, 32, input_channel)
    patches = jnp.transpose(patches, (0, 1, 3, 2, 4, 5)).reshape(
        B * kh * kw, 32 * 32 * input_channel)
    feats = patch_embed(patches, params["backbone"]["w"], params["backbone"]["b"])
    feats = feats.reshape(B, kh, kw, 512)

    # spd encoder: tiny (B,1)->(B,128) MLP in plain JAX (a pallas_call here is
    # pure launch overhead).
    spd2d = spd.reshape(B, 1).astype(jnp.float32)
    h = jnp.maximum(spd2d @ params["spd"]["w1"] + params["spd"]["b1"], 0.0)
    spd_emb = (h @ params["spd"]["w2"] + params["spd"]["b2"]).astype(jnp.bfloat16)
    # permute(0,3,2,1) + repeat(1,1,kh,kw) == broadcast over spatial dims
    spd_map = jnp.broadcast_to(spd_emb[:, None, None, :], (B, kh, kw, 128))

    x = jnp.concatenate([feats, spd_map], axis=-1)                   # (B,kh,kw,640) bf16

    for stage in params["upconv"]:
        x = convt_bn_relu(x, stage["w"], stage["shift"])

    return head(x, params["head"]["w"], params["head"]["b"],
                params["head"]["pos"])                                # (B, 20, 2)


if __name__ == "__main__":
    height = width = 64           # small shapes: kh = kw = 2, spatial softmax 16x16
    input_channel = 3
    output_channel = 20
    B = 2

    key = jax.random.PRNGKey(0)
    k_param, k_bev, k_spd = jax.random.split(key, 3)
    params = init_params(k_param, height, width, input_channel, output_channel)

    bev = 100.0 * jax.random.normal(k_bev, (B, input_channel, height, width),
                                    jnp.float32)                     # NCHW like torch
    spd = 10.0 * jax.random.uniform(k_spd, (B, 1, 1), jnp.float32)

    out = point_model_forward(params, bev, spd, height=height, width=width,
                              input_channel=input_channel)
    out = jax.block_until_ready(out)
    assert out.shape == (B, output_channel, 2), out.shape
    assert bool(jnp.all(jnp.isfinite(out)))
    print("KERNEL_OK")
</pallas_src>

<mosaic_0001>
module attributes {stable_mosaic.version = 11 : i64} {
  func.func @_patch_embed_kernel(%arg0: i32, %arg1: memref<8x3072xbf16, #tpu.memory_space<vmem>>, %arg2: memref<3072x512xbf16, #tpu.memory_space<vmem>>, %arg3: memref<1x512xf32, #tpu.memory_space<vmem>>, %arg4: memref<8x512xbf16, #tpu.memory_space<vmem>>) attributes {dimension_semantics = [#tpu.dimension_semantics<parallel>], iteration_bounds = array<i64: 1>, scalar_prefetch = 0 : i64, scratch_operands = 0 : i64, tpu.core_type = #tpu.core_type<tc>, window_params = [{transform_indices = @transform_0, window_bounds = array<i64: 8, 3072>}, {pipeline_mode = #tpu.pipeline_mode<synchronous>, transform_indices = @transform_1, window_bounds = array<i64: 3072, 512>}, {pipeline_mode = #tpu.pipeline_mode<synchronous>, transform_indices = @transform_2, window_bounds = array<i64: 1, 512>}, {transform_indices = @transform_3, window_bounds = array<i64: 8, 512>}]} {
    %c0 = arith.constant 0 : index
    %c0_0 = arith.constant 0 : index
    %0 = vector.load %arg1[%c0, %c0_0] : memref<8x3072xbf16, #tpu.memory_space<vmem>>, vector<8x3072xbf16>
    %c0_1 = arith.constant 0 : index
    %c0_2 = arith.constant 0 : index
    %1 = vector.load %arg2[%c0_1, %c0_2] : memref<3072x512xbf16, #tpu.memory_space<vmem>>, vector<3072x512xbf16>
    %cst = arith.constant dense<0.000000e+00> : vector<8x512xf32>
    %2 = tpu.matmul %0, %1, %cst {dimension_numbers = #tpu.dot_dimension_numbers<[1], [0], [0], [1], [0, 0, 1, 1], [], []>} : vector<8x3072xbf16>, vector<3072x512xbf16>, vector<8x512xf32> -> vector<8x512xf32>
    %c0_3 = arith.constant 0 : index
    %c0_4 = arith.constant 0 : index
    %3 = vector.load %arg3[%c0_3, %c0_4] : memref<1x512xf32, #tpu.memory_space<vmem>>, vector<1x512xf32>
    %4 = vector.shape_cast %3 : vector<1x512xf32> to vector<512xf32>
    %5 = vector.shape_cast %4 : vector<512xf32> to vector<1x512xf32>
    %6 = vector.broadcast %5 : vector<1x512xf32> to vector<8x512xf32>
    %7 = arith.addf %2, %6 : vector<8x512xf32>
    %8 = arith.truncf %7 : vector<8x512xf32> to vector<8x512xbf16>
    %c0_5 = arith.constant 0 : index
    %c0_6 = arith.constant 0 : index
    %9 = vector.load %arg4[%c0_5, %c0_6] : memref<8x512xbf16, #tpu.memory_space<vmem>>, vector<8x512xbf16>
    tpu.vector_store %arg4[%c0_5, %c0_6], %8 {strides = array<i32>} : memref<8x512xbf16, #tpu.memory_space<vmem>>, vector<8x512xbf16>,
    return
  }
  func.func @transform_0(%arg0: i32) -> (i32, i32) {
    %c0_i32 = arith.constant 0 : i32
    %c0_i32_0 = arith.constant 0 : i32
    return %arg0, %c0_i32 : i32, i32
  }
  func.func @transform_1(%arg0: i32) -> (i32, i32) {
    %c0_i32 = arith.constant 0 : i32
    %c0_i32_0 = arith.constant 0 : i32
    %c0_i32_1 = arith.constant 0 : i32
    return %c0_i32, %c0_i32_0 : i32, i32
  }
  func.func @transform_2(%arg0: i32) -> (i32, i32) {
    %c0_i32 = arith.constant 0 : i32
    %c0_i32_0 = arith.constant 0 : i32
    %c0_i32_1 = arith.constant 0 : i32
    return %c0_i32, %c0_i32_0 : i32, i32
  }
  func.func @transform_3(%arg0: i32) -> (i32, i32) {
    %c0_i32 = arith.constant 0 : i32
    %c0_i32_0 = arith.constant 0 : i32
    return %arg0, %c0_i32 : i32, i32
  }
}

</mosaic_0001>

<bundles_post_ra>
// kernel: tpu_custom_call.1
= control target key start
LH: loop header
LB: loop body
LE: loop exit
PB: predicated region body
PF: predicated region fallthrough
CT: control target
= control target key end

     0   :  { %8 = vsyncpa [#allocation3], 0  ;;  %s8100_s0 = inlined_call_operand.hbm [shape: bf16[8,3072], index: 0, kind: input, shape index: {}]   ;;  %s8101_s1 = inlined_call_operand.hbm [shape: bf16[3072,512], index: 1, kind: input, shape index: {}]   ;;  %s8102_s2 = inlined_call_operand.hbm [shape: f32[1,512], index: 2, kind: input, shape index: {}]   ;;  %s8103_s3 = inlined_call_operand.hbm [shape: bf16[8,512], index: 3, kind: output, shape index: {}]  }
   0x1   :  { %9 = vsyncpa [#allocation6], 0 }
   0x2   :  { %10 = vsyncpa [#allocation4], 0  ;;  %s7960_s12 = smov [#allocation5]   ;;  %s7866_s16 = scalar_lea.hbm %s8101_s1, 98304 }
   0x3   :  { %s26_s13 = sshll.u32 %s7960_s12, 4  ;;  %p7867_p0 = scmp.ne.s32.totalorder %s8101_s1, %s7866_s16  ;;  %s27_s13 = int_to_ptr.vmem [resolvable:$true] %s26_s13 }
   0x4   :  { %p7870_p1 = scmp.lt.u32.totalorder %s7866_s16, %s8101_s1 }
   0x6   :  { %p7872_p2 = pnand %p7870_p1, %p7867_p0 }
   0x8   :  { %7875 = shalt.err (!%p7872_p2)
}
   0x9   :  { %s7876_s21 = scalar_lea.vmem %s27_s13, 98304  ;;  %p7881_p4 = scmp.lt.s32.totalorder %s27_s13, %s27_s13 }
   0xa   :  { %p7877_p3 = scmp.ne.s32.totalorder %s27_s13, %s7876_s21  ;;  %p7882_p5 = scmp.lt.s32.totalorder %s7876_s21, %s7876_s21 }
   0xc   :  { %p7883_p6 = por %p7882_p5, %p7881_p4 }
   0xe   :  { %p7884_p7 = pnand %p7883_p6, %p7877_p3 }
  0x10   :  { %7887 = shalt.err (!%p7884_p7)
}
  0x11   :  { %s7961_s22 = smov 256   ;;  %s7962_s23 = smov 16  }
  0x12   :  { %32 = dma.hbm_to_vmem [thread:$0]  %s8101_s1, 98304, %s27_s13, [#allocation6], %s7961_s22, %s7961_s22, %s7962_s23  }
  0x13   :  { %s7963_s26 = smov [#allocation2]   ;;  %s7964_s28 = smov [#allocation7]  }
  0x14   :  { %s17_s27 = sshll.u32 %s7963_s26, 4  ;;  %s39_s29 = sshll.u32 %s7964_s28, 4  ;;  %s18_s27 = int_to_ptr.vmem [resolvable:$true] %s17_s27  ;;  %s40_s29 = int_to_ptr.vmem [resolvable:$true] %s39_s29 }
  0x15   :  { %s7888_s5 = scalar_lea.hbm %s8100_s0, 1536 }
  0x16   :  { %p7889_p8 = scmp.ne.s32.totalorder %s8100_s0, %s7888_s5  ;;  %p7892_p9 = scmp.lt.u32.totalorder %s7888_s5, %s8100_s0 }
  0x18   :  { %p7894_p10 = pnand %p7892_p9, %p7889_p8 }
  0x1a   :  { %7897 = shalt.err (!%p7894_p10)
}
  0x1b   :  { %s7898_s1 = scalar_lea.vmem %s18_s27, 1536  ;;  %p7903_p12 = scmp.lt.s32.totalorder %s18_s27, %s18_s27 }
  0x1c   :  { %p7899_p11 = scmp.ne.s32.totalorder %s18_s27, %s7898_s1  ;;  %p7904_p13 = scmp.lt.s32.totalorder %s7898_s1, %s7898_s1 }
  0x1e   :  { %p7905_p0 = por %p7904_p13, %p7903_p12 }
  0x20   :  { %p7906_p1 = pnand %p7905_p0, %p7899_p11 }
  0x22   :  { %7909 = shalt.err (!%p7906_p1)
}
  0x23   :  { %20 = dma.hbm_to_vmem [thread:$0]  %s8100_s0, 1536, %s18_s27, [#allocation3]  }
  0x24   :  { %s7910_s14 = scalar_lea.hbm %s8102_s2, 64 }
  0x25   :  { %p7911_p2 = scmp.ne.s32.totalorder %s8102_s2, %s7910_s14  ;;  %p7914_p3 = scmp.lt.u32.totalorder %s7910_s14, %s8102_s2 }
  0x27   :  { %p7916_p4 = pnand %p7914_p3, %p7911_p2 }
  0x29   :  { %7919 = shalt.err (!%p7916_p4)
}
  0x2a   :  { %s7920_s19 = scalar_lea.vmem %s40_s29, 64  ;;  %p7925_p6 = scmp.lt.s32.totalorder %s40_s29, %s40_s29 }
  0x2b   :  { %p7921_p5 = scmp.ne.s32.totalorder %s40_s29, %s7920_s19  ;;  %p7926_p7 = scmp.lt.s32.totalorder %s7920_s19, %s7920_s19 }
  0x2d   :  { %p7927_p8 = por %p7926_p7, %p7925_p6 }
  0x2f   :  { %p7928_p9 = pnand %p7927_p8, %p7921_p5 }
  0x31   :  { %7931 = shalt.err (!%p7928_p9)
}
  0x32   :  { %42 = dma.hbm_to_vmem [thread:$0]  %s8102_s2, 64, %s40_s29, [#allocation6]  }
  0x33   :  { %7954 = dma.done.wait [#allocation3], 1536  }
  0x34   :  { %7955 = vsyncadd [#allocation3], 4294965760 }
  0x35   :  { %7956 = dma.done.wait [#allocation6], 98368  }
  0x36   :  { %7957 = vsyncadd [#allocation6], 4294868928  ;;  %v6690_v0 = vld [vmem:[#allocation5 + $0x4] ss:$16 sps:$4 sm:$0xff]   ;;  %v6692_v1 = vld [vmem:[#allocation5 + $0xc] ss:$16 sps:$4 sm:$0xff]  }
  0x37   :  { %4778 = vmatprep.subr.bf16.mxu0 %v6690_v0  ;;  %v6694_v2 = vld [vmem:[#allocation5] ss:$16 sps:$4 sm:$0xff]   ;;  %v6695_v3 = vld [vmem:[#allocation5 + $0x8] ss:$16 sps:$4 sm:$0xff]   ;;  %5270 = vmatprep.subr.bf16.mxu1 %v6692_v1  ;;  %v6696_v4 = vld [vmem:[#allocation5 + $0x24] ss:$16 sps:$4 sm:$0xff]  }
  0x38   :  { %4779 = vmatpush1.bf16.msra.mxu0 %v6694_v2  ;;  %5271 = vmatpush1.bf16.msra.mxu1 %v6695_v3  ;;  %v6698_v5 = vld [vmem:[#allocation5 + $0x2c] ss:$16 sps:$4 sm:$0xff]   ;;  %v6700_v6 = vld [vmem:[#allocation5 + $0x20] ss:$16 sps:$4 sm:$0xff]   ;;  %v6701_v7 = vld [vmem:[#allocation5 + $0x28] ss:$16 sps:$4 sm:$0xff]  }
  0x39   :  { %4780 = vmatprep.subr.bf16.mxu0 %v6696_v4  ;;  %5272 = vmatprep.subr.bf16.mxu1 %v6698_v5  ;;  %v6702_v8 = vld [vmem:[#allocation5 + $0x44] ss:$16 sps:$4 sm:$0xff]   ;;  %v6704_v9 = vld [vmem:[#allocation5 + $0x4c] ss:$16 sps:$4 sm:$0xff]   ;;  %v6706_v10 = vld [vmem:[#allocation5 + $0x40] ss:$16 sps:$4 sm:$0xff]  }
  0x3a   :  { %v6707_v11 = vld [vmem:[#allocation5 + $0x48] ss:$16 sps:$4 sm:$0xff]   ;;  %v6708_v12 = vld [vmem:[#allocation5 + $0x64] ss:$16 sps:$4 sm:$0xff]   ;;  %v6710_v13 = vld [vmem:[#allocation5 + $0x6c] ss:$16 sps:$4 sm:$0xff]  }
  0x3b   :  { %v6712_v14 = vld [vmem:[#allocation5 + $0x60] ss:$16 sps:$4 sm:$0xff]   ;;  %v6713_v15 = vld [vmem:[#allocation5 + $0x68] ss:$16 sps:$4 sm:$0xff]   ;;  %v6714_v16 = vld [vmem:[#allocation5 + $0x84] ss:$16 sps:$4 sm:$0xff]  }
  0x3c   :  { %4781 = vmatpush1.bf16.msra.mxu0 %v6700_v6  ;;  %5273 = vmatpush1.bf16.msra.mxu1 %v6701_v7  ;;  %v6716_v17 = vld [vmem:[#allocation5 + $0x8c] ss:$16 sps:$4 sm:$0xff]   ;;  %v6718_v18 = vld [vmem:[#allocation5 + $0x80] ss:$16 sps:$4 sm:$0xff]   ;;  %v6719_v19 = vld [vmem:[#allocation5 + $0x88] ss:$16 sps:$4 sm:$0xff]  }
  0x3d   :  { %4782 = vmatprep.subr.bf16.mxu0 %v6702_v8  ;;  %5274 = vmatprep.subr.bf16.mxu1 %v6704_v9  ;;  %v6720_v20 = vld [vmem:[#allocation5 + $0xa4] ss:$16 sps:$4 sm:$0xff]   ;;  %v6722_v21 = vld [vmem:[#allocation5 + $0xac] ss:$16 sps:$4 sm:$0xff]   ;;  %v6724_v22 = vld [vmem:[#allocation5 + $0xa0] ss:$16 sps:$4 sm:$0xff]  }
  0x3e   :  { %v6725_v23 = vld [vmem:[#allocation5 + $0xa8] ss:$16 sps:$4 sm:$0xff]   ;;  %v6726_v24 = vld [vmem:[#allocation5 + $0xc4] ss:$16 sps:$4 sm:$0xff]   ;;  %v6728_v25 = vld [vmem:[#allocation5 + $0xcc] ss:$16 sps:$4 sm:$0xff]  }
  0x3f   :  { %v6730_v26 = vld [vmem:[#allocation5 + $0xc0] ss:$16 sps:$4 sm:$0xff]   ;;  %v6731_v27 = vld [vmem:[#allocation5 + $0xc8] ss:$16 sps:$4 sm:$0xff]   ;;  %v6732_v28 = vld [vmem:[#allocation5 + $0xe4] ss:$16 sps:$4 sm:$0xff]  }
  0x40   :  { %4783 = vmatpush1.bf16.msra.mxu0 %v6706_v10  ;;  %5275 = vmatpush1.bf16.msra.mxu1 %v6707_v11  ;;  %v6734_v29 = vld [vmem:[#allocation5 + $0xec] ss:$16 sps:$4 sm:$0xff]   ;;  %v6736_v30 = vld [vmem:[#allocation5 + $0xe0] ss:$16 sps:$4 sm:$0xff]   ;;  %v6737_v31 = vld [vmem:[#allocation5 + $0xe8] ss:$16 sps:$4 sm:$0xff]  }
  0x41   :  { %4784 = vmatprep.subr.bf16.mxu0 %v6708_v12  ;;  %5276 = vmatprep.subr.bf16.mxu1 %v6710_v13  ;;  %v6738_v32 = vld [vmem:[#allocation5 + $0x104] ss:$16 sps:$4 sm:$0xff]   ;;  %v6740_v33 = vld [vmem:[#allocation5 + $0x10c] ss:$16 sps:$4 sm:$0xff]   ;;  %v6742_v34 = vld [vmem:[#allocation5 + $0x100] ss:$16 sps:$4 sm:$0xff]  }
  0x42   :  { %v6743_v35 = vld [vmem:[#allocation5 + $0x108] ss:$16 sps:$4 sm:$0xff]   ;;  %v6744_v36 = vld [vmem:[#allocation5 + $0x124] ss:$16 sps:$4 sm:$0xff]   ;;  %v6746_v37 = vld [vmem:[#allocation5 + $0x12c] ss:$16 sps:$4 sm:$0xff]  }
  0x43   :  { %v6748_v38 = vld [vmem:[#allocation5 + $0x120] ss:$16 sps:$4 sm:$0xff]   ;;  %v6749_v39 = vld [vmem:[#allocation5 + $0x128] ss:$16 sps:$4 sm:$0xff]   ;;  %v6750_v40 = vld [vmem:[#allocation5 + $0x144] ss:$16 sps:$4 sm:$0xff]  }
  0x44   :  { %4785 = vmatpush1.bf16.msra.mxu0 %v6712_v14  ;;  %5277 = vmatpush1.bf16.msra.mxu1 %v6713_v15  ;;  %v6752_v41 = vld [vmem:[#allocation5 + $0x14c] ss:$16 sps:$4 sm:$0xff]   ;;  %v6754_v42 = vld [vmem:[#allocation5 + $0x140] ss:$16 sps:$4 sm:$0xff]   ;;  %v6755_v43 = vld [vmem:[#allocation5 + $0x148] ss:$16 sps:$4 sm:$0xff]  }
  0x45   :  { %4786 = vmatprep.subr.bf16.mxu0 %v6714_v16  ;;  %5278 = vmatprep.subr.bf16.mxu1 %v6716_v17  ;;  %v6756_v44 = vld [vmem:[#allocation5 + $0x164] ss:$16 sps:$4 sm:$0xff]   ;;  %v6758_v45 = vld [vmem:[#allocation5 + $0x16c] ss:$16 sps:$4 sm:$0xff]   ;;  %v6760_v47 = vld [vmem:[#allocation5 + $0x160] ss:$16 sps:$4 sm:$0xff]  }
  0x46   :  { %v52_v46 = vld [vmem:[#allocation2] sm:$0xff]  ;;  %v6761_v49 = vld [vmem:[#allocation5 + $0x168] ss:$16 sps:$4 sm:$0xff]   ;;  %v6764_v51 = vld [vmem:[#allocation5 + $0x18c] ss:$16 sps:$4 sm:$0xff]   ;;  %s7965_s2 = smov [#allocation8]  }
  0x47   :  { %v5797_v48 = vcombine.high %v52_v46, %v52_v46  ;;  %v6762_v50 = vld [vmem:[#allocation5 + $0x184] ss:$16 sps:$4 sm:$0xff]   ;;  %v6766_v52 = vld [vmem:[#allocation5 + $0x180] ss:$16 sps:$4 sm:$0xff]   ;;  %v6767_v53 = vld [vmem:[#allocation5 + $0x188] ss:$16 sps:$4 sm:$0xff]   ;;  %v5796_v4 = vcombine.low %v52_v46, %v52_v46 }
  0x48   :  { %4787 = vmatpush1.bf16.msra.mxu0 %v6718_v18  ;;  %5279 = vmatpush1.bf16.msra.mxu1 %v6719_v19  ;;  %v6768_v54 = vld [vmem:[#allocation5 + $0x1a4] ss:$16 sps:$4 sm:$0xff]   ;;  %v6770_v55 = vld [vmem:[#allocation5 + $0x1ac] ss:$16 sps:$4 sm:$0xff]   ;;  %v6772_v56 = vld [vmem:[#allocation5 + $0x1a0] ss:$16 sps:$4 sm:$0xff]  }
  0x49   :  { %4788 = vmatprep.subr.bf16.mxu0 %v6720_v20  ;;  %5280 = vmatprep.subr.bf16.mxu1 %v6722_v21  ;;  %v6773_v57 = vld [vmem:[#allocation5 + $0x1a8] ss:$16 sps:$4 sm:$0xff]   ;;  %v6774_v58 = vld [vmem:[#allocation5 + $0x1c4] ss:$16 sps:$4 sm:$0xff]   ;;  %v6776_v59 = vld [vmem:[#allocation5 + $0x1cc] ss:$16 sps:$4 sm:$0xff]  }
  0x4a   :  { %4810 = vmatprep.mubr.bf16.mxu0 %v5797_v48  ;;  %5302 = vmatprep.mubr.bf16.mxu1 %v5797_v48  ;;  %v6778_v60 = vld [vmem:[#allocation5 + $0x1c0] ss:$16 sps:$4 sm:$0xff]   ;;  %v6779_v61 = vld [vmem:[#allocation5 + $0x1c8] ss:$16 sps:$4 sm:$0xff]   ;;  %v6780_v62 = vld [vmem:[#allocation5 + $0x1e4] ss:$16 sps:$4 sm:$0xff]  }
  0x4b   :  { %v6782_v63 = vld [vmem:[#allocation5 + $0x1ec] ss:$16 sps:$4 sm:$0xff]   ;;  %v6784_v0 = vld [vmem:[#allocation5 + $0x1e0] ss:$16 sps:$4 sm:$0xff]   ;;  %v6785_v1 = vld [vmem:[#allocation5 + $0x1e8] ss:$16 sps:$4 sm:$0xff]  }
  0x4c   :  { %4789 = vmatpush1.bf16.msra.mxu0 %v6724_v22  ;;  %5281 = vmatpush1.bf16.msra.mxu1 %v6725_v23  ;;  %v6790_v2 = vld [vmem:[#allocation5 + $0x204] ss:$16 sps:$4 sm:$0xff]   ;;  %v6793_v3 = vld [vmem:[#allocation5 + $0x20c] ss:$16 sps:$4 sm:$0xff]   ;;  %v6788_v5 = vld [vmem:[#allocation5 + $0x200] ss:$16 sps:$4 sm:$0xff]  }
  0x4d   :  { %4790 = vmatprep.subr.bf16.mxu0 %v6726_v24  ;;  %5282 = vmatprep.subr.bf16.mxu1 %v6728_v25  ;;  %v6791_v6 = vld [vmem:[#allocation5 + $0x208] ss:$16 sps:$4 sm:$0xff]   ;;  %v6796_v7 = vld [vmem:[#allocation5 + $0x224] ss:$16 sps:$4 sm:$0xff]   ;;  %v6799_v8 = vld [vmem:[#allocation5 + $0x22c] ss:$16 sps:$4 sm:$0xff]  }
  0x4e   :  { %v6794_v9 = vld [vmem:[#allocation5 + $0x220] ss:$16 sps:$4 sm:$0xff]   ;;  %v6797_v10 = vld [vmem:[#allocation5 + $0x228] ss:$16 sps:$4 sm:$0xff]   ;;  %v6802_v11 = vld [vmem:[#allocation5 + $0x244] ss:$16 sps:$4 sm:$0xff]  }
  0x4f   :  { %v6805_v12 = vld [vmem:[#allocation5 + $0x24c] ss:$16 sps:$4 sm:$0xff]   ;;  %v6800_v13 = vld [vmem:[#allocation5 + $0x240] ss:$16 sps:$4 sm:$0xff]   ;;  %v6803_v14 = vld [vmem:[#allocation5 + $0x248] ss:$16 sps:$4 sm:$0xff]  }
  0x50   :  { %4791 = vmatpush1.bf16.msra.mxu0 %v6730_v26  ;;  %5283 = vmatpush1.bf16.msra.mxu1 %v6731_v27  ;;  %v6808_v15 = vld [vmem:[#allocation5 + $0x264] ss:$16 sps:$4 sm:$0xff]   ;;  %v6811_v16 = vld [vmem:[#allocation5 + $0x26c] ss:$16 sps:$4 sm:$0xff]   ;;  %v6806_v17 = vld [vmem:[#allocation5 + $0x260] ss:$16 sps:$4 sm:$0xff]  }
  0x51   :  { %4792 = vmatprep.subr.bf16.mxu0 %v6732_v28  ;;  %5284 = vmatprep.subr.bf16.mxu1 %v6734_v29  ;;  %v6809_v18 = vld [vmem:[#allocation5 + $0x268] ss:$16 sps:$4 sm:$0xff]   ;;  %v6814_v19 = vld [vmem:[#allocation5 + $0x284] ss:$16 sps:$4 sm:$0xff]   ;;  %v6817_v20 = vld [vmem:[#allocation5 + $0x28c] ss:$16 sps:$4 sm:$0xff]  }
  0x52   :  { %v6812_v21 = vld [vmem:[#allocation5 + $0x280] ss:$16 sps:$4 sm:$0xff]   ;;  %v6815_v22 = vld [vmem:[#allocation5 + $0x288] ss:$16 sps:$4 sm:$0xff]   ;;  %v6820_v23 = vld [vmem:[#allocation5 + $0x2a4] ss:$16 sps:$4 sm:$0xff]  }
  0x53   :  { %v6823_v24 = vld [vmem:[#allocation5 + $0x2ac] ss:$16 sps:$4 sm:$0xff]   ;;  %v6818_v25 = vld [vmem:[#allocation5 + $0x2a0] ss:$16 sps:$4 sm:$0xff]   ;;  %v6821_v26 = vld [vmem:[#allocation5 + $0x2a8] ss:$16 sps:$4 sm:$0xff]  }
  0x54   :  { %4793 = vmatpush1.bf16.msra.mxu0 %v6736_v30  ;;  %5285 = vmatpush1.bf16.msra.mxu1 %v6737_v31  ;;  %v6826_v27 = vld [vmem:[#allocation5 + $0x2c4] ss:$16 sps:$4 sm:$0xff]   ;;  %v6829_v28 = vld [vmem:[#allocation5 + $0x2cc] ss:$16 sps:$4 sm:$0xff]   ;;  %v6824_v31 = vld [vmem:[#allocation5 + $0x2c0] ss:$16 sps:$4 sm:$0xff]  }
  0x55   :  { %4794 = vmatprep.subr.bf16.mxu0 %v6738_v32  ;;  %5286 = vmatprep.subr.bf16.mxu1 %v6740_v33  ;;  %v8022_v29 = vld [vmem:[#allocation2 + $0x8] sm:$0xff]  ;;  %v6832_v33 = vld [vmem:[#allocation5 + $0x2e4] ss:$16 sps:$4 sm:$0xff]   ;;  %s5786_s21 = sshll.u32 %s7965_s2, 4  ;;  %s5787_s21 = int_to_ptr.vmem [resolvable:$true] %s5786_s21 }
  0x56   :  { %v5799_v30 = vcombine.high %v8022_v29, %v8022_v29  ;;  %v6827_v32 = vld [vmem:[#allocation5 + $0x2c8] ss:$16 sps:$4 sm:$0xff]   ;;  %v6853_v46 = vld [vmem:[#allocation5 + $0x34c] ss:$16 sps:$4 sm:$0xff]   ;;  %s7932_s22 = scalar_lea.vmem %s5787_s21, 256  ;;  %p7937_p11 = scmp.lt.s32.totalorder %s5787_s21, %s5787_s21 }
  0x57   :  { %v6851_v48 = vld [vmem:[#allocation5 + $0x348] ss:$16 sps:$4 sm:$0xff]   ;;  %p7933_p10 = scmp.ne.s32.totalorder %s5787_s21, %s7932_s22  ;;  %p7938_p12 = scmp.lt.s32.totalorder %s7932_s22, %s7932_s22 }
  0x58   :  { %4795 = vmatpush1.bf16.msra.mxu0 %v6742_v34  ;;  %5287 = vmatpush1.bf16.msra.mxu1 %v6743_v35  ;;  %v6835_v34 = vld [vmem:[#allocation5 + $0x2ec] ss:$16 sps:$4 sm:$0xff]   ;;  %v6830_v35 = vld [vmem:[#allocation5 + $0x2e0] ss:$16 sps:$4 sm:$0xff]  }
  0x59   :  { %4796 = vmatprep.subr.bf16.mxu0 %v6744_v36  ;;  %5288 = vmatprep.subr.bf16.mxu1 %v6746_v37  ;;  %v6833_v36 = vld [vmem:[#allocation5 + $0x2e8] ss:$16 sps:$4 sm:$0xff]   ;;  %v6838_v37 = vld [vmem:[#allocation5 + $0x304] ss:$16 sps:$4 sm:$0xff]   ;;  %p7939_p13 = por %p7938_p12, %p7937_p11 }
  0x5b   :  { %p7940_p0 = pnand %p7939_p13, %p7933_p10 }
  0x5c   :  { %4797 = vmatpush1.bf16.msra.mxu0 %v6748_v38  ;;  %5289 = vmatpush1.bf16.msra.mxu1 %v6749_v39  ;;  %v6841_v38 = vld [vmem:[#allocation5 + $0x30c] ss:$16 sps:$4 sm:$0xff]   ;;  %v6836_v39 = vld [vmem:[#allocation5 + $0x300] ss:$16 sps:$4 sm:$0xff]  }
  0x5d   :  { %4798 = vmatprep.subr.bf16.mxu0 %v6750_v40  ;;  %5290 = vmatprep.subr.bf16.mxu1 %v6752_v41  ;;  %v6839_v40 = vld [vmem:[#allocation5 + $0x308] ss:$16 sps:$4 sm:$0xff]   ;;  %v6844_v41 = vld [vmem:[#allocation5 + $0x324] ss:$16 sps:$4 sm:$0xff]  }
  0x60   :  { %4799 = vmatpush1.bf16.msra.mxu0 %v6754_v42  ;;  %5291 = vmatpush1.bf16.msra.mxu1 %v6755_v43  ;;  %v6847_v42 = vld [vmem:[#allocation5 + $0x32c] ss:$16 sps:$4 sm:$0xff]   ;;  %v6842_v43 = vld [vmem:[#allocation5 + $0x320] ss:$16 sps:$4 sm:$0xff]  }
  0x61   :  { %4800 = vmatprep.subr.bf16.mxu0 %v6756_v44  ;;  %5292 = vmatprep.subr.bf16.mxu1 %v6758_v45  ;;  %v6845_v44 = vld [vmem:[#allocation5 + $0x328] ss:$16 sps:$4 sm:$0xff]   ;;  %v6850_v45 = vld [vmem:[#allocation5 + $0x344] ss:$16 sps:$4 sm:$0xff]  }
  0x64   :  { %4801 = vmatpush1.bf16.msra.mxu0 %v6760_v47  ;;  %5293 = vmatpush1.bf16.msra.mxu1 %v6761_v49  ;;  %v6848_v47 = vld [vmem:[#allocation5 + $0x340] ss:$16 sps:$4 sm:$0xff]   ;;  %v6856_v49 = vld [vmem:[#allocation5 + $0x364] ss:$16 sps:$4 sm:$0xff]  }
  0x65   :  { %4802 = vmatprep.subr.bf16.mxu0 %v6762_v50  ;;  %5294 = vmatprep.subr.bf16.mxu1 %v6764_v51  ;;  %v6859_v50 = vld [vmem:[#allocation5 + $0x36c] ss:$16 sps:$4 sm:$0xff]   ;;  %v6854_v51 = vld [vmem:[#allocation5 + $0x360] ss:$16 sps:$4 sm:$0xff]  }
  0x68   :  { %4803 = vmatpush1.bf16.msra.mxu0 %v6766_v52  ;;  %5295 = vmatpush1.bf16.msra.mxu1 %v6767_v53  ;;  %v6857_v52 = vld [vmem:[#allocation5 + $0x368] ss:$16 sps:$4 sm:$0xff]   ;;  %v6862_v53 = vld [vmem:[#allocation5 + $0x384] ss:$16 sps:$4 sm:$0xff]  }
  0x69   :  { %4804 = vmatprep.subr.bf16.mxu0 %v6768_v54  ;;  %5296 = vmatprep.subr.bf16.mxu1 %v6770_v55  ;;  %v6865_v54 = vld [vmem:[#allocation5 + $0x38c] ss:$16 sps:$4 sm:$0xff]   ;;  %v6860_v55 = vld [vmem:[#allocation5 + $0x380] ss:$16 sps:$4 sm:$0xff]  }
  0x6c   :  { %4805 = vmatpush1.bf16.msra.mxu0 %v6772_v56  ;;  %5297 = vmatpush1.bf16.msra.mxu1 %v6773_v57  ;;  %v6863_v56 = vld [vmem:[#allocation5 + $0x388] ss:$16 sps:$4 sm:$0xff]   ;;  %v6868_v57 = vld [vmem:[#allocation5 + $0x3a4] ss:$16 sps:$4 sm:$0xff]  }
  0x6d   :  { %4806 = vmatprep.subr.bf16.mxu0 %v6774_v58  ;;  %5298 = vmatprep.subr.bf16.mxu1 %v6776_v59  ;;  %v6871_v58 = vld [vmem:[#allocation5 + $0x3ac] ss:$16 sps:$4 sm:$0xff]   ;;  %v6866_v59 = vld [vmem:[#allocation5 + $0x3a0] ss:$16 sps:$4 sm:$0xff]  }
  0x70   :  { %4807 = vmatpush1.bf16.msra.mxu0 %v6778_v60  ;;  %5299 = vmatpush1.bf16.msra.mxu1 %v6779_v61  ;;  %v6869_v60 = vld [vmem:[#allocation5 + $0x3a8] ss:$16 sps:$4 sm:$0xff]   ;;  %v6874_v61 = vld [vmem:[#allocation5 + $0x3c4] ss:$16 sps:$4 sm:$0xff]  }
  0x71   :  { %4808 = vmatprep.subr.bf16.mxu0 %v6780_v62  ;;  %5300 = vmatprep.subr.bf16.mxu1 %v6782_v63  ;;  %v6877_v62 = vld [vmem:[#allocation5 + $0x3cc] ss:$16 sps:$4 sm:$0xff]   ;;  %v6872_v63 = vld [vmem:[#allocation5 + $0x3c0] ss:$16 sps:$4 sm:$0xff]  }
  0x74   :  { %4809 = vmatpush1.bf16.msra.mxu0 %v6784_v0  ;;  %5301 = vmatpush1.bf16.msra.mxu1 %v6785_v1  ;;  %v6875_v0 = vld [vmem:[#allocation5 + $0x3c8] ss:$16 sps:$4 sm:$0xff]   ;;  %v6880_v1 = vld [vmem:[#allocation5 + $0x3e4] ss:$16 sps:$4 sm:$0xff]  }
  0x75   :  { %4819 = vmatprep.subr.bf16.mxu0 %v6790_v2  ;;  %5311 = vmatprep.subr.bf16.mxu1 %v6793_v3  ;;  %v6883_v2 = vld [vmem:[#allocation5 + $0x3ec] ss:$16 sps:$4 sm:$0xff]   ;;  %v6878_v3 = vld [vmem:[#allocation5 + $0x3e0] ss:$16 sps:$4 sm:$0xff]  }
  0x77   :  { %4811 = vmatmul.mubr.bf16.vlgmr.msra.gmra.mrb[0].mxu0 %v5796_v4  ;;  %5303 = vmatmul.mubr.bf16.vlgmr.msra.gmra.mrb[0].mxu1 %v5796_v4  ;;  %v6881_v4 = vld [vmem:[#allocation5 + $0x3e8] ss:$16 sps:$4 sm:$0xff]  }
  0x78   :  { %4820 = vmatpush1.bf16.msra.mxu0 %v6788_v5  ;;  %5312 = vmatpush1.bf16.msra.mxu1 %v6791_v6  ;;  %v6888_v5 = vld [vmem:[#allocation5 + $0x404] ss:$16 sps:$4 sm:$0xff]   ;;  %v6891_v6 = vld [vmem:[#allocation5 + $0x40c] ss:$16 sps:$4 sm:$0xff]  }
  0x79   :  { %4821 = vmatprep.subr.bf16.mxu0 %v6796_v7  ;;  %5313 = vmatprep.subr.bf16.mxu1 %v6799_v8  ;;  %v5798_v7 = vcombine.low %v8022_v29, %v8022_v29  ;;  %v6886_v8 = vld [vmem:[#allocation5 + $0x400] ss:$16 sps:$4 sm:$0xff]   ;;  %v6921_v29 = vld [vmem:[#allocation5 + $0x4ac] ss:$16 sps:$4 sm:$0xff]  }
  0x7a   :  { %4851 = vmatprep.mubr.bf16.mxu0 %v5799_v30  ;;  %5343 = vmatprep.mubr.bf16.mxu1 %v5799_v30  ;;  %v6916_v30 = vld [vmem:[#allocation5 + $0x4a0] ss:$16 sps:$4 sm:$0xff]  }
  0x7c   :  { %4822 = vmatpush1.bf16.msra.mxu0 %v6794_v9  ;;  %5314 = vmatpush1.bf16.msra.mxu1 %v6797_v10  ;;  %v6889_v9 = vld [vmem:[#allocation5 + $0x408] ss:$16 sps:$4 sm:$0xff]   ;;  %v6894_v10 = vld [vmem:[#allocation5 + $0x424] ss:$16 sps:$4 sm:$0xff]  }
  0x7d   :  { %4823 = vmatprep.subr.bf16.mxu0 %v6802_v11  ;;  %5315 = vmatprep.subr.bf16.mxu1 %v6805_v12  ;;  %v8028_v11 = vld [vmem:[#allocation2 + $0x10] sm:$0xff]  ;;  %v6897_v12 = vld [vmem:[#allocation5 + $0x42c] ss:$16 sps:$4 sm:$0xff]  }
  0x80   :  { %4824 = vmatpush1.bf16.msra.mxu0 %v6800_v13  ;;  %5316 = vmatpush1.bf16.msra.mxu1 %v6803_v14  ;;  %v5801_v13 = vcombine.high %v8028_v11, %v8028_v11  ;;  %v6892_v14 = vld [vmem:[#allocation5 + $0x420] ss:$16 sps:$4 sm:$0xff]  }
  0x81   :  { %4825 = vmatprep.subr.bf16.mxu0 %v6808_v15  ;;  %5317 = vmatprep.subr.bf16.mxu1 %v6811_v16  ;;  %v6895_v15 = vld [vmem:[#allocation5 + $0x428] ss:$16 sps:$4 sm:$0xff]   ;;  %v6900_v16 = vld [vmem:[#allocation5 + $0x444] ss:$16 sps:$4 sm:$0xff]  }
  0x84   :  { %4826 = vmatpush1.bf16.msra.mxu0 %v6806_v17  ;;  %5318 = vmatpush1.bf16.msra.mxu1 %v6809_v18  ;;  %v6903_v17 = vld [vmem:[#allocation5 + $0x44c] ss:$16 sps:$4 sm:$0xff]   ;;  %v6898_v18 = vld [vmem:[#allocation5 + $0x440] ss:$16 sps:$4 sm:$0xff]  }
  0x85   :  { %4827 = vmatprep.subr.bf16.mxu0 %v6814_v19  ;;  %5319 = vmatprep.subr.bf16.mxu1 %v6817_v20  ;;  %v6901_v19 = vld [vmem:[#allocation5 + $0x448] ss:$16 sps:$4 sm:$0xff]   ;;  %v6906_v20 = vld [vmem:[#allocation5 + $0x464] ss:$16 sps:$4 sm:$0xff]  }
  0x88   :  { %4828 = vmatpush1.bf16.msra.mxu0 %v6812_v21  ;;  %5320 = vmatpush1.bf16.msra.mxu1 %v6815_v22  ;;  %v6909_v21 = vld [vmem:[#allocation5 + $0x46c] ss:$16 sps:$4 sm:$0xff]   ;;  %v6904_v22 = vld [vmem:[#allocation5 + $0x460] ss:$16 sps:$4 sm:$0xff]  }
  0x89   :  { %4829 = vmatprep.subr.bf16.mxu0 %v6820_v23  ;;  %5321 = vmatprep.subr.bf16.mxu1 %v6823_v24  ;;  %v6907_v23 = vld [vmem:[#allocation5 + $0x468] ss:$16 sps:$4 sm:$0xff]   ;;  %v6912_v24 = vld [vmem:[#allocation5 + $0x484] ss:$16 sps:$4 sm:$0xff]  }
  0x8c   :  { %4830 = vmatpush1.bf16.msra.mxu0 %v6818_v25  ;;  %5322 = vmatpush1.bf16.msra.mxu1 %v6821_v26  ;;  %v6915_v25 = vld [vmem:[#allocation5 + $0x48c] ss:$16 sps:$4 sm:$0xff]   ;;  %v6910_v26 = vld [vmem:[#allocation5 + $0x480] ss:$16 sps:$4 sm:$0xff]  }
  0x8d   :  { %4831 = vmatprep.subr.bf16.mxu0 %v6826_v27  ;;  %5323 = vmatprep.subr.bf16.mxu1 %v6829_v28  ;;  %v6913_v27 = vld [vmem:[#allocation5 + $0x488] ss:$16 sps:$4 sm:$0xff]   ;;  %v6918_v28 = vld [vmem:[#allocation5 + $0x4a4] ss:$16 sps:$4 sm:$0xff]  }
  0x90   :  { %4832 = vmatpush1.bf16.msra.mxu0 %v6824_v31  ;;  %5324 = vmatpush1.bf16.msra.mxu1 %v6827_v32  ;;  %v6919_v31 = vld [vmem:[#allocation5 + $0x4a8] ss:$16 sps:$4 sm:$0xff]   ;;  %v6924_v32 = vld [vmem:[#allocation5 + $0x4c4] ss:$16 sps:$4 sm:$0xff]  }
  0x91   :  { %4833 = vmatprep.subr.bf16.mxu0 %v6832_v33  ;;  %5325 = vmatprep.subr.bf16.mxu1 %v6835_v34  ;;  %v6927_v33 = vld [vmem:[#allocation5 + $0x4cc] ss:$16 sps:$4 sm:$0xff]   ;;  %v6922_v34 = vld [vmem:[#allocation5 + $0x4c0] ss:$16 sps:$4 sm:$0xff]  }
  0x94   :  { %4834 = vmatpush1.bf16.msra.mxu0 %v6830_v35  ;;  %5326 = vmatpush1.bf16.msra.mxu1 %v6833_v36  ;;  %v6925_v35 = vld [vmem:[#allocation5 + $0x4c8] ss:$16 sps:$4 sm:$0xff]   ;;  %v6930_v36 = vld [vmem:[#allocation5 + $0x4e4] ss:$16 sps:$4 sm:$0xff]  }
  0x95   :  { %4835 = vmatprep.subr.bf16.mxu0 %v6838_v37  ;;  %5327 = vmatprep.subr.bf16.mxu1 %v6841_v38  ;;  %v6933_v37 = vld [vmem:[#allocation5 + $0x4ec] ss:$16 sps:$4 sm:$0xff]   ;;  %v6928_v38 = vld [vmem:[#allocation5 + $0x4e0] ss:$16 sps:$4 sm:$0xff]  }
  0x98   :  { %4836 = vmatpush1.bf16.msra.mxu0 %v6836_v39  ;;  %5328 = vmatpush1.bf16.msra.mxu1 %v6839_v40  ;;  %v6931_v39 = vld [vmem:[#allocation5 + $0x4e8] ss:$16 sps:$4 sm:$0xff]   ;;  %v6936_v40 = vld [vmem:[#allocation5 + $0x504] ss:$16 sps:$4 sm:$0xff]  }
  0x99   :  { %4837 = vmatprep.subr.bf16.mxu0 %v6844_v41  ;;  %5329 = vmatprep.subr.bf16.mxu1 %v6847_v42  ;;  %v6939_v41 = vld [vmem:[#allocation5 + $0x50c] ss:$16 sps:$4 sm:$0xff]   ;;  %v6934_v42 = vld [vmem:[#allocation5 + $0x500] ss:$16 sps:$4 sm:$0xff]  }
  0x9c   :  { %4838 = vmatpush1.bf16.msra.mxu0 %v6842_v43  ;;  %5330 = vmatpush1.bf16.msra.mxu1 %v6845_v44  ;;  %v6937_v43 = vld [vmem:[#allocation5 + $0x508] ss:$16 sps:$4 sm:$0xff]   ;;  %v6942_v44 = vld [vmem:[#allocation5 + $0x524] ss:$16 sps:$4 sm:$0xff]  }
  0x9d   :  { %4839 = vmatprep.subr.bf16.mxu0 %v6850_v45  ;;  %5331 = vmatprep.subr.bf16.mxu1 %v6853_v46  ;;  %v6945_v45 = vld [vmem:[#allocation5 + $0x52c] ss:$16 sps:$4 sm:$0xff]   ;;  %v6940_v46 = vld [vmem:[#allocation5 + $0x520] ss:$16 sps:$4 sm:$0xff]  }
  0xa0   :  { %4840 = vmatpush1.bf16.msra.mxu0 %v6848_v47  ;;  %5332 = vmatpush1.bf16.msra.mxu1 %v6851_v48  ;;  %v6943_v47 = vld [vmem:[#allocation5 + $0x528] ss:$16 sps:$4 sm:$0xff]   ;;  %v6948_v48 = vld [vmem:[#allocation5 + $0x544] ss:$16 sps:$4 sm:$0xff]  }
  0xa1   :  { %4841 = vmatprep.subr.bf16.mxu0 %v6856_v49  ;;  %5333 = vmatprep.subr.bf16.mxu1 %v6859_v50  ;;  %v6951_v49 = vld [vmem:[#allocation5 + $0x54c] ss:$16 sps:$4 sm:$0xff]   ;;  %v6946_v50 = vld [vmem:[#allocation5 + $0x540] ss:$16 sps:$4 sm:$0xff]  }
  0xa4   :  { %4842 = vmatpush1.bf16.msra.mxu0 %v6854_v51  ;;  %5334 = vmatpush1.bf16.msra.mxu1 %v6857_v52  ;;  %v6949_v51 = vld [vmem:[#allocation5 + $0x548] ss:$16 sps:$4 sm:$0xff]   ;;  %v6954_v52 = vld [vmem:[#allocation5 + $0x564] ss:$16 sps:$4 sm:$0xff]  }
  0xa5   :  { %4843 = vmatprep.subr.bf16.mxu0 %v6862_v53  ;;  %5335 = vmatprep.subr.bf16.mxu1 %v6865_v54  ;;  %v6957_v53 = vld [vmem:[#allocation5 + $0x56c] ss:$16 sps:$4 sm:$0xff]   ;;  %v6952_v54 = vld [vmem:[#allocation5 + $0x560] ss:$16 sps:$4 sm:$0xff]  }
  0xa8   :  { %4844 = vmatpush1.bf16.msra.mxu0 %v6860_v55  ;;  %5336 = vmatpush1.bf16.msra.mxu1 %v6863_v56  ;;  %v6955_v55 = vld [vmem:[#allocation5 + $0x568] ss:$16 sps:$4 sm:$0xff]   ;;  %v6960_v56 = vld [vmem:[#allocation5 + $0x584] ss:$16 sps:$4 sm:$0xff]  }
  0xa9   :  { %4845 = vmatprep.subr.bf16.mxu0 %v6868_v57  ;;  %5337 = vmatprep.subr.bf16.mxu1 %v6871_v58  ;;  %v6963_v57 = vld [vmem:[#allocation5 + $0x58c] ss:$16 sps:$4 sm:$0xff]   ;;  %v6958_v58 = vld [vmem:[#allocation5 + $0x580] ss:$16 sps:$4 sm:$0xff]  }
  0xac   :  { %4846 = vmatpush1.bf16.msra.mxu0 %v6866_v59  ;;  %5338 = vmatpush1.bf16.msra.mxu1 %v6869_v60  ;;  %v6961_v59 = vld [vmem:[#allocation5 + $0x588] ss:$16 sps:$4 sm:$0xff]   ;;  %v6966_v60 = vld [vmem:[#allocation5 + $0x5a4] ss:$16 sps:$4 sm:$0xff]  }
  0xad   :  { %4847 = vmatprep.subr.bf16.mxu0 %v6874_v61  ;;  %5339 = vmatprep.subr.bf16.mxu1 %v6877_v62  ;;  %v6969_v61 = vld [vmem:[#allocation5 + $0x5ac] ss:$16 sps:$4 sm:$0xff]   ;;  %v6964_v62 = vld [vmem:[#allocation5 + $0x5a0] ss:$16 sps:$4 sm:$0xff]  }
  0xb0   :  { %4848 = vmatpush1.bf16.msra.mxu0 %v6872_v63  ;;  %5340 = vmatpush1.bf16.msra.mxu1 %v6875_v0  ;;  %v6967_v63 = vld [vmem:[#allocation5 + $0x5a8] ss:$16 sps:$4 sm:$0xff]   ;;  %v6972_v0 = vld [vmem:[#allocation5 + $0x5c4] ss:$16 sps:$4 sm:$0xff]  }
  0xb1   :  { %4849 = vmatprep.subr.bf16.mxu0 %v6880_v1  ;;  %5341 = vmatprep.subr.bf16.mxu1 %v6883_v2  ;;  %v6975_v1 = vld [vmem:[#allocation5 + $0x5cc] ss:$16 sps:$4 sm:$0xff]   ;;  %v6970_v2 = vld [vmem:[#allocation5 + $0x5c0] ss:$16 sps:$4 sm:$0xff]  }
  0xb4   :  { %4850 = vmatpush1.bf16.msra.mxu0 %v6878_v3  ;;  %5342 = vmatpush1.bf16.msra.mxu1 %v6881_v4  ;;  %v6973_v3 = vld [vmem:[#allocation5 + $0x5c8] ss:$16 sps:$4 sm:$0xff]   ;;  %v6978_v4 = vld [vmem:[#allocation5 + $0x5e4] ss:$16 sps:$4 sm:$0xff]  }
  0xb5   :  { %4860 = vmatprep.subr.bf16.mxu0 %v6888_v5  ;;  %5352 = vmatprep.subr.bf16.mxu1 %v6891_v6  ;;  %v6981_v5 = vld [vmem:[#allocation5 + $0x5ec] ss:$16 sps:$4 sm:$0xff]   ;;  %v6976_v6 = vld [vmem:[#allocation5 + $0x5e0] ss:$16 sps:$4 sm:$0xff]  }
  0xb7   :  { %4852 = vmatmul.mubr.bf16.vlgmr.msra.gmra.mrb[0].mxu0 %v5798_v7  ;;  %5344 = vmatmul.mubr.bf16.vlgmr.msra.gmra.mrb[0].mxu1 %v5798_v7  ;;  %v6979_v7 = vld [vmem:[#allocation5 + $0x5e8] ss:$16 sps:$4 sm:$0xff]  }
  0xb8   :  { %4861 = vmatpush1.bf16.msra.mxu0 %v6886_v8  ;;  %5353 = vmatpush1.bf16.msra.mxu1 %v6889_v9  ;;  %v6986_v8 = vld [vmem:[#allocation5 + $0x604] ss:$16 sps:$4 sm:$0xff]   ;;  %v6989_v9 = vld [vmem:[#allocation5 + $0x60c] ss:$16 sps:$4 sm:$0xff]  }
  0xb9   :  { %4862 = vmatprep.subr.bf16.mxu0 %v6894_v10  ;;  %5354 = vmatprep.subr.bf16.mxu1 %v6897_v12  ;;  %v6984_v10 = vld [vmem:[#allocation5 + $0x600] ss:$16 sps:$4 sm:$0xff]   ;;  %v5800_v12 = vcombine.low %v8028_v11, %v8028_v11  ;;  %v7001_v11 = vld [vmem:[#allocation5 + $0x64c] ss:$16 sps:$4 sm:$0xff]  }
  0xba   :  { %4892 = vmatprep.mubr.bf16.mxu0 %v5801_v13  ;;  %5384 = vmatprep.mubr.bf16.mxu1 %v5801_v13  ;;  %v6987_v13 = vld [vmem:[#allocation5 + $0x608] ss:$16 sps:$4 sm:$0xff]  }
  0xbc   :  { %4863 = vmatpush1.bf16.msra.mxu0 %v6892_v14  ;;  %5355 = vmatpush1.bf16.msra.mxu1 %v6895_v15  ;;  %v8034_v14 = vld [vmem:[#allocation2 + $0x18] sm:$0xff]  ;;  %v6992_v15 = vld [vmem:[#allocation5 + $0x624] ss:$16 sps:$4 sm:$0xff]  }
  0xbd   :  { %4864 = vmatprep.subr.bf16.mxu0 %v6900_v16  ;;  %5356 = vmatprep.subr.bf16.mxu1 %v6903_v17  ;;  %v6995_v16 = vld [vmem:[#allocation5 + $0x62c] ss:$16 sps:$4 sm:$0xff]   ;;  %v5803_v17 = vcombine.high %v8034_v14, %v8034_v14 }
  0xc0   :  { %4865 = vmatpush1.bf16.msra.mxu0 %v6898_v18  ;;  %5357 = vmatpush1.bf16.msra.mxu1 %v6901_v19  ;;  %v6990_v18 = vld [vmem:[#allocation5 + $0x620] ss:$16 sps:$4 sm:$0xff]   ;;  %v6993_v19 = vld [vmem:[#allocation5 + $0x628] ss:$16 sps:$4 sm:$0xff]  }
  0xc1   :  { %4866 = vmatprep.subr.bf16.mxu0 %v6906_v20  ;;  %5358 = vmatprep.subr.bf16.mxu1 %v6909_v21  ;;  %v6998_v20 = vld [vmem:[#allocation5 + $0x644] ss:$16 sps:$4 sm:$0xff]   ;;  %v6996_v21 = vld [vmem:[#allocation5 + $0x640] ss:$16 sps:$4 sm:$0xff]  }
  0xc4   :  { %4867 = vmatpush1.bf16.msra.mxu0 %v6904_v22  ;;  %5359 = vmatpush1.bf16.msra.mxu1 %v6907_v23  ;;  %v6999_v22 = vld [vmem:[#allocation5 + $0x648] ss:$16 sps:$4 sm:$0xff]   ;;  %v7004_v23 = vld [vmem:[#allocation5 + $0x664] ss:$16 sps:$4 sm:$0xff]  }
  0xc5   :  { %4868 = vmatprep.subr.bf16.mxu0 %v6912_v24  ;;  %5360 = vmatprep.subr.bf16.mxu1 %v6915_v25  ;;  %v7007_v24 = vld [vmem:[#allocation5 + $0x66c] ss:$16 sps:$4 sm:$0xff]   ;;  %v7002_v25 = vld [vmem:[#allocation5 + $0x660] ss:$16 sps:$4 sm:$0xff]  }
  0xc8   :  { %4869 = vmatpush1.bf16.msra.mxu0 %v6910_v26  ;;  %5361 = vmatpush1.bf16.msra.mxu1 %v6913_v27  ;;  %v7005_v26 = vld [vmem:[#allocation5 + $0x668] ss:$16 sps:$4 sm:$0xff]   ;;  %v7010_v27 = vld [vmem:[#allocation5 + $0x684] ss:$16 sps:$4 sm:$0xff]  }
  0xc9   :  { %4870 = vmatprep.subr.bf16.mxu0 %v6918_v28  ;;  %5362 = vmatprep.subr.bf16.mxu1 %v6921_v29  ;;  %v7013_v28 = vld [vmem:[#allocation5 + $0x68c] ss:$16 sps:$4 sm:$0xff]   ;;  %v7008_v29 = vld [vmem:[#allocation5 + $0x680] ss:$16 sps:$4 sm:$0xff]  }
  0xcc   :  { %4871 = vmatpush1.bf16.msra.mxu0 %v6916_v30  ;;  %5363 = vmatpush1.bf16.msra.mxu1 %v6919_v31  ;;  %v7011_v30 = vld [vmem:[#allocation5 + $0x688] ss:$16 sps:$4 sm:$0xff]   ;;  %v7016_v31 = vld [vmem:[#allocation5 + $0x6a4] ss:$16 sps:$4 sm:$0xff]  }
  0xcd   :  { %4872 = vmatprep.subr.bf16.mxu0 %v6924_v32  ;;  %5364 = vmatprep.subr.bf16.mxu1 %v6927_v33  ;;  %v7019_v32 = vld [vmem:[#allocation5 + $0x6ac] ss:$16 sps:$4 sm:$0xff]   ;;  %v7014_v33 = vld [vmem:[#allocation5 + $0x6a0] ss:$16 sps:$4 sm:$0xff]  }
  0xd0   :  { %4873 = vmatpush1.bf16.msra.mxu0 %v6922_v34  ;;  %5365 = vmatpush1.bf16.msra.mxu1 %v6925_v35  ;;  %v7017_v34 = vld [vmem:[#allocation5 + $0x6a8] ss:$16 sps:$4 sm:$0xff]   ;;  %v7022_v35 = vld [vmem:[#allocation5 + $0x6c4] ss:$16 sps:$4 sm:$0xff]  }
  0xd1   :  { %4874 = vmatprep.subr.bf16.mxu0 %v6930_v36  ;;  %5366 = vmatprep.subr.bf16.mxu1 %v6933_v37  ;;  %v7025_v36 = vld [vmem:[#allocation5 + $0x6cc] ss:$16 sps:$4 sm:$0xff]   ;;  %v7020_v37 = vld [vmem:[#allocation5 + $0x6c0] ss:$16 sps:$4 sm:$0xff]  }
  0xd4   :  { %4875 = vmatpush1.bf16.msra.mxu0 %v6928_v38  ;;  %5367 = vmatpush1.bf16.msra.mxu1 %v6931_v39  ;;  %v7023_v38 = vld [vmem:[#allocation5 + $0x6c8] ss:$16 sps:$4 sm:$0xff]   ;;  %v7028_v39 = vld [vmem:[#allocation5 + $0x6e4] ss:$16 sps:$4 sm:$0xff]  }
  0xd5   :  { %4876 = vmatprep.subr.bf16.mxu0 %v6936_v40  ;;  %5368 = vmatprep.subr.bf16.mxu1 %v6939_v41  ;;  %v7031_v40 = vld [vmem:[#allocation5 + $0x6ec] ss:$16 sps:$4 sm:$0xff]   ;;  %v7026_v41 = vld [vmem:[#allocation5 + $0x6e0] ss:$16 sps:$4 sm:$0xff]  }
  0xd8   :  { %4877 = vmatpush1.bf16.msra.mxu0 %v6934_v42  ;;  %5369 = vmatpush1.bf16.msra.mxu1 %v6937_v43  ;;  %v7029_v42 = vld [vmem:[#allocation5 + $0x6e8] ss:$16 sps:$4 sm:$0xff]   ;;  %v7034_v43 = vld [vmem:[#allocation5 + $0x704] ss:$16 sps:$4 sm:$0xff]  }
  0xd9   :  { %4878 = vmatprep.subr.bf16.mxu0 %v6942_v44  ;;  %5370 = vmatprep.subr.bf16.mxu1 %v6945_v45  ;;  %v7037_v44 = vld [vmem:[#allocation5 + $0x70c] ss:$16 sps:$4 sm:$0xff]   ;;  %v7032_v45 = vld [vmem:[#allocation5 + $0x700] ss:$16 sps:$4 sm:$0xff]  }
  0xdc   :  { %4879 = vmatpush1.bf16.msra.mxu0 %v6940_v46  ;;  %5371 = vmatpush1.bf16.msra.mxu1 %v6943_v47  ;;  %v7035_v46 = vld [vmem:[#allocation5 + $0x708] ss:$16 sps:$4 sm:$0xff]   ;;  %v7040_v47 = vld [vmem:[#allocation5 + $0x724] ss:$16 sps:$4 sm:$0xff]  }
  0xdd   :  { %4880 = vmatprep.subr.bf16.mxu0 %v6948_v48  ;;  %5372 = vmatprep.subr.bf16.mxu1 %v6951_v49  ;;  %v7043_v48 = vld [vmem:[#allocation5 + $0x72c] ss:$16 sps:$4 sm:$0xff]   ;;  %v7038_v49 = vld [vmem:[#allocation5 + $0x720] ss:$16 sps:$4 sm:$0xff]  }
  0xe0   :  { %4881 = vmatpush1.bf16.msra.mxu0 %v6946_v50  ;;  %5373 = vmatpush1.bf16.msra.mxu1 %v6949_v51  ;;  %v7041_v50 = vld [vmem:[#allocation5 + $0x728] ss:$16 sps:$4 sm:$0xff]   ;;  %v7046_v51 = vld [vmem:[#allocation5 + $0x744] ss:$16 sps:$4 sm:$0xff]  }
  0xe1   :  { %4882 = vmatprep.subr.bf16.mxu0 %v6954_v52  ;;  %5374 = vmatprep.subr.bf16.mxu1 %v6957_v53  ;;  %v7049_v52 = vld [vmem:[#allocation5 + $0x74c] ss:$16 sps:$4 sm:$0xff]   ;;  %v7044_v53 = vld [vmem:[#allocation5 + $0x740] ss:$16 sps:$4 sm:$0xff]  }
  0xe4   :  { %4883 = vmatpush1.bf16.msra.mxu0 %v6952_v54  ;;  %5375 = vmatpush1.bf16.msra.mxu1 %v6955_v55  ;;  %v7047_v54 = vld [vmem:[#allocation5 + $0x748] ss:$16 sps:$4 sm:$0xff]   ;;  %v7052_v55 = vld [vmem:[#allocation5 + $0x764] ss:$16 sps:$4 sm:$0xff]  }
  0xe5   :  { %4884 = vmatprep.subr.bf16.mxu0 %v6960_v56  ;;  %5376 = vmatprep.subr.bf16.mxu1 %v6963_v57  ;;  %v7055_v56 = vld [vmem:[#allocation5 + $0x76c] ss:$16 sps:$4 sm:$0xff]   ;;  %v7050_v57 = vld [vmem:[#allocation5 + $0x760] ss:$16 sps:$4 sm:$0xff]  }
  0xe8   :  { %4885 = vmatpush1.bf16.msra.mxu0 %v6958_v58  ;;  %5377 = vmatpush1.bf16.msra.mxu1 %v6961_v59  ;;  %v7053_v58 = vld [vmem:[#allocation5 + $0x768] ss:$16 sps:$4 sm:$0xff]   ;;  %v7058_v59 = vld [vmem:[#allocation5 + $0x784] ss:$16 sps:$4 sm:$0xff]  }
  0xe9   :  { %4886 = vmatprep.subr.bf16.mxu0 %v6966_v60  ;;  %5378 = vmatprep.subr.bf16.mxu1 %v6969_v61  ;;  %v7061_v60 = vld [vmem:[#allocation5 + $0x78c] ss:$16 sps:$4 sm:$0xff]   ;;  %v7056_v61 = vld [vmem:[#allocation5 + $0x780] ss:$16 sps:$4 sm:$0xff]  }
  0xec   :  { %4887 = vmatpush1.bf16.msra.mxu0 %v6964_v62  ;;  %5379 = vmatpush1.bf16.msra.mxu1 %v6967_v63  ;;  %v7059_v62 = vld [vmem:[#allocation5 + $0x788] ss:$16 sps:$4 sm:$0xff]   ;;  %v7064_v63 = vld [vmem:[#allocation5 + $0x7a4] ss:$16 sps:$4 sm:$0xff]  }
  0xed   :  { %4888 = vmatprep.subr.bf16.mxu0 %v6972_v0  ;;  %5380 = vmatprep.subr.bf16.mxu1 %v6975_v1  ;;  %v7067_v0 = vld [vmem:[#allocation5 + $0x7ac] ss:$16 sps:$4 sm:$0xff]   ;;  %v7062_v1 = vld [vmem:[#allocation5 + $0x7a0] ss:$16 sps:$4 sm:$0xff]  }
  0xf0   :  { %4889 = vmatpush1.bf16.msra.mxu0 %v6970_v2  ;;  %5381 = vmatpush1.bf16.msra.mxu1 %v6973_v3  ;;  %v7065_v2 = vld [vmem:[#allocation5 + $0x7a8] ss:$16 sps:$4 sm:$0xff]   ;;  %v7070_v3 = vld [vmem:[#allocation5 + $0x7c4] ss:$16 sps:$4 sm:$0xff]  }
  0xf1   :  { %4890 = vmatprep.subr.bf16.mxu0 %v6978_v4  ;;  %5382 = vmatprep.subr.bf16.mxu1 %v6981_v5  ;;  %v7073_v4 = vld [vmem:[#allocation5 + $0x7cc] ss:$16 sps:$4 sm:$0xff]   ;;  %v7068_v5 = vld [vmem:[#allocation5 + $0x7c0] ss:$16 sps:$4 sm:$0xff]  }
  0xf4   :  { %4891 = vmatpush1.bf16.msra.mxu0 %v6976_v6  ;;  %5383 = vmatpush1.bf16.msra.mxu1 %v6979_v7  ;;  %v7071_v6 = vld [vmem:[#allocation5 + $0x7c8] ss:$16 sps:$4 sm:$0xff]   ;;  %v7076_v7 = vld [vmem:[#allocation5 + $0x7e4] ss:$16 sps:$4 sm:$0xff]  }
  0xf5   :  { %4901 = vmatprep.subr.bf16.mxu0 %v6986_v8  ;;  %5393 = vmatprep.subr.bf16.mxu1 %v6989_v9  ;;  %v7079_v8 = vld [vmem:[#allocation5 + $0x7ec] ss:$16 sps:$4 sm:$0xff]   ;;  %v7074_v9 = vld [vmem:[#allocation5 + $0x7e0] ss:$16 sps:$4 sm:$0xff]  }
  0xf7   :  { %4893 = vmatmul.mubr.bf16.vlgmr.msra.gmra.mrb[0].mxu0 %v5800_v12  ;;  %5385 = vmatmul.mubr.bf16.vlgmr.msra.gmra.mrb[0].mxu1 %v5800_v12  ;;  %v7084_v12 = vld [vmem:[#allocation5 + $0x804] ss:$16 sps:$4 sm:$0xff]  }
  0xf8   :  { %4902 = vmatpush1.bf16.msra.mxu0 %v6984_v10  ;;  %5394 = vmatpush1.bf16.msra.mxu1 %v6987_v13  ;;  %v7077_v10 = vld [vmem:[#allocation5 + $0x7e8] ss:$16 sps:$4 sm:$0xff]   ;;  %v7087_v13 = vld [vmem:[#allocation5 + $0x80c] ss:$16 sps:$4 sm:$0xff]  }
  0xf9   :  { %4903 = vmatprep.subr.bf16.mxu0 %v6992_v15  ;;  %5395 = vmatprep.subr.bf16.mxu1 %v6995_v16  ;;  %v7082_v15 = vld [vmem:[#allocation5 + $0x800] ss:$16 sps:$4 sm:$0xff]   ;;  %v5802_v16 = vcombine.low %v8034_v14, %v8034_v14  ;;  %v7096_v14 = vld [vmem:[#allocation5 + $0x844] ss:$16 sps:$4 sm:$0xff]  }
  0xfa   :  { %4933 = vmatprep.mubr.bf16.mxu0 %v5803_v17  ;;  %5425 = vmatprep.mubr.bf16.mxu1 %v5803_v17  ;;  %v8040_v17 = vld [vmem:[#allocation2 + $0x20] sm:$0xff] }
  0xfc   :  { %4904 = vmatpush1.bf16.msra.mxu0 %v6990_v18  ;;  %5396 = vmatpush1.bf16.msra.mxu1 %v6993_v19  ;;  %v7085_v18 = vld [vmem:[#allocation5 + $0x808] ss:$16 sps:$4 sm:$0xff]   ;;  %v7090_v19 = vld [vmem:[#allocation5 + $0x824] ss:$16 sps:$4 sm:$0xff]  }
  0xfd   :  { %4905 = vmatprep.subr.bf16.mxu0 %v6998_v20  ;;  %5397 = vmatprep.subr.bf16.mxu1 %v7001_v11  ;;  %v7093_v20 = vld [vmem:[#allocation5 + $0x82c] ss:$16 sps:$4 sm:$0xff]   ;;  %v5805_v11 = vcombine.high %v8040_v17, %v8040_v17 }
 0x100   :  { %4906 = vmatpush1.bf16.msra.mxu0 %v6996_v21  ;;  %5398 = vmatpush1.bf16.msra.mxu1 %v6999_v22  ;;  %v7088_v21 = vld [vmem:[#allocation5 + $0x820] ss:$16 sps:$4 sm:$0xff]   ;;  %v7091_v22 = vld [vmem:[#allocation5 + $0x828] ss:$16 sps:$4 sm:$0xff]  }
 0x101   :  { %4907 = vmatprep.subr.bf16.mxu0 %v7004_v23  ;;  %5399 = vmatprep.subr.bf16.mxu1 %v7007_v24  ;;  %v7099_v23 = vld [vmem:[#allocation5 + $0x84c] ss:$16 sps:$4 sm:$0xff]   ;;  %v7094_v24 = vld [vmem:[#allocation5 + $0x840] ss:$16 sps:$4 sm:$0xff]  }
 0x104   :  { %4908 = vmatpush1.bf16.msra.mxu0 %v7002_v25  ;;  %5400 = vmatpush1.bf16.msra.mxu1 %v7005_v26  ;;  %v7097_v25 = vld [vmem:[#allocation5 + $0x848] ss:$16 sps:$4 sm:$0xff]   ;;  %v7102_v26 = vld [vmem:[#allocation5 + $0x864] ss:$16 sps:$4 sm:$0xff]  }
 0x105   :  { %4909 = vmatprep.subr.bf16.mxu0 %v7010_v27  ;;  %5401 = vmatprep.subr.bf16.mxu1 %v7013_v28  ;;  %v7105_v27 = vld [vmem:[#allocation5 + $0x86c] ss:$16 sps:$4 sm:$0xff]   ;;  %v7100_v28 = vld [vmem:[#allocation5 + $0x860] ss:$16 sps:$4 sm:$0xff]  }
 0x108   :  { %4910 = vmatpush1.bf16.msra.mxu0 %v7008_v29  ;;  %5402 = vmatpush1.bf16.msra.mxu1 %v7011_v30  ;;  %v7103_v29 = vld [vmem:[#allocation5 + $0x868] ss:$16 sps:$4 sm:$0xff]   ;;  %v7108_v30 = vld [vmem:[#allocation5 + $0x884] ss:$16 sps:$4 sm:$0xff]  }
 0x109   :  { %4911 = vmatprep.subr.bf16.mxu0 %v7016_v31  ;;  %5403 = vmatprep.subr.bf16.mxu1 %v7019_v32  ;;  %v7111_v31 = vld [vmem:[#allocation5 + $0x88c] ss:$16 sps:$4 sm:$0xff]   ;;  %v7106_v32 = vld [vmem:[#allocation5 + $0x880] ss:$16 sps:$4 sm:$0xff]  }
 0x10c   :  { %4912 = vmatpush1.bf16.msra.mxu0 %v7014_v33  ;;  %5404 = vmatpush1.bf16.msra.mxu1 %v7017_v34  ;;  %v7109_v33 = vld [vmem:[#allocation5 + $0x888] ss:$16 sps:$4 sm:$0xff]   ;;  %v7114_v34 = vld [vmem:[#allocation5 + $0x8a4] ss:$16 sps:$4 sm:$0xff]  }
 0x10d   :  { %4913 = vmatprep.subr.bf16.mxu0 %v7022_v35  ;;  %5405 = vmatprep.subr.bf16.mxu1 %v7025_v36  ;;  %v7117_v35 = vld [vmem:[#allocation5 + $0x8ac] ss:$16 sps:$4 sm:$0xff]   ;;  %v7112_v36 = vld [vmem:[#allocation5 + $0x8a0] ss:$16 sps:$4 sm:$0xff]  }
 0x110   :  { %4914 = vmatpush1.bf16.msra.mxu0 %v7020_v37  ;;  %5406 = vmatpush1.bf16.msra.mxu1 %v7023_v38  ;;  %v7115_v37 = vld [vmem:[#allocation5 + $0x8a8] ss:$16 sps:$4 sm:$0xff]   ;;  %v7120_v38 = vld [vmem:[#allocation5 + $0x8c4] ss:$16 sps:$4 sm:$0xff]  }
 0x111   :  { %4915 = vmatprep.subr.bf16.mxu0 %v7028_v39  ;;  %5407 = vmatprep.subr.bf16.mxu1 %v7031_v40  ;;  %v7123_v39 = vld [vmem:[#allocation5 + $0x8cc] ss:$16 sps:$4 sm:$0xff]   ;;  %v7118_v40 = vld [vmem:[#allocation5 + $0x8c0] ss:$16 sps:$4 sm:$0xff]  }
 0x114   :  { %4916 = vmatpush1.bf16.msra.mxu0 %v7026_v41  ;;  %5408 = vmatpush1.bf16.msra.mxu1 %v7029_v42  ;;  %v7121_v41 = vld [vmem:[#allocation5 + $0x8c8] ss:$16 sps:$4 sm:$0xff]   ;;  %v7126_v42 = vld [vmem:[#allocation5 + $0x8e4] ss:$16 sps:$4 sm:$0xff]  }
 0x115   :  { %4917 = vmatprep.subr.bf16.mxu0 %v7034_v43  ;;  %5409 = vmatprep.subr.bf16.mxu1 %v7037_v44  ;;  %v7129_v43 = vld [vmem:[#allocation5 + $0x8ec] ss:$16 sps:$4 sm:$0xff]   ;;  %v7124_v44 = vld [vmem:[#allocation5 + $0x8e0] ss:$16 sps:$4 sm:$0xff]  }
 0x118   :  { %4918 = vmatpush1.bf16.msra.mxu0 %v7032_v45  ;;  %5410 = vmatpush1.bf16.msra.mxu1 %v7035_v46  ;;  %v7127_v45 = vld [vmem:[#allocation5 + $0x8e8] ss:$16 sps:$4 sm:$0xff]   ;;  %v7132_v46 = vld [vmem:[#allocation5 + $0x904] ss:$16 sps:$4 sm:$0xff]  }
 0x119   :  { %4919 = vmatprep.subr.bf16.mxu0 %v7040_v47  ;;  %5411 = vmatprep.subr.bf16.mxu1 %v7043_v48  ;;  %v7135_v47 = vld [vmem:[#allocation5 + $0x90c] ss:$16 sps:$4 sm:$0xff]   ;;  %v7130_v48 = vld [vmem:[#allocation5 + $0x900] ss:$16 sps:$4 sm:$0xff]  }
 0x11c   :  { %4920 = vmatpush1.bf16.msra.mxu0 %v7038_v49  ;;  %5412 = vmatpush1.bf16.msra.mxu1 %v7041_v50  ;;  %v7133_v49 = vld [vmem:[#allocation5 + $0x908] ss:$16 sps:$4 sm:$0xff]   ;;  %v7138_v50 = vld [vmem:[#allocation5 + $0x924] ss:$16 sps:$4 sm:$0xff]  }
 0x11d   :  { %4921 = vmatprep.subr.bf16.mxu0 %v7046_v51  ;;  %5413 = vmatprep.subr.bf16.mxu1 %v7049_v52  ;;  %v7141_v51 = vld [vmem:[#allocation5 + $0x92c] ss:$16 sps:$4 sm:$0xff]   ;;  %v7136_v52 = vld [vmem:[#allocation5 + $0x920] ss:$16 sps:$4 sm:$0xff]  }
 0x120   :  { %4922 = vmatpush1.bf16.msra.mxu0 %v7044_v53  ;;  %5414 = vmatpush1.bf16.msra.mxu1 %v7047_v54  ;;  %v7139_v53 = vld [vmem:[#allocation5 + $0x928] ss:$16 sps:$4 sm:$0xff]   ;;  %v7144_v54 = vld [vmem:[#allocation5 + $0x944] ss:$16 sps:$4 sm:$0xff]  }
 0x121   :  { %4923 = vmatprep.subr.bf16.mxu0 %v7052_v55  ;;  %5415 = vmatprep.subr.bf16.mxu1 %v7055_v56  ;;  %v7147_v55 = vld [vmem:[#allocation5 + $0x94c] ss:$16 sps:$4 sm:$0xff]   ;;  %v7142_v56 = vld [vmem:[#allocation5 + $0x940] ss:$16 sps:$4 sm:$0xff]  }
 0x124   :  { %4924 = vmatpush1.bf16.msra.mxu0 %v7050_v57  ;;  %5416 = vmatpush1.bf16.msra.mxu1 %v7053_v58  ;;  %v7145_v57 = vld [vmem:[#allocation5 + $0x948] ss:$16 sps:$4 sm:$0xff]   ;;  %v7150_v58 = vld [vmem:[#allocation5 + $0x964] ss:$16 sps:$4 sm:$0xff]  }
 0x125   :  { %4925 = vmatprep.subr.bf16.mxu0 %v7058_v59  ;;  %5417 = vmatprep.subr.bf16.mxu1 %v7061_v60  ;;  %v7153_v59 = vld [vmem:[#allocation5 + $0x96c] ss:$16 sps:$4 sm:$0xff]   ;;  %v7148_v60 = vld [vmem:[#allocation5 + $0x960] ss:$16 sps:$4 sm:$0xff]  }
 0x128   :  { %4926 = vmatpush1.bf16.msra.mxu0 %v7056_v61  ;;  %5418 = vmatpush1.bf16.msra.mxu1 %v7059_v62  ;;  %v7151_v61 = vld [vmem:[#allocation5 + $0x968] ss:$16 sps:$4 sm:$0xff]   ;;  %v7156_v62 = vld [vmem:[#allocation5 + $0x984] ss:$16 sps:$4 sm:$0xff]  }
 0x129   :  { %4927 = vmatprep.subr.bf16.mxu0 %v7064_v63  ;;  %5419 = vmatprep.subr.bf16.mxu1 %v7067_v0  ;;  %v7159_v63 = vld [vmem:[#allocation5 + $0x98c] ss:$16 sps:$4 sm:$0xff]   ;;  %v7154_v0 = vld [vmem:[#allocation5 + $0x980] ss:$16 sps:$4 sm:$0xff]  }
 0x12c   :  { %4928 = vmatpush1.bf16.msra.mxu0 %v7062_v1  ;;  %5420 = vmatpush1.bf16.msra.mxu1 %v7065_v2  ;;  %v7157_v1 = vld [vmem:[#allocation5 + $0x988] ss:$16 sps:$4 sm:$0xff]   ;;  %v7162_v2 = vld [vmem:[#allocation5 + $0x9a4] ss:$16 sps:$4 sm:$0xff]  }
 0x12d   :  { %4929 = vmatprep.subr.bf16.mxu0 %v7070_v3  ;;  %5421 = vmatprep.subr.bf16.mxu1 %v7073_v4  ;;  %v7165_v3 = vld [vmem:[#allocation5 + $0x9ac] ss:$16 sps:$4 sm:$0xff]   ;;  %v7160_v4 = vld [vmem:[#allocation5 + $0x9a0] ss:$16 sps:$4 sm:$0xff]  }
 0x130   :  { %4930 = vmatpush1.bf16.msra.mxu0 %v7068_v5  ;;  %5422 = vmatpush1.bf16.msra.mxu1 %v7071_v6  ;;  %v7163_v5 = vld [vmem:[#allocation5 + $0x9a8] ss:$16 sps:$4 sm:$0xff]   ;;  %v7168_v6 = vld [vmem:[#allocation5 + $0x9c4] ss:$16 sps:$4 sm:$0xff]  }
 0x131   :  { %4931 = vmatprep.subr.bf16.mxu0 %v7076_v7  ;;  %5423 = vmatprep.subr.bf16.mxu1 %v7079_v8  ;;  %v7171_v7 = vld [vmem:[#allocation5 + $0x9cc] ss:$16 sps:$4 sm:$0xff]   ;;  %v7166_v8 = vld [vmem:[#allocation5 + $0x9c0] ss:$16 sps:$4 sm:$0xff]  }
 0x134   :  { %4932 = vmatpush1.bf16.msra.mxu0 %v7074_v9  ;;  %5424 = vmatpush1.bf16.msra.mxu1 %v7077_v10  ;;  %v7169_v9 = vld [vmem:[#allocation5 + $0x9c8] ss:$16 sps:$4 sm:$0xff]   ;;  %v7174_v10 = vld [vmem:[#allocation5 + $0x9e4] ss:$16 sps:$4 sm:$0xff]  }
 0x135   :  { %4942 = vmatprep.subr.bf16.mxu0 %v7084_v12  ;;  %5434 = vmatprep.subr.bf16.mxu1 %v7087_v13  ;;  %v7177_v12 = vld [vmem:[#allocation5 + $0x9ec] ss:$16 sps:$4 sm:$0xff]   ;;  %v7172_v13 = vld [vmem:[#allocation5 + $0x9e0] ss:$16 sps:$4 sm:$0xff]  }
 0x137   :  { %4934 = vmatmul.mubr.bf16.vlgmr.msra.gmra.mrb[0].mxu0 %v5802_v16  ;;  %5426 = vmatmul.mubr.bf16.vlgmr.msra.gmra.mrb[0].mxu1 %v5802_v16  ;;  %v7182_v16 = vld [vmem:[#allocation5 + $0xa04] ss:$16 sps:$4 sm:$0xff]  }
 0x138   :  { %4943 = vmatpush1.bf16.msra.mxu0 %v7082_v15  ;;  %5435 = vmatpush1.bf16.msra.mxu1 %v7085_v18  ;;  %v7175_v15 = vld [vmem:[#allocation5 + $0x9e8] ss:$16 sps:$4 sm:$0xff]   ;;  %v7185_v18 = vld [vmem:[#allocation5 + $0xa0c] ss:$16 sps:$4 sm:$0xff]  }
 0x139   :  { %4944 = vmatprep.subr.bf16.mxu0 %v7090_v19  ;;  %5436 = vmatprep.subr.bf16.mxu1 %v7093_v20  ;;  %v8044_v19 = vld [vmem:[#allocation2 + $0x28] sm:$0xff]  ;;  %v5804_v20 = vcombine.low %v8040_v17, %v8040_v17  ;;  %v7194_v17 = vld [vmem:[#allocation5 + $0xa44] ss:$16 sps:$4 sm:$0xff]  }
 0x13a   :  { %4974 = vmatprep.mubr.bf16.mxu0 %v5805_v11  ;;  %5466 = vmatprep.mubr.bf16.mxu1 %v5805_v11  ;;  %v7180_v11 = vld [vmem:[#allocation5 + $0xa00] ss:$16 sps:$4 sm:$0xff]  }
 0x13c   :  { %4945 = vmatpush1.bf16.msra.mxu0 %v7088_v21  ;;  %5437 = vmatpush1.bf16.msra.mxu1 %v7091_v22  ;;  %v7183_v21 = vld [vmem:[#allocation5 + $0xa08] ss:$16 sps:$4 sm:$0xff]   ;;  %v7188_v22 = vld [vmem:[#allocation5 + $0xa24] ss:$16 sps:$4 sm:$0xff]  }
 0x13d   :  { %4946 = vmatprep.subr.bf16.mxu0 %v7096_v14  ;;  %5438 = vmatprep.subr.bf16.mxu1 %v7099_v23  ;;  %v7191_v14 = vld [vmem:[#allocation5 + $0xa2c] ss:$16 sps:$4 sm:$0xff]   ;;  %v5807_v23 = vcombine.high %v8044_v19, %v8044_v19 }
 0x140   :  { %4947 = vmatpush1.bf16.msra.mxu0 %v7094_v24  ;;  %5439 = vmatpush1.bf16.msra.mxu1 %v7097_v25  ;;  %v7186_v24 = vld [vmem:[#allocation5 + $0xa20] ss:$16 sps:$4 sm:$0xff]   ;;  %v7189_v25 = vld [vmem:[#allocation5 + $0xa28] ss:$16 sps:$4 sm:$0xff]  }
 0x141   :  { %4948 = vmatprep.subr.bf16.mxu0 %v7102_v26  ;;  %5440 = vmatprep.subr.bf16.mxu1 %v7105_v27  ;;  %v7197_v26 = vld [vmem:[#allocation5 + $0xa4c] ss:$16 sps:$4 sm:$0xff]   ;;  %v7192_v27 = vld [vmem:[#allocation5 + $0xa40] ss:$16 sps:$4 sm:$0xff]  }
 0x144   :  { %4949 = vmatpush1.bf16.msra.mxu0 %v7100_v28  ;;  %5441 = vmatpush1.bf16.msra.mxu1 %v7103_v29  ;;  %v7195_v28 = vld [vmem:[#allocation5 + $0xa48] ss:$16 sps:$4 sm:$0xff]   ;;  %v7200_v29 = vld [vmem:[#allocation5 + $0xa64] ss:$16 sps:$4 sm:$0xff]  }
 0x145   :  { %4950 = vmatprep.subr.bf16.mxu0 %v7108_v30  ;;  %5442 = vmatprep.subr.bf16.mxu1 %v7111_v31  ;;  %v7203_v30 = vld [vmem:[#allocation5 + $0xa6c] ss:$16 sps:$4 sm:$0xff]   ;;  %v7198_v31 = vld [vmem:[#allocation5 + $0xa60] ss:$16 sps:$4 sm:$0xff]  }
 0x148   :  { %4951 = vmatpush1.bf16.msra.mxu0 %v7106_v32  ;;  %5443 = vmatpush1.bf16.msra.mxu1 %v7109_v33  ;;  %v7201_v32 = vld [vmem:[#allocation5 + $0xa68] ss:$16 sps:$4 sm:$0xff]   ;;  %v7206_v33 = vld [vmem:[#allocation5 + $0xa84] ss:$16 sps:$4 sm:$0xff]  }
 0x149   :  { %4952 = vmatprep.subr.bf16.mxu0 %v7114_v34  ;;  %5444 = vmatprep.subr.bf16.mxu1 %v7117_v35  ;;  %v7209_v34 = vld [vmem:[#allocation5 + $0xa8c] ss:$16 sps:$4 sm:$0xff]   ;;  %v7204_v35 = vld [vmem:[#allocation5 + $0xa80] ss:$16 sps:$4 sm:$0xff]  }
 0x14c   :  { %4953 = vmatpush1.bf16.msra.mxu0 %v7112_v36  ;;  %5445 = vmatpush1.bf16.msra.mxu1 %v7115_v37  ;;  %v7207_v36 = vld [vmem:[#allocation5 + $0xa88] ss:$16 sps:$4 sm:$0xff]   ;;  %v7212_v37 = vld [vmem:[#allocation5 + $0xaa4] ss:$16 sps:$4 sm:$0xff]  }
 0x14d   :  { %4954 = vmatprep.subr.bf16.mxu0 %v7120_v38  ;;  %5446 = vmatprep.subr.bf16.mxu1 %v7123_v39  ;;  %v7215_v38 = vld [vmem:[#allocation5 + $0xaac] ss:$16 sps:$4 sm:$0xff]   ;;  %v7210_v39 = vld [vmem:[#allocation5 + $0xaa0] ss:$16 sps:$4 sm:$0xff]  }
 0x150   :  { %4955 = vmatpush1.bf16.msra.mxu0 %v7118_v40  ;;  %5447 = vmatpush1.bf16.msra.mxu1 %v7121_v41  ;;  %v7213_v40 = vld [vmem:[#allocation5 + $0xaa8] ss:$16 sps:$4 sm:$0xff]   ;;  %v7218_v41 = vld [vmem:[#allocation5 + $0xac4] ss:$16 sps:$4 sm:$0xff]  }
 0x151   :  { %4956 = vmatprep.subr.bf16.mxu0 %v7126_v42  ;;  %5448 = vmatprep.subr.bf16.mxu1 %v7129_v43  ;;  %v7221_v42 = vld [vmem:[#allocation5 + $0xacc] ss:$16 sps:$4 sm:$0xff]   ;;  %v7216_v43 = vld [vmem:[#allocation5 + $0xac0] ss:$16 sps:$4 sm:$0xff]  }
 0x154   :  { %4957 = vmatpush1.bf16.msra.mxu0 %v7124_v44  ;;  %5449 = vmatpush1.bf16.msra.mxu1 %v7127_v45  ;;  %v7219_v44 = vld [vmem:[#allocation5 + $0xac8] ss:$16 sps:$4 sm:$0xff]   ;;  %v7224_v45 = vld [vmem:[#allocation5 + $0xae4] ss:$16 sps:$4 sm:$0xff]  }
 0x155   :  { %4958 = vmatprep.subr.bf16.mxu0 %v7132_v46  ;;  %5450 = vmatprep.subr.bf16.mxu1 %v7135_v47  ;;  %v7227_v46 = vld [vmem:[#allocation5 + $0xaec] ss:$16 sps:$4 sm:$0xff]   ;;  %v7222_v47 = vld [vmem:[#allocation5 + $0xae0] ss:$16 sps:$4 sm:$0xff]  }
 0x158   :  { %4959 = vmatpush1.bf16.msra.mxu0 %v7130_v48  ;;  %5451 = vmatpush1.bf16.msra.mxu1 %v7133_v49  ;;  %v7225_v48 = vld [vmem:[#allocation5 + $0xae8] ss:$16 sps:$4 sm:$0xff]   ;;  %v7230_v49 = vld [vmem:[#allocation5 + $0xb04] ss:$16 sps:$4 sm:$0xff]  }
 0x159   :  { %4960 = vmatprep.subr.bf16.mxu0 %v7138_v50  ;;  %5452 = vmatprep.subr.bf16.mxu1 %v7141_v51  ;;  %v7233_v50 = vld [vmem:[#allocation5 + $0xb0c] ss:$16 sps:$4 sm:$0xff]   ;;  %v7228_v51 = vld [vmem:[#allocation5 + $0xb00] ss:$16 sps:$4 sm:$0xff]  }
 0x15c   :  { %4961 = vmatpush1.bf16.msra.mxu0 %v7136_v52  ;;  %5453 = vmatpush1.bf16.msra.mxu1 %v7139_v53  ;;  %v7231_v52 = vld [vmem:[#allocation5 + $0xb08] ss:$16 sps:$4 sm:$0xff]   ;;  %v7236_v53 = vld [vmem:[#allocation5 + $0xb24] ss:$16 sps:$4 sm:$0xff]  }
 0x15d   :  { %4962 = vmatprep.subr.bf16.mxu0 %v7144_v54  ;;  %5454 = vmatprep.subr.bf16.mxu1 %v7147_v55  ;;  %v7239_v54 = vld [vmem:[#allocation5 + $0xb2c] ss:$16 sps:$4 sm:$0xff]   ;;  %v7234_v55 = vld [vmem:[#allocation5 + $0xb20] ss:$16 sps:$4 sm:$0xff]  }
 0x160   :  { %4963 = vmatpush1.bf16.msra.mxu0 %v7142_v56  ;;  %5455 = vmatpush1.bf16.msra.mxu1 %v7145_v57  ;;  %v7237_v56 = vld [vmem:[#allocation5 + $0xb28] ss:$16 sps:$4 sm:$0xff]   ;;  %v7242_v57 = vld [vmem:[#allocation5 + $0xb44] ss:$16 sps:$4 sm:$0xff]  }
 0x161   :  { %4964 = vmatprep.subr.bf16.mxu0 %v7150_v58  ;;  %5456 = vmatprep.subr.bf16.mxu1 %v7153_v59  ;;  %v7245_v58 = vld [vmem:[#allocation5 + $0xb4c] ss:$16 sps:$4 sm:$0xff]   ;;  %v7240_v59 = vld [vmem:[#allocation5 + $0xb40] ss:$16 sps:$4 sm:$0xff]  }
 0x164   :  { %4965 = vmatpush1.bf16.msra.mxu0 %v7148_v60  ;;  %5457 = vmatpush1.bf16.msra.mxu1 %v7151_v61  ;;  %v7243_v60 = vld [vmem:[#allocation5 + $0xb48] ss:$16 sps:$4 sm:$0xff]   ;;  %v7248_v61 = vld [vmem:[#allocation5 + $0xb64] ss:$16 sps:$4 sm:$0xff]  }
 0x165   :  { %4966 = vmatprep.subr.bf16.mxu0 %v7156_v62  ;;  %5458 = vmatprep.subr.bf16.mxu1 %v7159_v63  ;;  %v7251_v62 = vld [vmem:[#allocation5 + $0xb6c] ss:$16 sps:$4 sm:$0xff]   ;;  %v7246_v63 = vld [vmem:[#allocation5 + $0xb60] ss:$16 sps:$4 sm:$0xff]  }
 0x168   :  { %4967 = vmatpush1.bf16.msra.mxu0 %v7154_v0  ;;  %5459 = vmatpush1.bf16.msra.mxu1 %v7157_v1  ;;  %v7249_v0 = vld [vmem:[#allocation5 + $0xb68] ss:$16 sps:$4 sm:$0xff]   ;;  %v7254_v1 = vld [vmem:[#allocation5 + $0xb84] ss:$16 sps:$4 sm:$0xff]  }
 0x169   :  { %4968 = vmatprep.subr.bf16.mxu0 %v7162_v2  ;;  %5460 = vmatprep.subr.bf16.mxu1 %v7165_v3  ;;  %v7257_v2 = vld [vmem:[#allocation5 + $0xb8c] ss:$16 sps:$4 sm:$0xff]   ;;  %v7252_v3 = vld [vmem:[#allocation5 + $0xb80] ss:$16 sps:$4 sm:$0xff]  }
 0x16c   :  { %4969 = vmatpush1.bf16.msra.mxu0 %v7160_v4  ;;  %5461 = vmatpush1.bf16.msra.mxu1 %v7163_v5  ;;  %v7255_v4 = vld [vmem:[#allocation5 + $0xb88] ss:$16 sps:$4 sm:$0xff]   ;;  %v7260_v5 = vld [vmem:[#allocation5 + $0xba4] ss:$16 sps:$4 sm:$0xff]  }
 0x16d   :  { %4970 = vmatprep.subr.bf16.mxu0 %v7168_v6  ;;  %5462 = vmatprep.subr.bf16.mxu1 %v7171_v7  ;;  %v7263_v6 = vld [vmem:[#allocation5 + $0xbac] ss:$16 sps:$4 sm:$0xff]   ;;  %v7258_v7 = vld [vmem:[#allocation5 + $0xba0] ss:$16 sps:$4 sm:$0xff]  }
 0x170   :  { %4971 = vmatpush1.bf16.msra.mxu0 %v7166_v8  ;;  %5463 = vmatpush1.bf16.msra.mxu1 %v7169_v9  ;;  %v7261_v8 = vld [vmem:[#allocation5 + $0xba8] ss:$16 sps:$4 sm:$0xff]   ;;  %v7266_v9 = vld [vmem:[#allocation5 + $0xbc4] ss:$16 sps:$4 sm:$0xff]  }
 0x171   :  { %4972 = vmatprep.subr.bf16.mxu0 %v7174_v10  ;;  %5464 = vmatprep.subr.bf16.mxu1 %v7177_v12  ;;  %v7269_v10 = vld [vmem:[#allocation5 + $0xbcc] ss:$16 sps:$4 sm:$0xff]   ;;  %v7264_v12 = vld [vmem:[#allocation5 + $0xbc0] ss:$16 sps:$4 sm:$0xff]  }
 0x174   :  { %4973 = vmatpush1.bf16.msra.mxu0 %v7172_v13  ;;  %5465 = vmatpush1.bf16.msra.mxu1 %v7175_v15  ;;  %v7267_v13 = vld [vmem:[#allocation5 + $0xbc8] ss:$16 sps:$4 sm:$0xff]   ;;  %v7272_v15 = vld [vmem:[#allocation5 + $0xbe4] ss:$16 sps:$4 sm:$0xff]  }
 0x175   :  { %4983 = vmatprep.subr.bf16.mxu0 %v7182_v16  ;;  %5475 = vmatprep.subr.bf16.mxu1 %v7185_v18  ;;  %v7275_v16 = vld [vmem:[#allocation5 + $0xbec] ss:$16 sps:$4 sm:$0xff]   ;;  %v7270_v18 = vld [vmem:[#allocation5 + $0xbe0] ss:$16 sps:$4 sm:$0xff]  }
 0x177   :  { %4975 = vmatmul.mubr.bf16.vlgmr.msra.gmra.mrb[0].mxu0 %v5804_v20  ;;  %5467 = vmatmul.mubr.bf16.vlgmr.msra.gmra.mrb[0].mxu1 %v5804_v20  ;;  %v7273_v20 = vld [vmem:[#allocation5 + $0xbe8] ss:$16 sps:$4 sm:$0xff]  }
 0x178   :  { %4984 = vmatpush1.bf16.msra.mxu0 %v7180_v11  ;;  %5476 = vmatpush1.bf16.msra.mxu1 %v7183_v21  ;;  %v7280_v11 = vld [vmem:[#allocation5 + $0xc04] ss:$16 sps:$4 sm:$0xff]   ;;  %v7283_v21 = vld [vmem:[#allocation5 + $0xc0c] ss:$16 sps:$4 sm:$0xff]  }
 0x179   :  { %4985 = vmatprep.subr.bf16.mxu0 %v7188_v22  ;;  %5477 = vmatprep.subr.bf16.mxu1 %v7191_v14  ;;  %v8050_v22 = vld [vmem:[#allocation2 + $0x30] sm:$0xff]  ;;  %v5806_v14 = vcombine.low %v8044_v19, %v8044_v19 }
 0x17a   :  { %5015 = vmatprep.mubr.bf16.mxu0 %v5807_v23  ;;  %5507 = vmatprep.mubr.bf16.mxu1 %v5807_v23  ;;  %v7278_v23 = vld [vmem:[#allocation5 + $0xc00] ss:$16 sps:$4 sm:$0xff]   ;;  %v7292_v19 = vld [vmem:[#allocation5 + $0xc44] ss:$16 sps:$4 sm:$0xff]  }
 0x17c   :  { %4986 = vmatpush1.bf16.msra.mxu0 %v7186_v24  ;;  %5478 = vmatpush1.bf16.msra.mxu1 %v7189_v25  ;;  %v7281_v24 = vld [vmem:[#allocation5 + $0xc08] ss:$16 sps:$4 sm:$0xff]   ;;  %v7286_v25 = vld [vmem:[#allocation5 + $0xc24] ss:$16 sps:$4 sm:$0xff]  }
 0x17d   :  { %4987 = vmatprep.subr.bf16.mxu0 %v7194_v17  ;;  %5479 = vmatprep.subr.bf16.mxu1 %v7197_v26  ;;  %v7289_v17 = vld [vmem:[#allocation5 + $0xc2c] ss:$16 sps:$4 sm:$0xff]   ;;  %v5809_v26 = vcombine.high %v8050_v22, %v8050_v22 }
 0x180   :  { %4988 = vmatpush1.bf16.msra.mxu0 %v7192_v27  ;;  %5480 = vmatpush1.bf16.msra.mxu1 %v7195_v28  ;;  %v7284_v27 = vld [vmem:[#allocation5 + $0xc20] ss:$16 sps:$4 sm:$0xff]   ;;  %v7287_v28 = vld [vmem:[#allocation5 + $0xc28] ss:$16 sps:$4 sm:$0xff]  }
 0x181   :  { %4989 = vmatprep.subr.bf16.mxu0 %v7200_v29  ;;  %5481 = vmatprep.subr.bf16.mxu1 %v7203_v30  ;;  %v7295_v29 = vld [vmem:[#allocation5 + $0xc4c] ss:$16 sps:$4 sm:$0xff]   ;;  %v7290_v30 = vld [vmem:[#allocation5 + $0xc40] ss:$16 sps:$4 sm:$0xff]  }
 0x184   :  { %4990 = vmatpush1.bf16.msra.mxu0 %v7198_v31  ;;  %5482 = vmatpush1.bf16.msra.mxu1 %v7201_v32  ;;  %v7293_v31 = vld [vmem:[#allocation5 + $0xc48] ss:$16 sps:$4 sm:$0xff]   ;;  %v7298_v32 = vld [vmem:[#allocation5 + $0xc64] ss:$16 sps:$4 sm:$0xff]  }
 0x185   :  { %4991 = vmatprep.subr.bf16.mxu0 %v7206_v33  ;;  %5483 = vmatprep.subr.bf16.mxu1 %v7209_v34  ;;  %v7301_v33 = vld [vmem:[#allocation5 + $0xc6c] ss:$16 sps:$4 sm:$0xff]   ;;  %v7296_v34 = vld [vmem:[#allocation5 + $0xc60] ss:$16 sps:$4 sm:$0xff]  }
 0x188   :  { %4992 = vmatpush1.bf16.msra.mxu0 %v7204_v35  ;;  %5484 = vmatpush1.bf16.msra.mxu1 %v7207_v36  ;;  %v7299_v35 = vld [vmem:[#allocation5 + $0xc68] ss:$16 sps:$4 sm:$0xff]   ;;  %v7304_v36 = vld [vmem:[#allocation5 + $0xc84] ss:$16 sps:$4 sm:$0xff]  }
 0x189   :  { %4993 = vmatprep.subr.bf16.mxu0 %v7212_v37  ;;  %5485 = vmatprep.subr.bf16.mxu1 %v7215_v38  ;;  %v7307_v37 = vld [vmem:[#allocation5 + $0xc8c] ss:$16 sps:$4 sm:$0xff]   ;;  %v7302_v38 = vld [vmem:[#allocation5 + $0xc80] ss:$16 sps:$4 sm:$0xff]  }
 0x18c   :  { %4994 = vmatpush1.bf16.msra.mxu0 %v7210_v39  ;;  %5486 = vmatpush1.bf16.msra.mxu1 %v7213_v40  ;;  %v7305_v39 = vld [vmem:[#allocation5 + $0xc88] ss:$16 sps:$4 sm:$0xff]   ;;  %v7310_v40 = vld [vmem:[#allocation5 + $0xca4] ss:$16 sps:$4 sm:$0xff]  }
 0x18d   :  { %4995 = vmatprep.subr.bf16.mxu0 %v7218_v41  ;;  %5487 = vmatprep.subr.bf16.mxu1 %v7221_v42  ;;  %v7313_v41 = vld [vmem:[#allocation5 + $0xcac] ss:$16 sps:$4 sm:$0xff]   ;;  %v7308_v42 = vld [vmem:[#allocation5 + $0xca0] ss:$16 sps:$4 sm:$0xff]  }
 0x190   :  { %4996 = vmatpush1.bf16.msra.mxu0 %v7216_v43  ;;  %5488 = vmatpush1.bf16.msra.mxu1 %v7219_v44  ;;  %v7311_v43 = vld [vmem:[#allocation5 + $0xca8] ss:$16 sps:$4 sm:$0xff]   ;;  %v7316_v44 = vld [vmem:[#allocation5 + $0xcc4] ss:$16 sps:$4 sm:$0xff]  }
 0x191   :  { %4997 = vmatprep.subr.bf16.mxu0 %v7224_v45  ;;  %5489 = vmatprep.subr.bf16.mxu1 %v7227_v46  ;;  %v7319_v45 = vld [vmem:[#allocation5 + $0xccc] ss:$16 sps:$4 sm:$0xff]   ;;  %v7314_v46 = vld [vmem:[#allocation5 + $0xcc0] ss:$16 sps:$4 sm:$0xff]  }
 0x194   :  { %4998 = vmatpush1.bf16.msra.mxu0 %v7222_v47  ;;  %5490 = vmatpush1.bf16.msra.mxu1 %v7225_v48  ;;  %v7317_v47 = vld [vmem:[#allocation5 + $0xcc8] ss:$16 sps:$4 sm:$0xff]   ;;  %v7322_v48 = vld [vmem:[#allocation5 + $0xce4] ss:$16 sps:$4 sm:$0xff]  }
 0x195   :  { %4999 = vmatprep.subr.bf16.mxu0 %v7230_v49  ;;  %5491 = vmatprep.subr.bf16.mxu1 %v7233_v50  ;;  %v7325_v49 = vld [vmem:[#allocation5 + $0xcec] ss:$16 sps:$4 sm:$0xff]   ;;  %v7320_v50 = vld [vmem:[#allocation5 + $0xce0] ss:$16 sps:$4 sm:$0xff]  }
 0x198   :  { %5000 = vmatpush1.bf16.msra.mxu0 %v7228_v51  ;;  %5492 = vmatpush1.bf16.msra.mxu1 %v7231_v52  ;;  %v7323_v51 = vld [vmem:[#allocation5 + $0xce8] ss:$16 sps:$4 sm:$0xff]   ;;  %v7328_v52 = vld [vmem:[#allocation5 + $0xd04] ss:$16 sps:$4 sm:$0xff]  }
 0x199   :  { %5001 = vmatprep.subr.bf16.mxu0 %v7236_v53  ;;  %5493 = vmatprep.subr.bf16.mxu1 %v7239_v54  ;;  %v7331_v53 = vld [vmem:[#allocation5 + $0xd0c] ss:$16 sps:$4 sm:$0xff]   ;;  %v7326_v54 = vld [vmem:[#allocation5 + $0xd00] ss:$16 sps:$4 sm:$0xff]  }
 0x19c   :  { %5002 = vmatpush1.bf16.msra.mxu0 %v7234_v55  ;;  %5494 = vmatpush1.bf16.msra.mxu1 %v7237_v56  ;;  %v7329_v55 = vld [vmem:[#allocation5 + $0xd08] ss:$16 sps:$4 sm:$0xff]   ;;  %v7334_v56 = vld [vmem:[#allocation5 + $0xd24] ss:$16 sps:$4 sm:$0xff]  }
 0x19d   :  { %5003 = vmatprep.subr.bf16.mxu0 %v7242_v57  ;;  %5495 = vmatprep.subr.bf16.mxu1 %v7245_v58  ;;  %v7337_v57 = vld [vmem:[#allocation5 + $0xd2c] ss:$16 sps:$4 sm:$0xff]   ;;  %v7332_v58 = vld [vmem:[#allocation5 + $0xd20] ss:$16 sps:$4 sm:$0xff]  }
 0x1a0   :  { %5004 = vmatpush1.bf16.msra.mxu0 %v7240_v59  ;;  %5496 = vmatpush1.bf16.msra.mxu1 %v7243_v60  ;;  %v7335_v59 = vld [vmem:[#allocation5 + $0xd28] ss:$16 sps:$4 sm:$0xff]   ;;  %v7340_v60 = vld [vmem:[#allocation5 + $0xd44] ss:$16 sps:$4 sm:$0xff]  }
 0x1a1   :  { %5005 = vmatprep.subr.bf16.mxu0 %v7248_v61  ;;  %5497 = vmatprep.subr.bf16.mxu1 %v7251_v62  ;;  %v7343_v61 = vld [vmem:[#allocation5 + $0xd4c] ss:$16 sps:$4 sm:$0xff]   ;;  %v7338_v62 = vld [vmem:[#allocation5 + $0xd40] ss:$16 sps:$4 sm:$0xff]  }
 0x1a4   :  { %5006 = vmatpush1.bf16.msra.mxu0 %v7246_v63  ;;  %5498 = vmatpush1.bf16.msra.mxu1 %v7249_v0  ;;  %v7341_v63 = vld [vmem:[#allocation5 + $0xd48] ss:$16 sps:$4 sm:$0xff]   ;;  %v7346_v0 = vld [vmem:[#allocation5 + $0xd64] ss:$16 sps:$4 sm:$0xff]  }
 0x1a5   :  { %5007 = vmatprep.subr.bf16.mxu0 %v7254_v1  ;;  %5499 = vmatprep.subr.bf16.mxu1 %v7257_v2  ;;  %v7349_v1 = vld [vmem:[#allocation5 + $0xd6c] ss:$16 sps:$4 sm:$0xff]   ;;  %v7344_v2 = vld [vmem:[#allocation5 + $0xd60] ss:$16 sps:$4 sm:$0xff]  }
 0x1a8   :  { %5008 = vmatpush1.bf16.msra.mxu0 %v7252_v3  ;;  %5500 = vmatpush1.bf16.msra.mxu1 %v7255_v4  ;;  %v7347_v3 = vld [vmem:[#allocation5 + $0xd68] ss:$16 sps:$4 sm:$0xff]   ;;  %v7352_v4 = vld [vmem:[#allocation5 + $0xd84] ss:$16 sps:$4 sm:$0xff]  }
 0x1a9   :  { %5009 = vmatprep.subr.bf16.mxu0 %v7260_v5  ;;  %5501 = vmatprep.subr.bf16.mxu1 %v7263_v6  ;;  %v7355_v5 = vld [vmem:[#allocation5 + $0xd8c] ss:$16 sps:$4 sm:$0xff]   ;;  %v7350_v6 = vld [vmem:[#allocation5 + $0xd80] ss:$16 sps:$4 sm:$0xff]  }
 0x1ac   :  { %5010 = vmatpush1.bf16.msra.mxu0 %v7258_v7  ;;  %5502 = vmatpush1.bf16.msra.mxu1 %v7261_v8  ;;  %v7353_v7 = vld [vmem:[#allocation5 + $0xd88] ss:$16 sps:$4 sm:$0xff]   ;;  %v7358_v8 = vld [vmem:[#allocation5 + $0xda4] ss:$16 sps:$4 sm:$0xff]  }
 0x1ad   :  { %5011 = vmatprep.subr.bf16.mxu0 %v7266_v9  ;;  %5503 = vmatprep.subr.bf16.mxu1 %v7269_v10  ;;  %v7361_v9 = vld [vmem:[#allocation5 + $0xdac] ss:$16 sps:$4 sm:$0xff]   ;;  %v7356_v10 = vld [vmem:[#allocation5 + $0xda0] ss:$16 sps:$4 sm:$0xff]  }
 0x1b0   :  { %5012 = vmatpush1.bf16.msra.mxu0 %v7264_v12  ;;  %5504 = vmatpush1.bf16.msra.mxu1 %v7267_v13  ;;  %v7359_v12 = vld [vmem:[#allocation5 + $0xda8] ss:$16 sps:$4 sm:$0xff]   ;;  %v7364_v13 = vld [vmem:[#allocation5 + $0xdc4] ss:$16 sps:$4 sm:$0xff]  }
 0x1b1   :  { %5013 = vmatprep.subr.bf16.mxu0 %v7272_v15  ;;  %5505 = vmatprep.subr.bf16.mxu1 %v7275_v16  ;;  %v7367_v15 = vld [vmem:[#allocation5 + $0xdcc] ss:$16 sps:$4 sm:$0xff]   ;;  %v7362_v16 = vld [vmem:[#allocation5 + $0xdc0] ss:$16 sps:$4 sm:$0xff]  }
 0x1b4   :  { %5014 = vmatpush1.bf16.msra.mxu0 %v7270_v18  ;;  %5506 = vmatpush1.bf16.msra.mxu1 %v7273_v20  ;;  %v7365_v18 = vld [vmem:[#allocation5 + $0xdc8] ss:$16 sps:$4 sm:$0xff]   ;;  %v7370_v20 = vld [vmem:[#allocation5 + $0xde4] ss:$16 sps:$4 sm:$0xff]  }
 0x1b5   :  { %5024 = vmatprep.subr.bf16.mxu0 %v7280_v11  ;;  %5516 = vmatprep.subr.bf16.mxu1 %v7283_v21  ;;  %v7373_v11 = vld [vmem:[#allocation5 + $0xdec] ss:$16 sps:$4 sm:$0xff]   ;;  %v7368_v21 = vld [vmem:[#allocation5 + $0xde0] ss:$16 sps:$4 sm:$0xff]  }
 0x1b7   :  { %5016 = vmatmul.mubr.bf16.vlgmr.msra.gmra.mrb[0].mxu0 %v5806_v14  ;;  %5508 = vmatmul.mubr.bf16.vlgmr.msra.gmra.mrb[0].mxu1 %v5806_v14  ;;  %v7371_v14 = vld [vmem:[#allocation5 + $0xde8] ss:$16 sps:$4 sm:$0xff]  }
 0x1b8   :  { %5025 = vmatpush1.bf16.msra.mxu0 %v7278_v23  ;;  %5517 = vmatpush1.bf16.msra.mxu1 %v7281_v24  ;;  %v7378_v23 = vld [vmem:[#allocation5 + $0xe04] ss:$16 sps:$4 sm:$0xff]   ;;  %v7381_v24 = vld [vmem:[#allocation5 + $0xe0c] ss:$16 sps:$4 sm:$0xff]  }
 0x1b9   :  { %5026 = vmatprep.subr.bf16.mxu0 %v7286_v25  ;;  %5518 = vmatprep.subr.bf16.mxu1 %v7289_v17  ;;  %v8056_v25 = vld [vmem:[#allocation2 + $0x38] sm:$0xff]  ;;  %v5808_v17 = vcombine.low %v8050_v22, %v8050_v22  ;;  %v7390_v22 = vld [vmem:[#allocation5 + $0xe44] ss:$16 sps:$4 sm:$0xff]  }
 0x1ba   :  { %5056 = vmatprep.mubr.bf16.mxu0 %v5809_v26  ;;  %5548 = vmatprep.mubr.bf16.mxu1 %v5809_v26  ;;  %v7376_v26 = vld [vmem:[#allocation5 + $0xe00] ss:$16 sps:$4 sm:$0xff]  }
 0x1bc   :  { %5027 = vmatpush1.bf16.msra.mxu0 %v7284_v27  ;;  %5519 = vmatpush1.bf16.msra.mxu1 %v7287_v28  ;;  %v7379_v27 = vld [vmem:[#allocation5 + $0xe08] ss:$16 sps:$4 sm:$0xff]   ;;  %v7384_v28 = vld [vmem:[#allocation5 + $0xe24] ss:$16 sps:$4 sm:$0xff]  }
 0x1bd   :  { %5028 = vmatprep.subr.bf16.mxu0 %v7292_v19  ;;  %5520 = vmatprep.subr.bf16.mxu1 %v7295_v29  ;;  %v7387_v19 = vld [vmem:[#allocation5 + $0xe2c] ss:$16 sps:$4 sm:$0xff]   ;;  %v5811_v29 = vcombine.high %v8056_v25, %v8056_v25 }
 0x1c0   :  { %5029 = vmatpush1.bf16.msra.mxu0 %v7290_v30  ;;  %5521 = vmatpush1.bf16.msra.mxu1 %v7293_v31  ;;  %v7382_v30 = vld [vmem:[#allocation5 + $0xe20] ss:$16 sps:$4 sm:$0xff]   ;;  %v7385_v31 = vld [vmem:[#allocation5 + $0xe28] ss:$16 sps:$4 sm:$0xff]  }
 0x1c1   :  { %5030 = vmatprep.subr.bf16.mxu0 %v7298_v32  ;;  %5522 = vmatprep.subr.bf16.mxu1 %v7301_v33  ;;  %v7393_v32 = vld [vmem:[#allocation5 + $0xe4c] ss:$16 sps:$4 sm:$0xff]   ;;  %v7388_v33 = vld [vmem:[#allocation5 + $0xe40] ss:$16 sps:$4 sm:$0xff]  }
 0x1c4   :  { %5031 = vmatpush1.bf16.msra.mxu0 %v7296_v34  ;;  %5523 = vmatpush1.bf16.msra.mxu1 %v7299_v35  ;;  %v7391_v34 = vld [vmem:[#allocation5 + $0xe48] ss:$16 sps:$4 sm:$0xff]   ;;  %v7396_v35 = vld [vmem:[#allocation5 + $0xe64] ss:$16 sps:$4 sm:$0xff]  }
 0x1c5   :  { %5032 = vmatprep.subr.bf16.mxu0 %v7304_v36  ;;  %5524 = vmatprep.subr.bf16.mxu1 %v7307_v37  ;;  %v7399_v36 = vld [vmem:[#allocation5 + $0xe6c] ss:$16 sps:$4 sm:$0xff]   ;;  %v7394_v37 = vld [vmem:[#allocation5 + $0xe60] ss:$16 sps:$4 sm:$0xff]  }
 0x1c8   :  { %5033 = vmatpush1.bf16.msra.mxu0 %v7302_v38  ;;  %5525 = vmatpush1.bf16.msra.mxu1 %v7305_v39  ;;  %v7397_v38 = vld [vmem:[#allocation5 + $0xe68] ss:$16 sps:$4 sm:$0xff]   ;;  %v7402_v39 = vld [vmem:[#allocation5 + $0xe84] ss:$16 sps:$4 sm:$0xff]  }
 0x1c9   :  { %5034 = vmatprep.subr.bf16.mxu0 %v7310_v40  ;;  %5526 = vmatprep.subr.bf16.mxu1 %v7313_v41  ;;  %v7405_v40 = vld [vmem:[#allocation5 + $0xe8c] ss:$16 sps:$4 sm:$0xff]   ;;  %v7400_v41 = vld [vmem:[#allocation5 + $0xe80] ss:$16 sps:$4 sm:$0xff]  }
 0x1cc   :  { %5035 = vmatpush1.bf16.msra.mxu0 %v7308_v42  ;;  %5527 = vmatpush1.bf16.msra.mxu1 %v7311_v43  ;;  %v7403_v42 = vld [vmem:[#allocation5 + $0xe88] ss:$16 sps:$4 sm:$0xff]   ;;  %v7408_v43 = vld [vmem:[#allocation5 + $0xea4] ss:$16 sps:$4 sm:$0xff]  }
 0x1cd   :  { %5036 = vmatprep.subr.bf16.mxu0 %v7316_v44  ;;  %5528 = vmatprep.subr.bf16.mxu1 %v7319_v45  ;;  %v7411_v44 = vld [vmem:[#allocation5 + $0xeac] ss:$16 sps:$4 sm:$0xff]   ;;  %v7406_v45 = vld [vmem:[#allocation5 + $0xea0] ss:$16 sps:$4 sm:$0xff]  }
 0x1d0   :  { %5037 = vmatpush1.bf16.msra.mxu0 %v7314_v46  ;;  %5529 = vmatpush1.bf16.msra.mxu1 %v7317_v47  ;;  %v7409_v46 = vld [vmem:[#allocation5 + $0xea8] ss:$16 sps:$4 sm:$0xff]   ;;  %v7414_v47 = vld [vmem:[#allocation5 + $0xec4] ss:$16 sps:$4 sm:$0xff]  }
 0x1d1   :  { %5038 = vmatprep.subr.bf16.mxu0 %v7322_v48  ;;  %5530 = vmatprep.subr.bf16.mxu1 %v7325_v49  ;;  %v7417_v48 = vld [vmem:[#allocation5 + $0xecc] ss:$16 sps:$4 sm:$0xff]   ;;  %v7412_v49 = vld [vmem:[#allocation5 + $0xec0] ss:$16 sps:$4 sm:$0xff]  }
 0x1d4   :  { %5039 = vmatpush1.bf16.msra.mxu0 %v7320_v50  ;;  %5531 = vmatpush1.bf16.msra.mxu1 %v7323_v51  ;;  %v7415_v50 = vld [vmem:[#allocation5 + $0xec8] ss:$16 sps:$4 sm:$0xff]   ;;  %v7420_v51 = vld [vmem:[#allocation5 + $0xee4] ss:$16 sps:$4 sm:$0xff]  }
 0x1d5   :  { %5040 = vmatprep.subr.bf16.mxu0 %v7328_v52  ;;  %5532 = vmatprep.subr.bf16.mxu1 %v7331_v53  ;;  %v7423_v52 = vld [vmem:[#allocation5 + $0xeec] ss:$16 sps:$4 sm:$0xff]   ;;  %v7418_v53 = vld [vmem:[#allocation5 + $0xee0] ss:$16 sps:$4 sm:$0xff]  }
 0x1d8   :  { %5041 = vmatpush1.bf16.msra.mxu0 %v7326_v54  ;;  %5533 = vmatpush1.bf16.msra.mxu1 %v7329_v55  ;;  %v7421_v54 = vld [vmem:[#allocation5 + $0xee8] ss:$16 sps:$4 sm:$0xff]   ;;  %v7426_v55 = vld [vmem:[#allocation5 + $0xf04] ss:$16 sps:$4 sm:$0xff]  }
 0x1d9   :  { %5042 = vmatprep.subr.bf16.mxu0 %v7334_v56  ;;  %5534 = vmatprep.subr.bf16.mxu1 %v7337_v57  ;;  %v7429_v56 = vld [vmem:[#allocation5 + $0xf0c] ss:$16 sps:$4 sm:$0xff]   ;;  %v7424_v57 = vld [vmem:[#allocation5 + $0xf00] ss:$16 sps:$4 sm:$0xff]  }
 0x1dc   :  { %5043 = vmatpush1.bf16.msra.mxu0 %v7332_v58  ;;  %5535 = vmatpush1.bf16.msra.mxu1 %v7335_v59  ;;  %v7427_v58 = vld [vmem:[#allocation5 + $0xf08] ss:$16 sps:$4 sm:$0xff]   ;;  %v7432_v59 = vld [vmem:[#allocation5 + $0xf24] ss:$16 sps:$4 sm:$0xff]  }
 0x1dd   :  { %5044 = vmatprep.subr.bf16.mxu0 %v7340_v60  ;;  %5536 = vmatprep.subr.bf16.mxu1 %v7343_v61  ;;  %v7435_v60 = vld [vmem:[#allocation5 + $0xf2c] ss:$16 sps:$4 sm:$0xff]   ;;  %v7430_v61 = vld [vmem:[#allocation5 + $0xf20] ss:$16 sps:$4 sm:$0xff]  }
 0x1e0   :  { %5045 = vmatpush1.bf16.msra.mxu0 %v7338_v62  ;;  %5537 = vmatpush1.bf16.msra.mxu1 %v7341_v63  ;;  %v7433_v62 = vld [vmem:[#allocation5 + $0xf28] ss:$16 sps:$4 sm:$0xff]   ;;  %v7438_v63 = vld [vmem:[#allocation5 + $0xf44] ss:$16 sps:$4 sm:$0xff]  }
 0x1e1   :  { %5046 = vmatprep.subr.bf16.mxu0 %v7346_v0  ;;  %5538 = vmatprep.subr.bf16.mxu1 %v7349_v1  ;;  %v7441_v0 = vld [vmem:[#allocation5 + $0xf4c] ss:$16 sps:$4 sm:$0xff]   ;;  %v7436_v1 = vld [vmem:[#allocation5 + $0xf40] ss:$16 sps:$4 sm:$0xff]  }
 0x1e4   :  { %5047 = vmatpush1.bf16.msra.mxu0 %v7344_v2  ;;  %5539 = vmatpush1.bf16.msra.mxu1 %v7347_v3  ;;  %v7439_v2 = vld [vmem:[#allocation5 + $0xf48] ss:$16 sps:$4 sm:$0xff]   ;;  %v7444_v3 = vld [vmem:[#allocation5 + $0xf64] ss:$16 sps:$4 sm:$0xff]  }
 0x1e5   :  { %5048 = vmatprep.subr.bf16.mxu0 %v7352_v4  ;;  %5540 = vmatprep.subr.bf16.mxu1 %v7355_v5  ;;  %v7447_v4 = vld [vmem:[#allocation5 + $0xf6c] ss:$16 sps:$4 sm:$0xff]   ;;  %v7442_v5 = vld [vmem:[#allocation5 + $0xf60] ss:$16 sps:$4 sm:$0xff]  }
 0x1e8   :  { %5049 = vmatpush1.bf16.msra.mxu0 %v7350_v6  ;;  %5541 = vmatpush1.bf16.msra.mxu1 %v7353_v7  ;;  %v7445_v6 = vld [vmem:[#allocation5 + $0xf68] ss:$16 sps:$4 sm:$0xff]   ;;  %v7450_v7 = vld [vmem:[#allocation5 + $0xf84] ss:$16 sps:$4 sm:$0xff]  }
 0x1e9   :  { %5050 = vmatprep.subr.bf16.mxu0 %v7358_v8  ;;  %5542 = vmatprep.subr.bf16.mxu1 %v7361_v9  ;;  %v7453_v8 = vld [vmem:[#allocation5 + $0xf8c] ss:$16 sps:$4 sm:$0xff]   ;;  %v7448_v9 = vld [vmem:[#allocation5 + $0xf80] ss:$16 sps:$4 sm:$0xff]  }
 0x1ec   :  { %5051 = vmatpush1.bf16.msra.mxu0 %v7356_v10  ;;  %5543 = vmatpush1.bf16.msra.mxu1 %v7359_v12  ;;  %v7451_v10 = vld [vmem:[#allocation5 + $0xf88] ss:$16 sps:$4 sm:$0xff]   ;;  %v7456_v12 = vld [vmem:[#allocation5 + $0xfa4] ss:$16 sps:$4 sm:$0xff]  }
 0x1ed   :  { %5052 = vmatprep.subr.bf16.mxu0 %v7364_v13  ;;  %5544 = vmatprep.subr.bf16.mxu1 %v7367_v15  ;;  %v7459_v13 = vld [vmem:[#allocation5 + $0xfac] ss:$16 sps:$4 sm:$0xff]   ;;  %v7454_v15 = vld [vmem:[#allocation5 + $0xfa0] ss:$16 sps:$4 sm:$0xff]  }
 0x1f0   :  { %5053 = vmatpush1.bf16.msra.mxu0 %v7362_v16  ;;  %5545 = vmatpush1.bf16.msra.mxu1 %v7365_v18  ;;  %v7457_v16 = vld [vmem:[#allocation5 + $0xfa8] ss:$16 sps:$4 sm:$0xff]   ;;  %v7462_v18 = vld [vmem:[#allocation5 + $0xfc4] ss:$16 sps:$4 sm:$0xff]  }
 0x1f1   :  { %5054 = vmatprep.subr.bf16.mxu0 %v7370_v20  ;;  %5546 = vmatprep.subr.bf16.mxu1 %v7373_v11  ;;  %v7465_v20 = vld [vmem:[#allocation5 + $0xfcc] ss:$16 sps:$4 sm:$0xff]   ;;  %v7460_v11 = vld [vmem:[#allocation5 + $0xfc0] ss:$16 sps:$4 sm:$0xff]  }
 0x1f4   :  { %5055 = vmatpush1.bf16.msra.mxu0 %v7368_v21  ;;  %5547 = vmatpush1.bf16.msra.mxu1 %v7371_v14  ;;  %v7463_v21 = vld [vmem:[#allocation5 + $0xfc8] ss:$16 sps:$4 sm:$0xff]   ;;  %v7468_v14 = vld [vmem:[#allocation5 + $0xfe4] ss:$16 sps:$4 sm:$0xff]  }
 0x1f5   :  { %5065 = vmatprep.subr.bf16.mxu0 %v7378_v23  ;;  %5557 = vmatprep.subr.bf16.mxu1 %v7381_v24  ;;  %v7471_v23 = vld [vmem:[#allocation5 + $0xfec] ss:$16 sps:$4 sm:$0xff]   ;;  %v7466_v24 = vld [vmem:[#allocation5 + $0xfe0] ss:$16 sps:$4 sm:$0xff]  }
 0x1f7   :  { %5057 = vmatmul.mubr.bf16.vlgmr.msra.gmra.mrb[0].mxu0 %v5808_v17  ;;  %5549 = vmatmul.mubr.bf16.vlgmr.msra.gmra.mrb[0].mxu1 %v5808_v17  ;;  %v7469_v17 = vld [vmem:[#allocation5 + $0xfe8] ss:$16 sps:$4 sm:$0xff]  }
 0x1f8   :  { %5066 = vmatpush1.bf16.msra.mxu0 %v7376_v26  ;;  %5558 = vmatpush1.bf16.msra.mxu1 %v7379_v27  ;;  %v7476_v26 = vld [vmem:[#allocation5 + $0x1004] ss:$16 sps:$4 sm:$0xff]   ;;  %v7479_v27 = vld [vmem:[#allocation5 + $0x100c] ss:$16 sps:$4 sm:$0xff]  }
 0x1f9   :  { %5067 = vmatprep.subr.bf16.mxu0 %v7384_v28  ;;  %5559 = vmatprep.subr.bf16.mxu1 %v7387_v19  ;;  %v5810_v28 = vcombine.low %v8056_v25, %v8056_v25  ;;  %v8064_v19 = vld [vmem:[#allocation2 + $0x40] sm:$0xff] }
 0x1fa   :  { %5097 = vmatprep.mubr.bf16.mxu0 %v5811_v29  ;;  %5589 = vmatprep.mubr.bf16.mxu1 %v5811_v29  ;;  %v7474_v29 = vld [vmem:[#allocation5 + $0x1000] ss:$16 sps:$4 sm:$0xff]   ;;  %v7488_v25 = vld [vmem:[#allocation5 + $0x1044] ss:$16 sps:$4 sm:$0xff]  }
 0x1fc   :  { %5068 = vmatpush1.bf16.msra.mxu0 %v7382_v30  ;;  %5560 = vmatpush1.bf16.msra.mxu1 %v7385_v31  ;;  %v7477_v30 = vld [vmem:[#allocation5 + $0x1008] ss:$16 sps:$4 sm:$0xff]   ;;  %v7482_v31 = vld [vmem:[#allocation5 + $0x1024] ss:$16 sps:$4 sm:$0xff]  }
 0x1fd   :  { %5069 = vmatprep.subr.bf16.mxu0 %v7390_v22  ;;  %5561 = vmatprep.subr.bf16.mxu1 %v7393_v32  ;;  %v7485_v22 = vld [vmem:[#allocation5 + $0x102c] ss:$16 sps:$4 sm:$0xff]   ;;  %v5813_v32 = vcombine.high %v8064_v19, %v8064_v19 }
 0x200   :  { %5070 = vmatpush1.bf16.msra.mxu0 %v7388_v33  ;;  %5562 = vmatpush1.bf16.msra.mxu1 %v7391_v34  ;;  %v7480_v33 = vld [vmem:[#allocation5 + $0x1020] ss:$16 sps:$4 sm:$0xff]   ;;  %v7483_v34 = vld [vmem:[#allocation5 + $0x1028] ss:$16 sps:$4 sm:$0xff]  }
 0x201   :  { %5071 = vmatprep.subr.bf16.mxu0 %v7396_v35  ;;  %5563 = vmatprep.subr.bf16.mxu1 %v7399_v36  ;;  %v7491_v35 = vld [vmem:[#allocation5 + $0x104c] ss:$16 sps:$4 sm:$0xff]   ;;  %v7486_v36 = vld [vmem:[#allocation5 + $0x1040] ss:$16 sps:$4 sm:$0xff]  }
 0x204   :  { %5072 = vmatpush1.bf16.msra.mxu0 %v7394_v37  ;;  %5564 = vmatpush1.bf16.msra.mxu1 %v7397_v38  ;;  %v7489_v37 = vld [vmem:[#allocation5 + $0x1048] ss:$16 sps:$4 sm:$0xff]   ;;  %v7494_v38 = vld [vmem:[#allocation5 + $0x1064] ss:$16 sps:$4 sm:$0xff]  }
 0x205   :  { %5073 = vmatprep.subr.bf16.mxu0 %v7402_v39  ;;  %5565 = vmatprep.subr.bf16.mxu1 %v7405_v40  ;;  %v7497_v39 = vld [vmem:[#allocation5 + $0x106c] ss:$16 sps:$4 sm:$0xff]   ;;  %v7492_v40 = vld [vmem:[#allocation5 + $0x1060] ss:$16 sps:$4 sm:$0xff]  }
 0x208   :  { %5074 = vmatpush1.bf16.msra.mxu0 %v7400_v41  ;;  %5566 = vmatpush1.bf16.msra.mxu1 %v7403_v42  ;;  %v7495_v41 = vld [vmem:[#allocation5 + $0x1068] ss:$16 sps:$4 sm:$0xff]   ;;  %v7500_v42 = vld [vmem:[#allocation5 + $0x1084] ss:$16 sps:$4 sm:$0xff]  }
 0x209   :  { %5075 = vmatprep.subr.bf16.mxu0 %v7408_v43  ;;  %5567 = vmatprep.subr.bf16.mxu1 %v7411_v44  ;;  %v7503_v43 = vld [vmem:[#allocation5 + $0x108c] ss:$16 sps:$4 sm:$0xff]   ;;  %v7498_v44 = vld [vmem:[#allocation5 + $0x1080] ss:$16 sps:$4 sm:$0xff]  }
 0x20c   :  { %5076 = vmatpush1.bf16.msra.mxu0 %v7406_v45  ;;  %5568 = vmatpush1.bf16.msra.mxu1 %v7409_v46  ;;  %v7501_v45 = vld [vmem:[#allocation5 + $0x1088] ss:$16 sps:$4 sm:$0xff]   ;;  %v7506_v46 = vld [vmem:[#allocation5 + $0x10a4] ss:$16 sps:$4 sm:$0xff]  }
 0x20d   :  { %5077 = vmatprep.subr.bf16.mxu0 %v7414_v47  ;;  %5569 = vmatprep.subr.bf16.mxu1 %v7417_v48  ;;  %v7509_v47 = vld [vmem:[#allocation5 + $0x10ac] ss:$16 sps:$4 sm:$0xff]   ;;  %v7504_v48 = vld [vmem:[#allocation5 + $0x10a0] ss:$16 sps:$4 sm:$0xff]  }
 0x210   :  { %5078 = vmatpush1.bf16.msra.mxu0 %v7412_v49  ;;  %5570 = vmatpush1.bf16.msra.mxu1 %v7415_v50  ;;  %v7507_v49 = vld [vmem:[#allocation5 + $0x10a8] ss:$16 sps:$4 sm:$0xff]   ;;  %v7512_v50 = vld [vmem:[#allocation5 + $0x10c4] ss:$16 sps:$4 sm:$0xff]  }
 0x211   :  { %5079 = vmatprep.subr.bf16.mxu0 %v7420_v51  ;;  %5571 = vmatprep.subr.bf16.mxu1 %v7423_v52  ;;  %v7515_v51 = vld [vmem:[#allocation5 + $0x10cc] ss:$16 sps:$4 sm:$0xff]   ;;  %v7510_v52 = vld [vmem:[#allocation5 + $0x10c0] ss:$16 sps:$4 sm:$0xff]  }
 0x214   :  { %5080 = vmatpush1.bf16.msra.mxu0 %v7418_v53  ;;  %5572 = vmatpush1.bf16.msra.mxu1 %v7421_v54  ;;  %v7513_v53 = vld [vmem:[#allocation5 + $0x10c8] ss:$16 sps:$4 sm:$0xff]   ;;  %v7518_v54 = vld [vmem:[#allocation5 + $0x10e4] ss:$16 sps:$4 sm:$0xff]  }
 0x215   :  { %5081 = vmatprep.subr.bf16.mxu0 %v7426_v55  ;;  %5573 = vmatprep.subr.bf16.mxu1 %v7429_v56  ;;  %v7521_v55 = vld [vmem:[#allocation5 + $0x10ec] ss:$16 sps:$4 sm:$0xff]   ;;  %v7516_v56 = vld [vmem:[#allocation5 + $0x10e0] ss:$16 sps:$4 sm:$0xff]  }
 0x218   :  { %5082 = vmatpush1.bf16.msra.mxu0 %v7424_v57  ;;  %5574 = vmatpush1.bf16.msra.mxu1 %v7427_v58  ;;  %v7519_v57 = vld [vmem:[#allocation5 + $0x10e8] ss:$16 sps:$4 sm:$0xff]   ;;  %v7524_v58 = vld [vmem:[#allocation5 + $0x1104] ss:$16 sps:$4 sm:$0xff]  }
 0x219   :  { %5083 = vmatprep.subr.bf16.mxu0 %v7432_v59  ;;  %5575 = vmatprep.subr.bf16.mxu1 %v7435_v60  ;;  %v7527_v59 = vld [vmem:[#allocation5 + $0x110c] ss:$16 sps:$4 sm:$0xff]   ;;  %v7522_v60 = vld [vmem:[#allocation5 + $0x1100] ss:$16 sps:$4 sm:$0xff]  }
 0x21c   :  { %5084 = vmatpush1.bf16.msra.mxu0 %v7430_v61  ;;  %5576 = vmatpush1.bf16.msra.mxu1 %v7433_v62  ;;  %v7525_v61 = vld [vmem:[#allocation5 + $0x1108] ss:$16 sps:$4 sm:$0xff]   ;;  %v7530_v62 = vld [vmem:[#allocation5 + $0x1124] ss:$16 sps:$4 sm:$0xff]  }
 0x21d   :  { %5085 = vmatprep.subr.bf16.mxu0 %v7438_v63  ;;  %5577 = vmatprep.subr.bf16.mxu1 %v7441_v0  ;;  %v7533_v63 = vld [vmem:[#allocation5 + $0x112c] ss:$16 sps:$4 sm:$0xff]   ;;  %v7528_v0 = vld [vmem:[#allocation5 + $0x1120] ss:$16 sps:$4 sm:$0xff]  }
 0x220   :  { %5086 = vmatpush1.bf16.msra.mxu0 %v7436_v1  ;;  %5578 = vmatpush1.bf16.msra.mxu1 %v7439_v2  ;;  %v7531_v1 = vld [vmem:[#allocation5 + $0x1128] ss:$16 sps:$4 sm:$0xff]   ;;  %v7536_v2 = vld [vmem:[#allocation5 + $0x1144] ss:$16 sps:$4 sm:$0xff]  }
 0x221   :  { %5087 = vmatprep.subr.bf16.mxu0 %v7444_v3  ;;  %5579 = vmatprep.subr.bf16.mxu1 %v7447_v4  ;;  %v7539_v3 = vld [vmem:[#allocation5 + $0x114c] ss:$16 sps:$4 sm:$0xff]   ;;  %v7534_v4 = vld [vmem:[#allocation5 + $0x1140] ss:$16 sps:$4 sm:$0xff]  }
 0x224   :  { %5088 = vmatpush1.bf16.msra.mxu0 %v7442_v5  ;;  %5580 = vmatpush1.bf16.msra.mxu1 %v7445_v6  ;;  %v7537_v5 = vld [vmem:[#allocation5 + $0x1148] ss:$16 sps:$4 sm:$0xff]   ;;  %v7542_v6 = vld [vmem:[#allocation5 + $0x1164] ss:$16 sps:$4 sm:$0xff]  }
 0x225   :  { %5089 = vmatprep.subr.bf16.mxu0 %v7450_v7  ;;  %5581 = vmatprep.subr.bf16.mxu1 %v7453_v8  ;;  %v7545_v7 = vld [vmem:[#allocation5 + $0x116c] ss:$16 sps:$4 sm:$0xff]   ;;  %v7540_v8 = vld [vmem:[#allocation5 + $0x1160] ss:$16 sps:$4 sm:$0xff]  }
 0x228   :  { %5090 = vmatpush1.bf16.msra.mxu0 %v7448_v9  ;;  %5582 = vmatpush1.bf16.msra.mxu1 %v7451_v10  ;;  %v7543_v9 = vld [vmem:[#allocation5 + $0x1168] ss:$16 sps:$4 sm:$0xff]   ;;  %v7548_v10 = vld [vmem:[#allocation5 + $0x1184] ss:$16 sps:$4 sm:$0xff]  }
 0x229   :  { %5091 = vmatprep.subr.bf16.mxu0 %v7456_v12  ;;  %5583 = vmatprep.subr.bf16.mxu1 %v7459_v13  ;;  %v7551_v12 = vld [vmem:[#allocation5 + $0x118c] ss:$16 sps:$4 sm:$0xff]   ;;  %v7546_v13 = vld [vmem:[#allocation5 + $0x1180] ss:$16 sps:$4 sm:$0xff]  }
 0x22c   :  { %5092 = vmatpush1.bf16.msra.mxu0 %v7454_v15  ;;  %5584 = vmatpush1.bf16.msra.mxu1 %v7457_v16  ;;  %v7549_v15 = vld [vmem:[#allocation5 + $0x1188] ss:$16 sps:$4 sm:$0xff]   ;;  %v7554_v16 = vld [vmem:[#allocation5 + $0x11a4] ss:$16 sps:$4 sm:$0xff]  }
 0x22d   :  { %5093 = vmatprep.subr.bf16.mxu0 %v7462_v18  ;;  %5585 = vmatprep.subr.bf16.mxu1 %v7465_v20  ;;  %v7557_v18 = vld [vmem:[#allocation5 + $0x11ac] ss:$16 sps:$4 sm:$0xff]   ;;  %v7552_v20 = vld [vmem:[#allocation5 + $0x11a0] ss:$16 sps:$4 sm:$0xff]  }
 0x230   :  { %5094 = vmatpush1.bf16.msra.mxu0 %v7460_v11  ;;  %5586 = vmatpush1.bf16.msra.mxu1 %v7463_v21  ;;  %v7555_v11 = vld [vmem:[#allocation5 + $0x11a8] ss:$16 sps:$4 sm:$0xff]   ;;  %v7560_v21 = vld [vmem:[#allocation5 + $0x11c4] ss:$16 sps:$4 sm:$0xff]  }
 0x231   :  { %5095 = vmatprep.subr.bf16.mxu0 %v7468_v14  ;;  %5587 = vmatprep.subr.bf16.mxu1 %v7471_v23  ;;  %v7563_v14 = vld [vmem:[#allocation5 + $0x11cc] ss:$16 sps:$4 sm:$0xff]   ;;  %v7558_v23 = vld [vmem:[#allocation5 + $0x11c0] ss:$16 sps:$4 sm:$0xff]  }
 0x234   :  { %5096 = vmatpush1.bf16.msra.mxu0 %v7466_v24  ;;  %5588 = vmatpush1.bf16.msra.mxu1 %v7469_v17  ;;  %v7561_v24 = vld [vmem:[#allocation5 + $0x11c8] ss:$16 sps:$4 sm:$0xff]   ;;  %v7566_v17 = vld [vmem:[#allocation5 + $0x11e4] ss:$16 sps:$4 sm:$0xff]  }
 0x235   :  { %5106 = vmatprep.subr.bf16.mxu0 %v7476_v26  ;;  %5598 = vmatprep.subr.bf16.mxu1 %v7479_v27  ;;  %v7569_v26 = vld [vmem:[#allocation5 + $0x11ec] ss:$16 sps:$4 sm:$0xff]   ;;  %v7564_v27 = vld [vmem:[#allocation5 + $0x11e0] ss:$16 sps:$4 sm:$0xff]  }
 0x237   :  { %5098 = vmatmul.mubr.bf16.vlgmr.msra.gmra.mrb[0].mxu0 %v5810_v28  ;;  %5590 = vmatmul.mubr.bf16.vlgmr.msra.gmra.mrb[0].mxu1 %v5810_v28  ;;  %v7567_v28 = vld [vmem:[#allocation5 + $0x11e8] ss:$16 sps:$4 sm:$0xff]  }
 0x238   :  { %5107 = vmatpush1.bf16.msra.mxu0 %v7474_v29  ;;  %5599 = vmatpush1.bf16.msra.mxu1 %v7477_v30  ;;  %v7574_v29 = vld [vmem:[#allocation5 + $0x1204] ss:$16 sps:$4 sm:$0xff]   ;;  %v7577_v30 = vld [vmem:[#allocation5 + $0x120c] ss:$16 sps:$4 sm:$0xff]  }
 0x239   :  { %5108 = vmatprep.subr.bf16.mxu0 %v7482_v31  ;;  %5600 = vmatprep.subr.bf16.mxu1 %v7485_v22  ;;  %v5812_v31 = vcombine.low %v8064_v19, %v8064_v19  ;;  %v8070_v22 = vld [vmem:[#allocation2 + $0x48] sm:$0xff]  ;;  %v7586_v19 = vld [vmem:[#allocation5 + $0x1244] ss:$16 sps:$4 sm:$0xff]  }
 0x23a   :  { %5138 = vmatprep.mubr.bf16.mxu0 %v5813_v32  ;;  %5630 = vmatprep.mubr.bf16.mxu1 %v5813_v32  ;;  %v7572_v32 = vld [vmem:[#allocation5 + $0x1200] ss:$16 sps:$4 sm:$0xff]  }
 0x23c   :  { %5109 = vmatpush1.bf16.msra.mxu0 %v7480_v33  ;;  %5601 = vmatpush1.bf16.msra.mxu1 %v7483_v34  ;;  %v7575_v33 = vld [vmem:[#allocation5 + $0x1208] ss:$16 sps:$4 sm:$0xff]   ;;  %v7580_v34 = vld [vmem:[#allocation5 + $0x1224] ss:$16 sps:$4 sm:$0xff]  }
 0x23d   :  { %5110 = vmatprep.subr.bf16.mxu0 %v7488_v25  ;;  %5602 = vmatprep.subr.bf16.mxu1 %v7491_v35  ;;  %v7583_v25 = vld [vmem:[#allocation5 + $0x122c] ss:$16 sps:$4 sm:$0xff]   ;;  %v5815_v35 = vcombine.high %v8070_v22, %v8070_v22 }
 0x240   :  { %5111 = vmatpush1.bf16.msra.mxu0 %v7486_v36  ;;  %5603 = vmatpush1.bf16.msra.mxu1 %v7489_v37  ;;  %v7578_v36 = vld [vmem:[#allocation5 + $0x1220] ss:$16 sps:$4 sm:$0xff]   ;;  %v7581_v37 = vld [vmem:[#allocation5 + $0x1228] ss:$16 sps:$4 sm:$0xff]  }
 0x241   :  { %5112 = vmatprep.subr.bf16.mxu0 %v7494_v38  ;;  %5604 = vmatprep.subr.bf16.mxu1 %v7497_v39  ;;  %v7589_v38 = vld [vmem:[#allocation5 + $0x124c] ss:$16 sps:$4 sm:$0xff]   ;;  %v7584_v39 = vld [vmem:[#allocation5 + $0x1240] ss:$16 sps:$4 sm:$0xff]  }
 0x244   :  { %5113 = vmatpush1.bf16.msra.mxu0 %v7492_v40  ;;  %5605 = vmatpush1.bf16.msra.mxu1 %v7495_v41  ;;  %v7587_v40 = vld [vmem:[#allocation5 + $0x1248] ss:$16 sps:$4 sm:$0xff]   ;;  %v7592_v41 = vld [vmem:[#allocation5 + $0x1264] ss:$16 sps:$4 sm:$0xff]  }
 0x245   :  { %5114 = vmatprep.subr.bf16.mxu0 %v7500_v42  ;;  %5606 = vmatprep.subr.bf16.mxu1 %v7503_v43  ;;  %v7595_v42 = vld [vmem:[#allocation5 + $0x126c] ss:$16 sps:$4 sm:$0xff]   ;;  %v7590_v43 = vld [vmem:[#allocation5 + $0x1260] ss:$16 sps:$4 sm:$0xff]  }
 0x248   :  { %5115 = vmatpush1.bf16.msra.mxu0 %v7498_v44  ;;  %5607 = vmatpush1.bf16.msra.mxu1 %v7501_v45  ;;  %v7593_v44 = vld [vmem:[#allocation5 + $0x1268] ss:$16 sps:$4 sm:$0xff]   ;;  %v7598_v45 = vld [vmem:[#allocation5 + $0x1284] ss:$16 sps:$4 sm:$0xff]  }
 0x249   :  { %5116 = vmatprep.subr.bf16.mxu0 %v7506_v46  ;;  %5608 = vmatprep.subr.bf16.mxu1 %v7509_v47  ;;  %v7601_v46 = vld [vmem:[#allocation5 + $0x128c] ss:$16 sps:$4 sm:$0xff]   ;;  %v7596_v47 = vld [vmem:[#allocation5 + $0x1280] ss:$16 sps:$4 sm:$0xff]  }
 0x24c   :  { %5117 = vmatpush1.bf16.msra.mxu0 %v7504_v48  ;;  %5609 = vmatpush1.bf16.msra.mxu1 %v7507_v49  ;;  %v7599_v48 = vld [vmem:[#allocation5 + $0x1288] ss:$16 sps:$4 sm:$0xff]   ;;  %v7604_v49 = vld [vmem:[#allocation5 + $0x12a4] ss:$16 sps:$4 sm:$0xff]  }
 0x24d   :  { %5118 = vmatprep.subr.bf16.mxu0 %v7512_v50  ;;  %5610 = vmatprep.subr.bf16.mxu1 %v7515_v51  ;;  %v7607_v50 = vld [vmem:[#allocation5 + $0x12ac] ss:$16 sps:$4 sm:$0xff]   ;;  %v7602_v51 = vld [vmem:[#allocation5 + $0x12a0] ss:$16 sps:$4 sm:$0xff]  }
 0x250   :  { %5119 = vmatpush1.bf16.msra.mxu0 %v7510_v52  ;;  %5611 = vmatpush1.bf16.msra.mxu1 %v7513_v53  ;;  %v7605_v52 = vld [vmem:[#allocation5 + $0x12a8] ss:$16 sps:$4 sm:$0xff]   ;;  %v7610_v53 = vld [vmem:[#allocation5 + $0x12c4] ss:$16 sps:$4 sm:$0xff]  }
 0x251   :  { %5120 = vmatprep.subr.bf16.mxu0 %v7518_v54  ;;  %5612 = vmatprep.subr.bf16.mxu1 %v7521_v55  ;;  %v7613_v54 = vld [vmem:[#allocation5 + $0x12cc] ss:$16 sps:$4 sm:$0xff]   ;;  %v7608_v55 = vld [vmem:[#allocation5 + $0x12c0] ss:$16 sps:$4 sm:$0xff]  }
 0x254   :  { %5121 = vmatpush1.bf16.msra.mxu0 %v7516_v56  ;;  %5613 = vmatpush1.bf16.msra.mxu1 %v7519_v57  ;;  %v7611_v56 = vld [vmem:[#allocation5 + $0x12c8] ss:$16 sps:$4 sm:$0xff]   ;;  %v7616_v57 = vld [vmem:[#allocation5 + $0x12e4] ss:$16 sps:$4 sm:$0xff]  }
 0x255   :  { %5122 = vmatprep.subr.bf16.mxu0 %v7524_v58  ;;  %5614 = vmatprep.subr.bf16.mxu1 %v7527_v59  ;;  %v7619_v58 = vld [vmem:[#allocation5 + $0x12ec] ss:$16 sps:$4 sm:$0xff]   ;;  %v7614_v59 = vld [vmem:[#allocation5 + $0x12e0] ss:$16 sps:$4 sm:$0xff]  }
 0x258   :  { %5123 = vmatpush1.bf16.msra.mxu0 %v7522_v60  ;;  %5615 = vmatpush1.bf16.msra.mxu1 %v7525_v61  ;;  %v7617_v60 = vld [vmem:[#allocation5 + $0x12e8] ss:$16 sps:$4 sm:$0xff]   ;;  %v7622_v61 = vld [vmem:[#allocation5 + $0x1304] ss:$16 sps:$4 sm:$0xff]  }
 0x259   :  { %5124 = vmatprep.subr.bf16.mxu0 %v7530_v62  ;;  %5616 = vmatprep.subr.bf16.mxu1 %v7533_v63  ;;  %v7625_v62 = vld [vmem:[#allocation5 + $0x130c] ss:$16 sps:$4 sm:$0xff]   ;;  %v7620_v63 = vld [vmem:[#allocation5 + $0x1300] ss:$16 sps:$4 sm:$0xff]  }
 0x25c   :  { %5125 = vmatpush1.bf16.msra.mxu0 %v7528_v0  ;;  %5617 = vmatpush1.bf16.msra.mxu1 %v7531_v1  ;;  %v7623_v0 = vld [vmem:[#allocation5 + $0x1308] ss:$16 sps:$4 sm:$0xff]   ;;  %v7628_v1 = vld [vmem:[#allocation5 + $0x1324] ss:$16 sps:$4 sm:$0xff]  }
 0x25d   :  { %5126 = vmatprep.subr.bf16.mxu0 %v7536_v2  ;;  %5618 = vmatprep.subr.bf16.mxu1 %v7539_v3  ;;  %v7631_v2 = vld [vmem:[#allocation5 + $0x132c] ss:$16 sps:$4 sm:$0xff]   ;;  %v7626_v3 = vld [vmem:[#allocation5 + $0x1320] ss:$16 sps:$4 sm:$0xff]  }
 0x260   :  { %5127 = vmatpush1.bf16.msra.mxu0 %v7534_v4  ;;  %5619 = vmatpush1.bf16.msra.mxu1 %v7537_v5  ;;  %v7629_v4 = vld [vmem:[#allocation5 + $0x1328] ss:$16 sps:$4 sm:$0xff]   ;;  %v7634_v5 = vld [vmem:[#allocation5 + $0x1344] ss:$16 sps:$4 sm:$0xff]  }
 0x261   :  { %5128 = vmatprep.subr.bf16.mxu0 %v7542_v6  ;;  %5620 = vmatprep.subr.bf16.mxu1 %v7545_v7  ;;  %v7637_v6 = vld [vmem:[#allocation5 + $0x134c] ss:$16 sps:$4 sm:$0xff]   ;;  %v7632_v7 = vld [vmem:[#allocation5 + $0x1340] ss:$16 sps:$4 sm:$0xff]  }
 0x264   :  { %5129 = vmatpush1.bf16.msra.mxu0 %v7540_v8  ;;  %5621 = vmatpush1.bf16.msra.mxu1 %v7543_v9  ;;  %v7635_v8 = vld [vmem:[#allocation5 + $0x1348] ss:$16 sps:$4 sm:$0xff]   ;;  %v7640_v9 = vld [vmem:[#allocation5 + $0x1364] ss:$16 sps:$4 sm:$0xff]  }
 0x265   :  { %5130 = vmatprep.subr.bf16.mxu0 %v7548_v10  ;;  %5622 = vmatprep.subr.bf16.mxu1 %v7551_v12  ;;  %v7643_v10 = vld [vmem:[#allocation5 + $0x136c] ss:$16 sps:$4 sm:$0xff]   ;;  %v7638_v12 = vld [vmem:[#allocation5 + $0x1360] ss:$16 sps:$4 sm:$0xff]  }
 0x268   :  { %5131 = vmatpush1.bf16.msra.mxu0 %v7546_v13  ;;  %5623 = vmatpush1.bf16.msra.mxu1 %v7549_v15  ;;  %v7641_v13 = vld [vmem:[#allocation5 + $0x1368] ss:$16 sps:$4 sm:$0xff]   ;;  %v7646_v15 = vld [vmem:[#allocation5 + $0x1384] ss:$16 sps:$4 sm:$0xff]  }
 0x269   :  { %5132 = vmatprep.subr.bf16.mxu0 %v7554_v16  ;;  %5624 = vmatprep.subr.bf16.mxu1 %v7557_v18  ;;  %v7649_v16 = vld [vmem:[#allocation5 + $0x138c] ss:$16 sps:$4 sm:$0xff]   ;;  %v7644_v18 = vld [vmem:[#allocation5 + $0x1380] ss:$16 sps:$4 sm:$0xff]  }
 0x26c   :  { %5133 = vmatpush1.bf16.msra.mxu0 %v7552_v20  ;;  %5625 = vmatpush1.bf16.msra.mxu1 %v7555_v11  ;;  %v7647_v20 = vld [vmem:[#allocation5 + $0x1388] ss:$16 sps:$4 sm:$0xff]   ;;  %v7652_v11 = vld [vmem:[#allocation5 + $0x13a4] ss:$16 sps:$4 sm:$0xff]  }
 0x26d   :  { %5134 = vmatprep.subr.bf16.mxu0 %v7560_v21  ;;  %5626 = vmatprep.subr.bf16.mxu1 %v7563_v14  ;;  %v7655_v21 = vld [vmem:[#allocation5 + $0x13ac] ss:$16 sps:$4 sm:$0xff]   ;;  %v7650_v14 = vld [vmem:[#allocation5 + $0x13a0] ss:$16 sps:$4 sm:$0xff]  }
 0x270   :  { %5135 = vmatpush1.bf16.msra.mxu0 %v7558_v23  ;;  %5627 = vmatpush1.bf16.msra.mxu1 %v7561_v24  ;;  %v7653_v23 = vld [vmem:[#allocation5 + $0x13a8] ss:$16 sps:$4 sm:$0xff]   ;;  %v7658_v24 = vld [vmem:[#allocation5 + $0x13c4] ss:$16 sps:$4 sm:$0xff]  }
 0x271   :  { %5136 = vmatprep.subr.bf16.mxu0 %v7566_v17  ;;  %5628 = vmatprep.subr.bf16.mxu1 %v7569_v26  ;;  %v7661_v17 = vld [vmem:[#allocation5 + $0x13cc] ss:$16 sps:$4 sm:$0xff]   ;;  %v7656_v26 = vld [vmem:[#allocation5 + $0x13c0] ss:$16 sps:$4 sm:$0xff]  }
 0x274   :  { %5137 = vmatpush1.bf16.msra.mxu0 %v7564_v27  ;;  %5629 = vmatpush1.bf16.msra.mxu1 %v7567_v28  ;;  %v7659_v27 = vld [vmem:[#allocation5 + $0x13c8] ss:$16 sps:$4 sm:$0xff]   ;;  %v7664_v28 = vld [vmem:[#allocation5 + $0x13e4] ss:$16 sps:$4 sm:$0xff]  }
 0x275   :  { %5147 = vmatprep.subr.bf16.mxu0 %v7574_v29  ;;  %5639 = vmatprep.subr.bf16.mxu1 %v7577_v30  ;;  %v7667_v29 = vld [vmem:[#allocation5 + $0x13ec] ss:$16 sps:$4 sm:$0xff]   ;;  %v7662_v30 = vld [vmem:[#allocation5 + $0x13e0] ss:$16 sps:$4 sm:$0xff]  }
 0x277   :  { %5139 = vmatmul.mubr.bf16.vlgmr.msra.gmra.mrb[0].mxu0 %v5812_v31  ;;  %5631 = vmatmul.mubr.bf16.vlgmr.msra.gmra.mrb[0].mxu1 %v5812_v31  ;;  %v7665_v31 = vld [vmem:[#allocation5 + $0x13e8] ss:$16 sps:$4 sm:$0xff]  }
 0x278   :  { %5148 = vmatpush1.bf16.msra.mxu0 %v7572_v32  ;;  %5640 = vmatpush1.bf16.msra.mxu1 %v7575_v33  ;;  %v7672_v32 = vld [vmem:[#allocation5 + $0x1404] ss:$16 sps:$4 sm:$0xff]   ;;  %v7675_v33 = vld [vmem:[#allocation5 + $0x140c] ss:$16 sps:$4 sm:$0xff]  }
 0x279   :  { %5149 = vmatprep.subr.bf16.mxu0 %v7580_v34  ;;  %5641 = vmatprep.subr.bf16.mxu1 %v7583_v25  ;;  %v5814_v34 = vcombine.low %v8070_v22, %v8070_v22  ;;  %v8076_v25 = vld [vmem:[#allocation2 + $0x50] sm:$0xff] }
 0x27a   :  { %5179 = vmatprep.mubr.bf16.mxu0 %v5815_v35  ;;  %5671 = vmatprep.mubr.bf16.mxu1 %v5815_v35  ;;  %v7670_v35 = vld [vmem:[#allocation5 + $0x1400] ss:$16 sps:$4 sm:$0xff]   ;;  %v7684_v22 = vld [vmem:[#allocation5 + $0x1444] ss:$16 sps:$4 sm:$0xff]  }
 0x27c   :  { %5150 = vmatpush1.bf16.msra.mxu0 %v7578_v36  ;;  %5642 = vmatpush1.bf16.msra.mxu1 %v7581_v37  ;;  %v7673_v36 = vld [vmem:[#allocation5 + $0x1408] ss:$16 sps:$4 sm:$0xff]   ;;  %v7678_v37 = vld [vmem:[#allocation5 + $0x1424] ss:$16 sps:$4 sm:$0xff]  }
 0x27d   :  { %5151 = vmatprep.subr.bf16.mxu0 %v7586_v19  ;;  %5643 = vmatprep.subr.bf16.mxu1 %v7589_v38  ;;  %v7681_v19 = vld [vmem:[#allocation5 + $0x142c] ss:$16 sps:$4 sm:$0xff]   ;;  %v5817_v38 = vcombine.high %v8076_v25, %v8076_v25 }
 0x280   :  { %5152 = vmatpush1.bf16.msra.mxu0 %v7584_v39  ;;  %5644 = vmatpush1.bf16.msra.mxu1 %v7587_v40  ;;  %v7676_v39 = vld [vmem:[#allocation5 + $0x1420] ss:$16 sps:$4 sm:$0xff]   ;;  %v7679_v40 = vld [vmem:[#allocation5 + $0x1428] ss:$16 sps:$4 sm:$0xff]  }
 0x281   :  { %5153 = vmatprep.subr.bf16.mxu0 %v7592_v41  ;;  %5645 = vmatprep.subr.bf16.mxu1 %v7595_v42  ;;  %v7687_v41 = vld [vmem:[#allocation5 + $0x144c] ss:$16 sps:$4 sm:$0xff]   ;;  %v7682_v42 = vld [vmem:[#allocation5 + $0x1440] ss:$16 sps:$4 sm:$0xff]  }
 0x284   :  { %5154 = vmatpush1.bf16.msra.mxu0 %v7590_v43  ;;  %5646 = vmatpush1.bf16.msra.mxu1 %v7593_v44  ;;  %v7685_v43 = vld [vmem:[#allocation5 + $0x1448] ss:$16 sps:$4 sm:$0xff]   ;;  %v7690_v44 = vld [vmem:[#allocation5 + $0x1464] ss:$16 sps:$4 sm:$0xff]  }
 0x285   :  { %5155 = vmatprep.subr.bf16.mxu0 %v7598_v45  ;;  %5647 = vmatprep.subr.bf16.mxu1 %v7601_v46  ;;  %v7693_v45 = vld [vmem:[#allocation5 + $0x146c] ss:$16 sps:$4 sm:$0xff]   ;;  %v7688_v46 = vld [vmem:[#allocation5 + $0x1460] ss:$16 sps:$4 sm:$0xff]  }
 0x288   :  { %5156 = vmatpush1.bf16.msra.mxu0 %v7596_v47  ;;  %5648 = vmatpush1.bf16.msra.mxu1 %v7599_v48  ;;  %v7691_v47 = vld [vmem:[#allocation5 + $0x1468] ss:$16 sps:$4 sm:$0xff]   ;;  %v7696_v48 = vld [vmem:[#allocation5 + $0x1484] ss:$16 sps:$4 sm:$0xff]  }
 0x289   :  { %5157 = vmatprep.subr.bf16.mxu0 %v7604_v49  ;;  %5649 = vmatprep.subr.bf16.mxu1 %v7607_v50  ;;  %v7699_v49 = vld [vmem:[#allocation5 + $0x148c] ss:$16 sps:$4 sm:$0xff]   ;;  %v7694_v50 = vld [vmem:[#allocation5 + $0x1480] ss:$16 sps:$4 sm:$0xff]  }
 0x28c   :  { %5158 = vmatpush1.bf16.msra.mxu0 %v7602_v51  ;;  %5650 = vmatpush1.bf16.msra.mxu1 %v7605_v52  ;;  %v7697_v51 = vld [vmem:[#allocation5 + $0x1488] ss:$16 sps:$4 sm:$0xff]   ;;  %v7702_v52 = vld [vmem:[#allocation5 + $0x14a4] ss:$16 sps:$4 sm:$0xff]  }
 0x28d   :  { %5159 = vmatprep.subr.bf16.mxu0 %v7610_v53  ;;  %5651 = vmatprep.subr.bf16.mxu1 %v7613_v54  ;;  %v7705_v53 = vld [vmem:[#allocation5 + $0x14ac] ss:$16 sps:$4 sm:$0xff]   ;;  %v7700_v54 = vld [vmem:[#allocation5 + $0x14a0] ss:$16 sps:$4 sm:$0xff]  }
 0x290   :  { %5160 = vmatpush1.bf16.msra.mxu0 %v7608_v55  ;;  %5652 = vmatpush1.bf16.msra.mxu1 %v7611_v56  ;;  %v7703_v55 = vld [vmem:[#allocation5 + $0x14a8] ss:$16 sps:$4 sm:$0xff]   ;;  %v7708_v56 = vld [vmem:[#allocation5 + $0x14c4] ss:$16 sps:$4 sm:$0xff]  }
 0x291   :  { %5161 = vmatprep.subr.bf16.mxu0 %v7616_v57  ;;  %5653 = vmatprep.subr.bf16.mxu1 %v7619_v58  ;;  %v7711_v57 = vld [vmem:[#allocation5 + $0x14cc] ss:$16 sps:$4 sm:$0xff]   ;;  %v7706_v58 = vld [vmem:[#allocation5 + $0x14c0] ss:$16 sps:$4 sm:$0xff]  }
 0x294   :  { %5162 = vmatpush1.bf16.msra.mxu0 %v7614_v59  ;;  %5654 = vmatpush1.bf16.msra.mxu1 %v7617_v60  ;;  %v7709_v59 = vld [vmem:[#allocation5 + $0x14c8] ss:$16 sps:$4 sm:$0xff]   ;;  %v7714_v60 = vld [vmem:[#allocation5 + $0x14e4] ss:$16 sps:$4 sm:$0xff]  }
 0x295   :  { %5163 = vmatprep.subr.bf16.mxu0 %v7622_v61  ;;  %5655 = vmatprep.subr.bf16.mxu1 %v7625_v62  ;;  %v7717_v61 = vld [vmem:[#allocation5 + $0x14ec] ss:$16 sps:$4 sm:$0xff]   ;;  %v7712_v62 = vld [vmem:[#allocation5 + $0x14e0] ss:$16 sps:$4 sm:$0xff]  }
 0x298   :  { %5164 = vmatpush1.bf16.msra.mxu0 %v7620_v63  ;;  %5656 = vmatpush1.bf16.msra.mxu1 %v7623_v0  ;;  %v7715_v63 = vld [vmem:[#allocation5 + $0x14e8] ss:$16 sps:$4 sm:$0xff]   ;;  %v7720_v0 = vld [vmem:[#allocation5 + $0x1504] ss:$16 sps:$4 sm:$0xff]  }
 0x299   :  { %5165 = vmatprep.subr.bf16.mxu0 %v7628_v1  ;;  %5657 = vmatprep.subr.bf16.mxu1 %v7631_v2  ;;  %v7723_v1 = vld [vmem:[#allocation5 + $0x150c] ss:$16 sps:$4 sm:$0xff]   ;;  %v7718_v2 = vld [vmem:[#allocation5 + $0x1500] ss:$16 sps:$4 sm:$0xff]  }
 0x29c   :  { %5166 = vmatpush1.bf16.msra.mxu0 %v7626_v3  ;;  %5658 = vmatpush1.bf16.msra.mxu1 %v7629_v4  ;;  %v7721_v3 = vld [vmem:[#allocation5 + $0x1508] ss:$16 sps:$4 sm:$0xff]   ;;  %v7726_v4 = vld [vmem:[#allocation5 + $0x1524] ss:$16 sps:$4 sm:$0xff]  }
 0x29d   :  { %5167 = vmatprep.subr.bf16.mxu0 %v7634_v5  ;;  %5659 = vmatprep.subr.bf16.mxu1 %v7637_v6  ;;  %v7729_v5 = vld [vmem:[#allocation5 + $0x152c] ss:$16 sps:$4 sm:$0xff]   ;;  %v7724_v6 = vld [vmem:[#allocation5 + $0x1520] ss:$16 sps:$4 sm:$0xff]  }
 0x2a0   :  { %5168 = vmatpush1.bf16.msra.mxu0 %v7632_v7  ;;  %5660 = vmatpush1.bf16.msra.mxu1 %v7635_v8  ;;  %v7727_v7 = vld [vmem:[#allocation5 + $0x1528] ss:$16 sps:$4 sm:$0xff]   ;;  %v7732_v8 = vld [vmem:[#allocation5 + $0x1544] ss:$16 sps:$4 sm:$0xff]  }
 0x2a1   :  { %5169 = vmatprep.subr.bf16.mxu0 %v7640_v9  ;;  %5661 = vmatprep.subr.bf16.mxu1 %v7643_v10  ;;  %v7735_v9 = vld [vmem:[#allocation5 + $0x154c] ss:$16 sps:$4 sm:$0xff]   ;;  %v7730_v10 = vld [vmem:[#allocation5 + $0x1540] ss:$16 sps:$4 sm:$0xff]  }
 0x2a4   :  { %5170 = vmatpush1.bf16.msra.mxu0 %v7638_v12  ;;  %5662 = vmatpush1.bf16.msra.mxu1 %v7641_v13  ;;  %v7733_v12 = vld [vmem:[#allocation5 + $0x1548] ss:$16 sps:$4 sm:$0xff]   ;;  %v7738_v13 = vld [vmem:[#allocation5 + $0x1564] ss:$16 sps:$4 sm:$0xff]  }
 0x2a5   :  { %5171 = vmatprep.subr.bf16.mxu0 %v7646_v15  ;;  %5663 = vmatprep.subr.bf16.mxu1 %v7649_v16  ;;  %v7741_v15 = vld [vmem:[#allocation5 + $0x156c] ss:$16 sps:$4 sm:$0xff]   ;;  %v7736_v16 = vld [vmem:[#allocation5 + $0x1560] ss:$16 sps:$4 sm:$0xff]  }
 0x2a8   :  { %5172 = vmatpush1.bf16.msra.mxu0 %v7644_v18  ;;  %5664 = vmatpush1.bf16.msra.mxu1 %v7647_v20  ;;  %v7739_v18 = vld [vmem:[#allocation5 + $0x1568] ss:$16 sps:$4 sm:$0xff]   ;;  %v7744_v20 = vld [vmem:[#allocation5 + $0x1584] ss:$16 sps:$4 sm:$0xff]  }
 0x2a9   :  { %5173 = vmatprep.subr.bf16.mxu0 %v7652_v11  ;;  %5665 = vmatprep.subr.bf16.mxu1 %v7655_v21  ;;  %v7747_v11 = vld [vmem:[#allocation5 + $0x158c] ss:$16 sps:$4 sm:$0xff]   ;;  %v7742_v21 = vld [vmem:[#allocation5 + $0x1580] ss:$16 sps:$4 sm:$0xff]  }
 0x2ac   :  { %5174 = vmatpush1.bf16.msra.mxu0 %v7650_v14  ;;  %5666 = vmatpush1.bf16.msra.mxu1 %v7653_v23  ;;  %v7745_v14 = vld [vmem:[#allocation5 + $0x1588] ss:$16 sps:$4 sm:$0xff]   ;;  %v7750_v23 = vld [vmem:[#allocation5 + $0x15a4] ss:$16 sps:$4 sm:$0xff]  }
 0x2ad   :  { %5175 = vmatprep.subr.bf16.mxu0 %v7658_v24  ;;  %5667 = vmatprep.subr.bf16.mxu1 %v7661_v17  ;;  %v7753_v24 = vld [vmem:[#allocation5 + $0x15ac] ss:$16 sps:$4 sm:$0xff]   ;;  %v7748_v17 = vld [vmem:[#allocation5 + $0x15a0] ss:$16 sps:$4 sm:$0xff]  }
 0x2b0   :  { %5176 = vmatpush1.bf16.msra.mxu0 %v7656_v26  ;;  %5668 = vmatpush1.bf16.msra.mxu1 %v7659_v27  ;;  %v7751_v26 = vld [vmem:[#allocation5 + $0x15a8] ss:$16 sps:$4 sm:$0xff]   ;;  %v7756_v27 = vld [vmem:[#allocation5 + $0x15c4] ss:$16 sps:$4 sm:$0xff]  }
 0x2b1   :  { %5177 = vmatprep.subr.bf16.mxu0 %v7664_v28  ;;  %5669 = vmatprep.subr.bf16.mxu1 %v7667_v29  ;;  %v7759_v28 = vld [vmem:[#allocation5 + $0x15cc] ss:$16 sps:$4 sm:$0xff]   ;;  %v7754_v29 = vld [vmem:[#allocation5 + $0x15c0] ss:$16 sps:$4 sm:$0xff]  }
 0x2b4   :  { %5178 = vmatpush1.bf16.msra.mxu0 %v7662_v30  ;;  %5670 = vmatpush1.bf16.msra.mxu1 %v7665_v31  ;;  %v7757_v30 = vld [vmem:[#allocation5 + $0x15c8] ss:$16 sps:$4 sm:$0xff]   ;;  %v7762_v31 = vld [vmem:[#allocation5 + $0x15e4] ss:$16 sps:$4 sm:$0xff]  }
 0x2b5   :  { %5188 = vmatprep.subr.bf16.mxu0 %v7672_v32  ;;  %5680 = vmatprep.subr.bf16.mxu1 %v7675_v33  ;;  %v7765_v32 = vld [vmem:[#allocation5 + $0x15ec] ss:$16 sps:$4 sm:$0xff]   ;;  %v7760_v33 = vld [vmem:[#allocation5 + $0x15e0] ss:$16 sps:$4 sm:$0xff]  }
 0x2b7   :  { %5180 = vmatmul.mubr.bf16.vlgmr.msra.gmra.mrb[0].mxu0 %v5814_v34  ;;  %5672 = vmatmul.mubr.bf16.vlgmr.msra.gmra.mrb[0].mxu1 %v5814_v34  ;;  %v7763_v34 = vld [vmem:[#allocation5 + $0x15e8] ss:$16 sps:$4 sm:$0xff]  }
 0x2b8   :  { %5189 = vmatpush1.bf16.msra.mxu0 %v7670_v35  ;;  %5681 = vmatpush1.bf16.msra.mxu1 %v7673_v36  ;;  %v7770_v35 = vld [vmem:[#allocation5 + $0x1604] ss:$16 sps:$4 sm:$0xff]   ;;  %v7773_v36 = vld [vmem:[#allocation5 + $0x160c] ss:$16 sps:$4 sm:$0xff]  }
 0x2b9   :  { %5190 = vmatprep.subr.bf16.mxu0 %v7678_v37  ;;  %5682 = vmatprep.subr.bf16.mxu1 %v7681_v19  ;;  %v5816_v37 = vcombine.low %v8076_v25, %v8076_v25  ;;  %v8082_v19 = vld [vmem:[#allocation2 + $0x58] sm:$0xff]  ;;  %v7782_v25 = vld [vmem:[#allocation5 + $0x1644] ss:$16 sps:$4 sm:$0xff]  }
 0x2ba   :  { %5220 = vmatprep.mubr.bf16.mxu0 %v5817_v38  ;;  %5712 = vmatprep.mubr.bf16.mxu1 %v5817_v38  ;;  %v7768_v38 = vld [vmem:[#allocation5 + $0x1600] ss:$16 sps:$4 sm:$0xff]  }
 0x2bc   :  { %5191 = vmatpush1.bf16.msra.mxu0 %v7676_v39  ;;  %5683 = vmatpush1.bf16.msra.mxu1 %v7679_v40  ;;  %v7771_v39 = vld [vmem:[#allocation5 + $0x1608] ss:$16 sps:$4 sm:$0xff]   ;;  %v7776_v40 = vld [vmem:[#allocation5 + $0x1624] ss:$16 sps:$4 sm:$0xff]  }
 0x2bd   :  { %5192 = vmatprep.subr.bf16.mxu0 %v7684_v22  ;;  %5684 = vmatprep.subr.bf16.mxu1 %v7687_v41  ;;  %v7779_v22 = vld [vmem:[#allocation5 + $0x162c] ss:$16 sps:$4 sm:$0xff]   ;;  %v5819_v41 = vcombine.high %v8082_v19, %v8082_v19 }
 0x2c0   :  { %5193 = vmatpush1.bf16.msra.mxu0 %v7682_v42  ;;  %5685 = vmatpush1.bf16.msra.mxu1 %v7685_v43  ;;  %v7774_v42 = vld [vmem:[#allocation5 + $0x1620] ss:$16 sps:$4 sm:$0xff]   ;;  %v7777_v43 = vld [vmem:[#allocation5 + $0x1628] ss:$16 sps:$4 sm:$0xff]  }
 0x2c1   :  { %5194 = vmatprep.subr.bf16.mxu0 %v7690_v44  ;;  %5686 = vmatprep.subr.bf16.mxu1 %v7693_v45  ;;  %v7785_v44 = vld [vmem:[#allocation5 + $0x164c] ss:$16 sps:$4 sm:$0xff]   ;;  %v7780_v45 = vld [vmem:[#allocation5 + $0x1640] ss:$16 sps:$4 sm:$0xff]  }
 0x2c4   :  { %5195 = vmatpush1.bf16.msra.mxu0 %v7688_v46  ;;  %5687 = vmatpush1.bf16.msra.mxu1 %v7691_v47  ;;  %v7783_v46 = vld [vmem:[#allocation5 + $0x1648] ss:$16 sps:$4 sm:$0xff]   ;;  %v7788_v47 = vld [vmem:[#allocation5 + $0x1664] ss:$16 sps:$4 sm:$0xff]  }
 0x2c5   :  { %5196 = vmatprep.subr.bf16.mxu0 %v7696_v48  ;;  %5688 = vmatprep.subr.bf16.mxu1 %v7699_v49  ;;  %v7791_v48 = vld [vmem:[#allocation5 + $0x166c] ss:$16 sps:$4 sm:$0xff]   ;;  %v7786_v49 = vld [vmem:[#allocation5 + $0x1660] ss:$16 sps:$4 sm:$0xff]  }
 0x2c8   :  { %5197 = vmatpush1.bf16.msra.mxu0 %v7694_v50  ;;  %5689 = vmatpush1.bf16.msra.mxu1 %v7697_v51  ;;  %v7789_v50 = vld [vmem:[#allocation5 + $0x1668] ss:$16 sps:$4 sm:$0xff]   ;;  %v7794_v51 = vld [vmem:[#allocation5 + $0x1684] ss:$16 sps:$4 sm:$0xff]  }
 0x2c9   :  { %5198 = vmatprep.subr.bf16.mxu0 %v7702_v52  ;;  %5690 = vmatprep.subr.bf16.mxu1 %v7705_v53  ;;  %v7797_v52 = vld [vmem:[#allocation5 + $0x168c] ss:$16 sps:$4 sm:$0xff]   ;;  %v7792_v53 = vld [vmem:[#allocation5 + $0x1680] ss:$16 sps:$4 sm:$0xff]  }
 0x2cc   :  { %5199 = vmatpush1.bf16.msra.mxu0 %v7700_v54  ;;  %5691 = vmatpush1.bf16.msra.mxu1 %v7703_v55  ;;  %v7795_v54 = vld [vmem:[#allocation5 + $0x1688] ss:$16 sps:$4 sm:$0xff]   ;;  %v7800_v55 = vld [vmem:[#allocation5 + $0x16a4] ss:$16 sps:$4 sm:$0xff]  }
 0x2cd   :  { %5200 = vmatprep.subr.bf16.mxu0 %v7708_v56  ;;  %5692 = vmatprep.subr.bf16.mxu1 %v7711_v57  ;;  %v7803_v56 = vld [vmem:[#allocation5 + $0x16ac] ss:$16 sps:$4 sm:$0xff]   ;;  %v7798_v57 = vld [vmem:[#allocation5 + $0x16a0] ss:$16 sps:$4 sm:$0xff]  }
 0x2d0   :  { %5201 = vmatpush1.bf16.msra.mxu0 %v7706_v58  ;;  %5693 = vmatpush1.bf16.msra.mxu1 %v7709_v59  ;;  %v7801_v58 = vld [vmem:[#allocation5 + $0x16a8] ss:$16 sps:$4 sm:$0xff]   ;;  %v7806_v59 = vld [vmem:[#allocation5 + $0x16c4] ss:$16 sps:$4 sm:$0xff]  }
 0x2d1   :  { %5202 = vmatprep.subr.bf16.mxu0 %v7714_v60  ;;  %5694 = vmatprep.subr.bf16.mxu1 %v7717_v61  ;;  %v7809_v60 = vld [vmem:[#allocation5 + $0x16cc] ss:$16 sps:$4 sm:$0xff]   ;;  %v7804_v61 = vld [vmem:[#allocation5 + $0x16c0] ss:$16 sps:$4 sm:$0xff]  }
 0x2d4   :  { %5203 = vmatpush1.bf16.msra.mxu0 %v7712_v62  ;;  %5695 = vmatpush1.bf16.msra.mxu1 %v7715_v63  ;;  %v7807_v62 = vld [vmem:[#allocation5 + $0x16c8] ss:$16 sps:$4 sm:$0xff]   ;;  %v7812_v63 = vld [vmem:[#allocation5 + $0x16e4] ss:$16 sps:$4 sm:$0xff]  }
 0x2d5   :  { %5204 = vmatprep.subr.bf16.mxu0 %v7720_v0  ;;  %5696 = vmatprep.subr.bf16.mxu1 %v7723_v1  ;;  %v7815_v0 = vld [vmem:[#allocation5 + $0x16ec] ss:$16 sps:$4 sm:$0xff]   ;;  %v7810_v1 = vld [vmem:[#allocation5 + $0x16e0] ss:$16 sps:$4 sm:$0xff]  }
 0x2d8   :  { %5205 = vmatpush1.bf16.msra.mxu0 %v7718_v2  ;;  %5697 = vmatpush1.bf16.msra.mxu1 %v7721_v3  ;;  %v7813_v2 = vld [vmem:[#allocation5 + $0x16e8] ss:$16 sps:$4 sm:$0xff]   ;;  %v7818_v3 = vld [vmem:[#allocation5 + $0x1704] ss:$16 sps:$4 sm:$0xff]  }
 0x2d9   :  { %5206 = vmatprep.subr.bf16.mxu0 %v7726_v4  ;;  %5698 = vmatprep.subr.bf16.mxu1 %v7729_v5  ;;  %v7821_v4 = vld [vmem:[#allocation5 + $0x170c] ss:$16 sps:$4 sm:$0xff]   ;;  %v7816_v5 = vld [vmem:[#allocation5 + $0x1700] ss:$16 sps:$4 sm:$0xff]  }
 0x2dc   :  { %5207 = vmatpush1.bf16.msra.mxu0 %v7724_v6  ;;  %5699 = vmatpush1.bf16.msra.mxu1 %v7727_v7  ;;  %v7819_v6 = vld [vmem:[#allocation5 + $0x1708] ss:$16 sps:$4 sm:$0xff]   ;;  %v7824_v7 = vld [vmem:[#allocation5 + $0x1724] ss:$16 sps:$4 sm:$0xff]  }
 0x2dd   :  { %5208 = vmatprep.subr.bf16.mxu0 %v7732_v8  ;;  %5700 = vmatprep.subr.bf16.mxu1 %v7735_v9  ;;  %v7827_v8 = vld [vmem:[#allocation5 + $0x172c] ss:$16 sps:$4 sm:$0xff]   ;;  %v7822_v9 = vld [vmem:[#allocation5 + $0x1720] ss:$16 sps:$4 sm:$0xff]  }
 0x2e0   :  { %5209 = vmatpush1.bf16.msra.mxu0 %v7730_v10  ;;  %5701 = vmatpush1.bf16.msra.mxu1 %v7733_v12  ;;  %v7825_v10 = vld [vmem:[#allocation5 + $0x1728] ss:$16 sps:$4 sm:$0xff]   ;;  %v7830_v12 = vld [vmem:[#allocation5 + $0x1744] ss:$16 sps:$4 sm:$0xff]  }
 0x2e1   :  { %5210 = vmatprep.subr.bf16.mxu0 %v7738_v13  ;;  %5702 = vmatprep.subr.bf16.mxu1 %v7741_v15  ;;  %v7833_v13 = vld [vmem:[#allocation5 + $0x174c] ss:$16 sps:$4 sm:$0xff]   ;;  %v7828_v15 = vld [vmem:[#allocation5 + $0x1740] ss:$16 sps:$4 sm:$0xff]  }
 0x2e4   :  { %5211 = vmatpush1.bf16.msra.mxu0 %v7736_v16  ;;  %5703 = vmatpush1.bf16.msra.mxu1 %v7739_v18  ;;  %v7831_v16 = vld [vmem:[#allocation5 + $0x1748] ss:$16 sps:$4 sm:$0xff]   ;;  %v7836_v18 = vld [vmem:[#allocation5 + $0x1764] ss:$16 sps:$4 sm:$0xff]  }
 0x2e5   :  { %5212 = vmatprep.subr.bf16.mxu0 %v7744_v20  ;;  %5704 = vmatprep.subr.bf16.mxu1 %v7747_v11  ;;  %v7839_v20 = vld [vmem:[#allocation5 + $0x176c] ss:$16 sps:$4 sm:$0xff]   ;;  %v7834_v11 = vld [vmem:[#allocation5 + $0x1760] ss:$16 sps:$4 sm:$0xff]  }
 0x2e8   :  { %5213 = vmatpush1.bf16.msra.mxu0 %v7742_v21  ;;  %5705 = vmatpush1.bf16.msra.mxu1 %v7745_v14  ;;  %v7837_v21 = vld [vmem:[#allocation5 + $0x1768] ss:$16 sps:$4 sm:$0xff]   ;;  %v7842_v14 = vld [vmem:[#allocation5 + $0x1784] ss:$16 sps:$4 sm:$0xff]  }
 0x2e9   :  { %5214 = vmatprep.subr.bf16.mxu0 %v7750_v23  ;;  %5706 = vmatprep.subr.bf16.mxu1 %v7753_v24  ;;  %v7845_v23 = vld [vmem:[#allocation5 + $0x178c] ss:$16 sps:$4 sm:$0xff]   ;;  %v7840_v24 = vld [vmem:[#allocation5 + $0x1780] ss:$16 sps:$4 sm:$0xff]  }
 0x2ec   :  { %5215 = vmatpush1.bf16.msra.mxu0 %v7748_v17  ;;  %5707 = vmatpush1.bf16.msra.mxu1 %v7751_v26  ;;  %v7843_v17 = vld [vmem:[#allocation5 + $0x1788] ss:$16 sps:$4 sm:$0xff]   ;;  %v7848_v26 = vld [vmem:[#allocation5 + $0x17a4] ss:$16 sps:$4 sm:$0xff]  }
 0x2ed   :  { %5216 = vmatprep.subr.bf16.mxu0 %v7756_v27  ;;  %5708 = vmatprep.subr.bf16.mxu1 %v7759_v28  ;;  %v7851_v27 = vld [vmem:[#allocation5 + $0x17ac] ss:$16 sps:$4 sm:$0xff]   ;;  %v7846_v28 = vld [vmem:[#allocation5 + $0x17a0] ss:$16 sps:$4 sm:$0xff]  }
 0x2f0   :  { %5217 = vmatpush1.bf16.msra.mxu0 %v7754_v29  ;;  %5709 = vmatpush1.bf16.msra.mxu1 %v7757_v30  ;;  %v7849_v29 = vld [vmem:[#allocation5 + $0x17a8] ss:$16 sps:$4 sm:$0xff]   ;;  %v7854_v30 = vld [vmem:[#allocation5 + $0x17c4] ss:$16 sps:$4 sm:$0xff]  }
 0x2f1   :  { %5218 = vmatprep.subr.bf16.mxu0 %v7762_v31  ;;  %5710 = vmatprep.subr.bf16.mxu1 %v7765_v32  ;;  %v7857_v31 = vld [vmem:[#allocation5 + $0x17cc] ss:$16 sps:$4 sm:$0xff]   ;;  %v7852_v32 = vld [vmem:[#allocation5 + $0x17c0] ss:$16 sps:$4 sm:$0xff]  }
 0x2f4   :  { %5219 = vmatpush1.bf16.msra.mxu0 %v7760_v33  ;;  %5711 = vmatpush1.bf16.msra.mxu1 %v7763_v34  ;;  %v7855_v33 = vld [vmem:[#allocation5 + $0x17c8] ss:$16 sps:$4 sm:$0xff]   ;;  %v7860_v34 = vld [vmem:[#allocation5 + $0x17e4] ss:$16 sps:$4 sm:$0xff]  }
 0x2f5   :  { %5229 = vmatprep.subr.bf16.mxu0 %v7770_v35  ;;  %5721 = vmatprep.subr.bf16.mxu1 %v7773_v36  ;;  %v7863_v35 = vld [vmem:[#allocation5 + $0x17ec] ss:$16 sps:$4 sm:$0xff]   ;;  %v7858_v36 = vld [vmem:[#allocation5 + $0x17e0] ss:$16 sps:$4 sm:$0xff]  }
 0x2f7   :  { %5221 = vmatmul.mubr.bf16.vlgmr.msra.gmra.mrb[0].mxu0 %v5816_v37  ;;  %5713 = vmatmul.mubr.bf16.vlgmr.msra.gmra.mrb[0].mxu1 %v5816_v37  ;;  %v7861_v37 = vld [vmem:[#allocation5 + $0x17e8] ss:$16 sps:$4 sm:$0xff]  }
 0x2f8   :  { %5230 = vmatpush1.bf16.msra.mxu0 %v7768_v38  ;;  %5722 = vmatpush1.bf16.msra.mxu1 %v7771_v39  ;;  %v5818_v38 = vcombine.low %v8082_v19, %v8082_v19  ;;  %v834_v39 = vlaneseq }
 0x2f9   :  { %5231 = vmatprep.subr.bf16.mxu0 %v7776_v40  ;;  %5723 = vmatprep.subr.bf16.mxu1 %v7779_v22 }
 0x2fa   :  { %5261 = vmatprep.mubr.bf16.mxu0 %v5819_v41  ;;  %5753 = vmatprep.mubr.bf16.mxu1 %v5819_v41  ;;  %v835_v40 = vshrl.u32 %v834_v39, 7 }
 0x2fc   :  { %5232 = vmatpush1.bf16.msra.mxu0 %v7774_v42  ;;  %5724 = vmatpush1.bf16.msra.mxu1 %v7777_v43  ;;  %v836_v22 = vsub.s32 0, %v835_v40  ;;  %v844_v41 = vsub.s32 2, %v835_v40  ;;  %v832_v42 = vld [vmem:[#allocation7] sm:$0xf]  ;;  %v840_v43 = vsub.s32 1, %v835_v40 }
 0x2fd   :  { %5233 = vmatprep.subr.bf16.mxu0 %v7782_v25  ;;  %5725 = vmatprep.subr.bf16.mxu1 %v7785_v44  ;;  %v848_v25 = vsub.s32 3, %v835_v40 }
 0x2fe   :  { %v837_v44 = vrot.slane %v832_v42, %v836_v22 }
 0x300   :  { %5234 = vmatpush1.bf16.msra.mxu0 %v7780_v45  ;;  %5726 = vmatpush1.bf16.msra.mxu1 %v7783_v46  ;;  %v845_v45 = vrot.slane %v832_v42, %v844_v41  ;;  %v841_v46 = vrot.slane %v832_v42, %v840_v43 }
 0x301   :  { %5235 = vmatprep.subr.bf16.mxu0 %v7788_v47  ;;  %5727 = vmatprep.subr.bf16.mxu1 %v7791_v48  ;;  %v849_v47 = vrot.slane %v832_v42, %v848_v25 }
 0x304   :  { %5236 = vmatpush1.bf16.msra.mxu0 %v7786_v49  ;;  %5728 = vmatpush1.bf16.msra.mxu1 %v7789_v50 }
 0x305   :  { %5237 = vmatprep.subr.bf16.mxu0 %v7794_v51  ;;  %5729 = vmatprep.subr.bf16.mxu1 %v7797_v52 }
 0x308   :  { %5238 = vmatpush1.bf16.msra.mxu0 %v7792_v53  ;;  %5730 = vmatpush1.bf16.msra.mxu1 %v7795_v54 }
 0x309   :  { %5239 = vmatprep.subr.bf16.mxu0 %v7800_v55  ;;  %5731 = vmatprep.subr.bf16.mxu1 %v7803_v56 }
 0x30c   :  { %5240 = vmatpush1.bf16.msra.mxu0 %v7798_v57  ;;  %5732 = vmatpush1.bf16.msra.mxu1 %v7801_v58 }
 0x30d   :  { %5241 = vmatprep.subr.bf16.mxu0 %v7806_v59  ;;  %5733 = vmatprep.subr.bf16.mxu1 %v7809_v60 }
 0x310   :  { %5242 = vmatpush1.bf16.msra.mxu0 %v7804_v61  ;;  %5734 = vmatpush1.bf16.msra.mxu1 %v7807_v62 }
 0x311   :  { %5243 = vmatprep.subr.bf16.mxu0 %v7812_v63  ;;  %5735 = vmatprep.subr.bf16.mxu1 %v7815_v0 }
 0x314   :  { %5244 = vmatpush1.bf16.msra.mxu0 %v7810_v1  ;;  %5736 = vmatpush1.bf16.msra.mxu1 %v7813_v2 }
 0x315   :  { %5245 = vmatprep.subr.bf16.mxu0 %v7818_v3  ;;  %5737 = vmatprep.subr.bf16.mxu1 %v7821_v4 }
 0x318   :  { %5246 = vmatpush1.bf16.msra.mxu0 %v7816_v5  ;;  %5738 = vmatpush1.bf16.msra.mxu1 %v7819_v6 }
 0x319   :  { %5247 = vmatprep.subr.bf16.mxu0 %v7824_v7  ;;  %5739 = vmatprep.subr.bf16.mxu1 %v7827_v8 }
 0x31c   :  { %5248 = vmatpush1.bf16.msra.mxu0 %v7822_v9  ;;  %5740 = vmatpush1.bf16.msra.mxu1 %v7825_v10 }
 0x31d   :  { %5249 = vmatprep.subr.bf16.mxu0 %v7830_v12  ;;  %5741 = vmatprep.subr.bf16.mxu1 %v7833_v13 }
 0x320   :  { %5250 = vmatpush1.bf16.msra.mxu0 %v7828_v15  ;;  %5742 = vmatpush1.bf16.msra.mxu1 %v7831_v16 }
 0x321   :  { %5251 = vmatprep.subr.bf16.mxu0 %v7836_v18  ;;  %5743 = vmatprep.subr.bf16.mxu1 %v7839_v20 }
 0x324   :  { %5252 = vmatpush1.bf16.msra.mxu0 %v7834_v11  ;;  %5744 = vmatpush1.bf16.msra.mxu1 %v7837_v21 }
 0x325   :  { %5253 = vmatprep.subr.bf16.mxu0 %v7842_v14  ;;  %5745 = vmatprep.subr.bf16.mxu1 %v7845_v23 }
 0x328   :  { %5254 = vmatpush1.bf16.msra.mxu0 %v7840_v24  ;;  %5746 = vmatpush1.bf16.msra.mxu1 %v7843_v17 }
 0x329   :  { %5255 = vmatprep.subr.bf16.mxu0 %v7848_v26  ;;  %5747 = vmatprep.subr.bf16.mxu1 %v7851_v27 }
 0x32c   :  { %5256 = vmatpush1.bf16.msra.mxu0 %v7846_v28  ;;  %5748 = vmatpush1.bf16.msra.mxu1 %v7849_v29 }
 0x32d   :  { %5257 = vmatprep.subr.bf16.mxu0 %v7854_v30  ;;  %5749 = vmatprep.subr.bf16.mxu1 %v7857_v31 }
 0x330   :  { %5258 = vmatpush1.bf16.msra.mxu0 %v7852_v32  ;;  %5750 = vmatpush1.bf16.msra.mxu1 %v7855_v33 }
 0x331   :  { %5259 = vmatprep.subr.bf16.mxu0 %v7860_v34  ;;  %5751 = vmatprep.subr.bf16.mxu1 %v7863_v35 }
 0x334   :  { %5260 = vmatpush1.bf16.msra.mxu0 %v7858_v36  ;;  %5752 = vmatpush1.bf16.msra.mxu1 %v7861_v37 }
 0x337   :  { %5262 = vmatmul.mubr.bf16.vlgmr.msra.gmra.mrb[0].mxu0 %v5818_v38  ;;  %5754 = vmatmul.mubr.bf16.vlgmr.msra.gmra.mrb[0].mxu1 %v5818_v38 }
 0x40a   :  { %v5263_v48 = vpop.f32.mrb[0].mxu0  ;;  %v5755_v49 = vpop.f32.mrb[0].mxu1 }
 0x40b   :  { %v6592_v50 = vadd.f32 %v5263_v48, %v837_v44  ;;  %v6594_v51 = vadd.f32 %v5755_v49, %v845_v45  ;;  %v5265_v19 = vpop.f32.mrb[1].mxu0  ;;  %v5757_v52 = vpop.f32.mrb[1].mxu1 }
 0x40c   :  { %v6593_v53 = vadd.f32 %v5265_v19, %v841_v46  ;;  %v6595_v54 = vadd.f32 %v5757_v52, %v849_v47  ;;  %v5267_v55 = vpop.f32.mrb[2].mxu0  ;;  %v5759_v56 = vpop.f32.mrb[2].mxu1 }
 0x40d   :  { %v5268_v57 = vpop.f32.mrb[3].mxu0  ;;  %v5760_v58 = vpop.f32.mrb[3].mxu1 }
 0x40e   :  { %v6590_v59 = vpack.c.bf16 %v6593_v53, %v6592_v50  ;;  %v6591_v60 = vpack.c.bf16 %v6595_v54, %v6594_v51 }
 0x410   :  { %5778 = vst [vmem:[#allocation8] sm:$0xff] %v6590_v59  ;;  %5779 = vst [vmem:[#allocation8 + $0x8] sm:$0xff] %v6591_v60 }
 0x411   :  { %7943 = shalt.err (!%p7940_p0)
}
 0x412   :  { %s7944_s25 = scalar_lea.hbm %s8103_s3, 256 }
 0x413   :  { %p7945_p1 = scmp.ne.s32.totalorder %s8103_s3, %s7944_s25  ;;  %p7948_p2 = scmp.lt.u32.totalorder %s7944_s25, %s8103_s3 }
 0x415   :  { %p7950_p3 = pnand %p7948_p2, %p7945_p1 }
 0x417   :  { %7953 = shalt.err (!%p7950_p3)
}
 0x418   :  { %5789 = dma.vmem_to_hbm [thread:$0]  %s5787_s21, 256, %s8103_s3, [#allocation4]  }
 0x419   :  { %7958 = dma.done.wait [#allocation4], 256  }
 0x41a   :  { %7959 = vsyncadd [#allocation4], 4294967040 }
 0x41b   :  { %5793 = vsyncpa [#allocation3], 1 }
 0x41c   :  { %5794 = vsyncpa [#allocation6], 1 }
 0x41d   :  { %5795 = vsyncpa [#allocation4], 1 }

</bundles_post_ra>
